<compile_context>
chip_gen: v5e
topology: v5e:2x2
jax: 0.10.0
libtpu: 0.0.40
codegen_flags: <defaults>
</compile_context>

<pallas_src>
import numpy as np
import jax
import jax.numpy as jnp
from jax import lax
from jax.experimental import pallas as pl
from jax.experimental.pallas import tpu as pltpu

# ------------------------- small, module-consistent hyper-params ----------------
VOCAB = 100
HIDDEN = 32
N_HEADS = 4
HEAD_DIM = HIDDEN // N_HEADS
INTERMEDIATE = 64
TEXT_SEQ = 8
VIS_SEQ = 8
TOTAL_SEQ = TEXT_SEQ + VIS_SEQ
MAX_POS = 64
TYPE_VOCAB = 2
VIS_DIM = 16            # config.visual_embedding_dim
NUM_LABELS = 2          # config.num_labels
LOGITS_PAD = 128        # lane-dense logits slab width
N_LAYERS_TEXT = 2       # layers inside the pretrained text BertModel ("bert_out")
N_LAYERS_FUSION = 2     # layers of the VisualBERT fusion BertEncoder
BATCH = 2
LN_EPS = 1e-12
MASK_FILL = -10000.0

STACK_KEYS = ("wqkv", "bqkv", "wo", "bo", "ln1g", "ln1b",
              "wi", "bi", "wf", "bf", "ln2g", "ln2b")


# --------------------------------- math helpers (inside kernel) -----------------
def _gelu(x):
    # TODO(synk): HF BERT default is the exact erf GELU; tanh approximation used here.
    c = 0.7978845608028654
    return 0.5 * x * (1.0 + jnp.tanh(c * (x + 0.044715 * x * x * x)))


def _layernorm(x, g, b):
    mu = jnp.mean(x, axis=-1, keepdims=True)
    var = jnp.mean((x - mu) ** 2, axis=-1, keepdims=True)
    return (x - mu) * lax.rsqrt(var + LN_EPS) * g + b


def _encoder_stack(h, mask_add, stack):
    """Full BertLayer stack on an (S, H) value; weights stay resident in VMEM refs.
    1/sqrt(HEAD_DIM) is pre-folded into the Q columns of wqkv/bqkv (prepare_params)."""
    (wqkv, bqkv, wo, bo, ln1g, ln1b, wi, bi, wf, bf, ln2g, ln2b) = stack
    n_layers = wqkv.shape[0]
    S = h.shape[0]
    for l in range(n_layers):                      # static unroll over layers
        # fused QKV projection: one (S,H)x(H,3H) GEMM
        qkv = jnp.dot(h, wqkv[l], preferred_element_type=jnp.float32) + bqkv[l]

        # per-head score matmuls, stacked along sublanes so softmax issues ONCE/layer
        scores = []
        for hh in range(N_HEADS):
            q_h = qkv[:, hh * HEAD_DIM:(hh + 1) * HEAD_DIM]
            k_h = qkv[:, HIDDEN + hh * HEAD_DIM:HIDDEN + (hh + 1) * HEAD_DIM]
            scores.append(lax.dot_general(q_h, k_h, (((1,), (1,)), ((), ())),
                                          preferred_element_type=jnp.float32))
        s = jnp.concatenate(scores, axis=0) + mask_add          # (N_HEADS*S, S)
        s = s - jnp.max(s, axis=-1, keepdims=True)
        p = jnp.exp(s)
        p = p * pl.reciprocal(jnp.sum(p, axis=-1, keepdims=True), approx=True)

        # per-head context folded straight into the output projection:
        # pure vreg accumulation, no VMEM scratch, no masked 8-lane stores.
        attn = None
        for hh in range(N_HEADS):
            p_h = p[hh * S:(hh + 1) * S, :]
            v_h = qkv[:, 2 * HIDDEN + hh * HEAD_DIM:2 * HIDDEN + (hh + 1) * HEAD_DIM]
            ctx_h = jnp.dot(p_h, v_h, preferred_element_type=jnp.float32)
            contrib = jnp.dot(ctx_h, wo[l, hh * HEAD_DIM:(hh + 1) * HEAD_DIM, :],
                              preferred_element_type=jnp.float32)
            attn = contrib if attn is None else attn + contrib

        h1 = _layernorm(attn + bo[l] + h, ln1g[l], ln1b[l])
        inter = _gelu(jnp.dot(h1, wi[l], preferred_element_type=jnp.float32) + bi[l])
        ffn = jnp.dot(inter, wf[l], preferred_element_type=jnp.float32) + bf[l]
        h = _layernorm(ffn + h1, ln2g[l], ln2b[l])
    return h


# --------------------------------------- the single fused kernel ----------------
def fused_forward_kernel(ids_ref, tt_ref, gidx_ref, *refs):
    """Whole VisualBERTForClassification forward for one batch element."""
    it = iter(refs)
    vis_ref = next(it); mask_ref = next(it)
    word_ref = next(it); tpos_ref = next(it); ttyp_ref = next(it)
    temb_g = next(it); temb_b = next(it)
    text_stack = tuple(next(it) for _ in range(12))
    vproj_w = next(it); vproj_b = next(it)
    vtyp_ref = next(it); vpos_ref = next(it)
    vln_g = next(it); vln_b = next(it)
    fus_stack = tuple(next(it) for _ in range(12))
    pool_w = next(it); pool_b = next(it)
    wt = next(it); bt = next(it); cls_g = next(it); cls_b = next(it)
    wc = next(it); bc = next(it)
    seq_ref = next(it); pooled_ref = next(it); logits_ref = next(it)

    b = pl.program_id(0)
    full_mask_add = mask_ref[0]                    # (1, TOTAL_SEQ) additive key mask
    text_mask_add = full_mask_add[:, :TEXT_SEQ]    # text part == input_mask portion

    # ---- text embeddings: word/type gathers as one-hot matmuls (no XLA gather) ----
    iota_v = lax.broadcasted_iota(jnp.int32, (1, VOCAB), 1)
    iota_t = lax.broadcasted_iota(jnp.int32, (1, TYPE_VOCAB), 1)
    oh_w = jnp.concatenate(
        [(iota_v == ids_ref[b, t]).astype(jnp.float32) for t in range(TEXT_SEQ)], axis=0)
    oh_t = jnp.concatenate(
        [(iota_t == tt_ref[b, t]).astype(jnp.float32) for t in range(TEXT_SEQ)], axis=0)
    emb = (jnp.dot(oh_w, word_ref[...], preferred_element_type=jnp.float32)
           + jnp.dot(oh_t, ttyp_ref[...], preferred_element_type=jnp.float32)
           + tpos_ref[0:TEXT_SEQ, :])
    h_text = _layernorm(emb, temb_g[...], temb_b[...])

    # ---- text BERT encoder (self.bert_out) ----
    h_text = _encoder_stack(h_text, text_mask_add, text_stack)

    # ---- visual embeddings (myVisio): projection + type-0 emb + pos-0 emb + LN ----
    # TODO(synk): myVisio's source is not given; standard VisualBERT visual embedding assumed.
    v = jnp.dot(vis_ref[0], vproj_w[...], preferred_element_type=jnp.float32) + vproj_b[...]
    v = v + vtyp_ref[0:1, :] + vpos_ref[0:1, :]
    h_vis = _layernorm(v, vln_g[...], vln_b[...])

    # ---- on-chip concat + fusion encoder ----
    hid = jnp.concatenate([h_text, h_vis], axis=0)          # (TOTAL_SEQ, H)
    hid = _encoder_stack(hid, full_mask_add, fus_stack)
    seq_ref[0] = hid

    # ---- BertPooler + classifier head (gather via one-hot matmul) ----
    pooled = jnp.tanh(jnp.dot(hid[0:1, :], pool_w[...],
                              preferred_element_type=jnp.float32) + pool_b[...])
    pooled_ref[0] = pooled

    gi = gidx_ref[b]
    sel = (lax.broadcasted_iota(jnp.int32, (1, TOTAL_SEQ), 1) == gi).astype(jnp.float32)
    gat = jnp.dot(sel, hid, preferred_element_type=jnp.float32)      # (1, H)
    # nn.Dropout is identity in eval mode.
    t = jnp.dot(gat, wt[...], preferred_element_type=jnp.float32) + bt[...]
    t = _layernorm(_gelu(t), cls_g[...], cls_b[...])
    logits_ref[0] = jnp.dot(t, wc[...], preferred_element_type=jnp.float32) + bc[...]


# --------------------------------------- Pallas wrapper -------------------------
def visual_bert_forward_pallas(params, input_ids, token_type_ids, gather_idx,
                               visual_embeddings, mask_add):
    B = input_ids.shape[0]
    te, ve, cp = params["text_emb"], params["vis_emb"], params["cls"]
    tl, fl = params["text_layers"], params["fusion_layers"]

    shared = ([te["word"], te["pos"], te["type"], te["ln_g"], te["ln_b"]]
              + [tl[k] for k in STACK_KEYS]
              + [ve["proj_w"], ve["proj_b"], ve["type"], ve["pos"], ve["ln_g"], ve["ln_b"]]
              + [fl[k] for k in STACK_KEYS]
              + [params["pooler_w"], params["pooler_b"],
                 cp["wt"], cp["bt"], cp["ln_g"], cp["ln_b"], cp["wc_pad"], cp["bc_pad"]])

    def batch_spec(block):
        return pl.BlockSpec(block, lambda b, *_: (b,) + (0,) * (len(block) - 1))

    def const_spec(arr):
        zeros = (0,) * arr.ndim
        return pl.BlockSpec(arr.shape, lambda b, *_: zeros)

    in_specs = ([batch_spec((1, VIS_SEQ, VIS_DIM)),          # visual features
                 batch_spec((1, 1, TOTAL_SEQ))]              # additive attention mask
                + [const_spec(a) for a in shared])
    out_specs = (batch_spec((1, TOTAL_SEQ, HIDDEN)),
                 batch_spec((1, 1, HIDDEN)),
                 batch_spec((1, 1, LOGITS_PAD)))
    out_shape = (jax.ShapeDtypeStruct((B, TOTAL_SEQ, HIDDEN), jnp.float32),
                 jax.ShapeDtypeStruct((B, 1, HIDDEN), jnp.float32),
                 jax.ShapeDtypeStruct((B, 1, LOGITS_PAD), jnp.float32))

    return pl.pallas_call(
        fused_forward_kernel,
        out_shape=out_shape,
        grid_spec=pltpu.PrefetchScalarGridSpec(
            num_scalar_prefetch=3,          # input_ids, token_type_ids, gather_idx (SMEM)
            grid=(B,),
            in_specs=in_specs,
            out_specs=out_specs),
        compiler_params=pltpu.CompilerParams(dimension_semantics=("parallel",)),
    )(input_ids, token_type_ids, gather_idx, visual_embeddings, mask_add, *shared)


# --------------------------------------- parameters -----------------------------
def init_params(key):
    keys = iter(jax.random.split(key, 64))

    def dense(shape):
        return jax.random.normal(next(keys), shape, jnp.float32) * 0.02

    def zeros(shape):
        return jnp.zeros(shape, jnp.float32)

    def ones(shape):
        return jnp.ones(shape, jnp.float32)

    def layer_stack(n_layers):
        # per-layer weights stacked along a leading layer axis; QKV fused
        return {
            "wqkv": dense((n_layers, HIDDEN, 3 * HIDDEN)),
            "bqkv": zeros((n_layers, 1, 3 * HIDDEN)),
            "wo": dense((n_layers, HIDDEN, HIDDEN)),
            "bo": zeros((n_layers, 1, HIDDEN)),
            "ln1g": ones((n_layers, 1, HIDDEN)),
            "ln1b": zeros((n_layers, 1, HIDDEN)),
            "wi": dense((n_layers, HIDDEN, INTERMEDIATE)),
            "bi": zeros((n_layers, 1, INTERMEDIATE)),
            "wf": dense((n_layers, INTERMEDIATE, HIDDEN)),
            "bf": zeros((n_layers, 1, HIDDEN)),
            "ln2g": ones((n_layers, 1, HIDDEN)),
            "ln2b": zeros((n_layers, 1, HIDDEN)),
        }

    return {
        "text_emb": {
            "word": dense((VOCAB, HIDDEN)),
            "pos": dense((MAX_POS, HIDDEN)),
            "type": dense((TYPE_VOCAB, HIDDEN)),
            "ln_g": ones((1, HIDDEN)),
            "ln_b": zeros((1, HIDDEN)),
        },
        "text_layers": layer_stack(N_LAYERS_TEXT),
        "vis_emb": {
            "proj_w": dense((VIS_DIM, HIDDEN)),
            "proj_b": zeros((1, HIDDEN)),
            "type": dense((TYPE_VOCAB, HIDDEN)),
            "pos": dense((MAX_POS, HIDDEN)),
            "ln_g": ones((1, HIDDEN)),
            "ln_b": zeros((1, HIDDEN)),
        },
        "fusion_layers": layer_stack(N_LAYERS_FUSION),
        "pooler_w": dense((HIDDEN, HIDDEN)),
        "pooler_b": zeros((1, HIDDEN)),
        "cls": {
            "wt": dense((HIDDEN, HIDDEN)),
            "bt": zeros((1, HIDDEN)),
            "ln_g": ones((1, HIDDEN)),
            "ln_b": zeros((1, HIDDEN)),
            "wc": dense((HIDDEN, NUM_LABELS)),
            "bc": zeros((1, NUM_LABELS)),
        },
    }


def prepare_params(params):
    """One-time parameter prep (outside the per-forward path): fold the attention
    1/sqrt(head_dim) scale into the Q columns of wqkv/bqkv, pad the classifier to a
    lane-dense 128-wide slab."""
    scale = 1.0 / np.sqrt(HEAD_DIM)

    def fold(stack):
        stack = dict(stack)
        stack["wqkv"] = stack["wqkv"].at[:, :, :HIDDEN].multiply(scale)
        stack["bqkv"] = stack["bqkv"].at[:, :, :HIDDEN].multiply(scale)
        return stack

    out = dict(params)
    out["text_layers"] = fold(params["text_layers"])
    out["fusion_layers"] = fold(params["fusion_layers"])
    cls = dict(params["cls"])
    cls["wc_pad"] = jnp.pad(cls["wc"], ((0, 0), (0, LOGITS_PAD - NUM_LABELS)))
    cls["bc_pad"] = jnp.pad(cls["bc"], ((0, 0), (0, LOGITS_PAD - NUM_LABELS)))
    out["cls"] = cls
    return out


# --------------------------------------- forward --------------------------------
def forward(params, input_ids, input_mask, token_type_ids, visual_embeddings, image_dim):
    # add_custom_params: image_mask = arange(n_vis) < image_dim; visual type ids = 0.
    image_mask = (jnp.arange(VIS_SEQ)[None, :] < image_dim[:, None]).astype(jnp.float32)
    attention_mask = jnp.concatenate([input_mask.astype(jnp.float32), image_mask], axis=-1)
    mask_add = ((1.0 - attention_mask) * MASK_FILL)[:, None, :]          # (B, 1, T+V)
    # index_to_gather = sum(input_mask) - 2; clip guards degenerate masks
    # (the PyTorch module would wrap to a negative index instead).
    gather_idx = jnp.clip(jnp.sum(input_mask, axis=1) - 2, 0, TOTAL_SEQ - 1).astype(jnp.int32)

    seq, pooled3, logits3 = visual_bert_forward_pallas(
        params, input_ids.astype(jnp.int32), token_type_ids.astype(jnp.int32),
        gather_idx, visual_embeddings, mask_add)

    # TODO(synk): per-layer attention probabilities (output_dict['attention_weights'])
    # are not emitted by the fused kernel.
    return {
        "sequence_output": seq,
        "pooled_output": pooled3[:, 0, :],
        "scores": logits3[:, 0, :NUM_LABELS].reshape(-1, NUM_LABELS),
    }


# --------------------------------------- main -----------------------------------
if __name__ == "__main__":
    key = jax.random.PRNGKey(0)
    pkey, k1, k2 = jax.random.split(key, 3)
    params = prepare_params(init_params(pkey))

    input_ids = jax.random.randint(k1, (BATCH, TEXT_SEQ), 0, VOCAB, dtype=jnp.int32)
    input_mask = jnp.array([[1, 1, 1, 1, 1, 1, 0, 0],
                            [1, 1, 1, 1, 1, 1, 1, 1]], dtype=jnp.int32)
    token_type_ids = jnp.zeros((BATCH, TEXT_SEQ), dtype=jnp.int32)
    visual_embeddings = jax.random.normal(k2, (BATCH, VIS_SEQ, VIS_DIM), jnp.float32)
    image_dim = jnp.array([4, 8], dtype=jnp.int32)   # image_info_0.max_features

    out = jax.jit(forward)(params, input_ids, input_mask, token_type_ids,
                           visual_embeddings, image_dim)
    jax.block_until_ready(out["scores"])

    assert out["scores"].shape == (BATCH, NUM_LABELS)
    assert out["sequence_output"].shape == (BATCH, TOTAL_SEQ, HIDDEN)
    assert out["pooled_output"].shape == (BATCH, HIDDEN)
    print("KERNEL_OK")
</pallas_src>

<mosaic_0001>
module attributes {stable_mosaic.version = 11 : i64} {
  func.func @fused_forward_kernel(%arg0: i32, %arg1: memref<2x8xi32, #tpu.memory_space<smem>>, %arg2: memref<2x8xi32, #tpu.memory_space<smem>>, %arg3: memref<2xi32, #tpu.memory_space<smem>>, %arg4: memref<1x8x16xf32, #tpu.memory_space<vmem>>, %arg5: memref<1x1x16xf32, #tpu.memory_space<vmem>>, %arg6: memref<100x32xf32, #tpu.memory_space<vmem>>, %arg7: memref<64x32xf32, #tpu.memory_space<vmem>>, %arg8: memref<2x32xf32, #tpu.memory_space<vmem>>, %arg9: memref<1x32xf32, #tpu.memory_space<vmem>>, %arg10: memref<1x32xf32, #tpu.memory_space<vmem>>, %arg11: memref<2x32x96xf32, #tpu.memory_space<vmem>>, %arg12: memref<2x1x96xf32, #tpu.memory_space<vmem>>, %arg13: memref<2x32x32xf32, #tpu.memory_space<vmem>>, %arg14: memref<2x1x32xf32, #tpu.memory_space<vmem>>, %arg15: memref<2x1x32xf32, #tpu.memory_space<vmem>>, %arg16: memref<2x1x32xf32, #tpu.memory_space<vmem>>, %arg17: memref<2x32x64xf32, #tpu.memory_space<vmem>>, %arg18: memref<2x1x64xf32, #tpu.memory_space<vmem>>, %arg19: memref<2x64x32xf32, #tpu.memory_space<vmem>>, %arg20: memref<2x1x32xf32, #tpu.memory_space<vmem>>, %arg21: memref<2x1x32xf32, #tpu.memory_space<vmem>>, %arg22: memref<2x1x32xf32, #tpu.memory_space<vmem>>, %arg23: memref<16x32xf32, #tpu.memory_space<vmem>>, %arg24: memref<1x32xf32, #tpu.memory_space<vmem>>, %arg25: memref<2x32xf32, #tpu.memory_space<vmem>>, %arg26: memref<64x32xf32, #tpu.memory_space<vmem>>, %arg27: memref<1x32xf32, #tpu.memory_space<vmem>>, %arg28: memref<1x32xf32, #tpu.memory_space<vmem>>, %arg29: memref<2x32x96xf32, #tpu.memory_space<vmem>>, %arg30: memref<2x1x96xf32, #tpu.memory_space<vmem>>, %arg31: memref<2x32x32xf32, #tpu.memory_space<vmem>>, %arg32: memref<2x1x32xf32, #tpu.memory_space<vmem>>, %arg33: memref<2x1x32xf32, #tpu.memory_space<vmem>>, %arg34: memref<2x1x32xf32, #tpu.memory_space<vmem>>, %arg35: memref<2x32x64xf32, #tpu.memory_space<vmem>>, %arg36: memref<2x1x64xf32, #tpu.memory_space<vmem>>, %arg37: memref<2x64x32xf32, #tpu.memory_space<vmem>>, %arg38: memref<2x1x32xf32, #tpu.memory_space<vmem>>, %arg39: memref<2x1x32xf32, #tpu.memory_space<vmem>>, %arg40: memref<2x1x32xf32, #tpu.memory_space<vmem>>, %arg41: memref<32x32xf32, #tpu.memory_space<vmem>>, %arg42: memref<1x32xf32, #tpu.memory_space<vmem>>, %arg43: memref<32x32xf32, #tpu.memory_space<vmem>>, %arg44: memref<1x32xf32, #tpu.memory_space<vmem>>, %arg45: memref<1x32xf32, #tpu.memory_space<vmem>>, %arg46: memref<1x32xf32, #tpu.memory_space<vmem>>, %arg47: memref<32x128xf32, #tpu.memory_space<vmem>>, %arg48: memref<1x128xf32, #tpu.memory_space<vmem>>, %arg49: memref<1x16x32xf32, #tpu.memory_space<vmem>>, %arg50: memref<1x1x32xf32, #tpu.memory_space<vmem>>, %arg51: memref<1x1x128xf32, #tpu.memory_space<vmem>>) attributes {dimension_semantics = [#tpu.dimension_semantics<parallel>], iteration_bounds = array<i64: 2>, scalar_prefetch = 3 : i64, scratch_operands = 0 : i64, tpu.core_type = #tpu.core_type<tc>, window_params = [{transform_indices = @transform_0, window_bounds = array<i64: 1, 8, 16>}, {transform_indices = @transform_1, window_bounds = array<i64: 1, 1, 16>}, {pipeline_mode = #tpu.pipeline_mode<synchronous>, transform_indices = @transform_2, window_bounds = array<i64: 100, 32>}, {pipeline_mode = #tpu.pipeline_mode<synchronous>, transform_indices = @transform_3, window_bounds = array<i64: 64, 32>}, {pipeline_mode = #tpu.pipeline_mode<synchronous>, transform_indices = @transform_4, window_bounds = array<i64: 2, 32>}, {pipeline_mode = #tpu.pipeline_mode<synchronous>, transform_indices = @transform_5, window_bounds = array<i64: 1, 32>}, {pipeline_mode = #tpu.pipeline_mode<synchronous>, transform_indices = @transform_6, window_bounds = array<i64: 1, 32>}, {pipeline_mode = #tpu.pipeline_mode<synchronous>, transform_indices = @transform_7, window_bounds = array<i64: 2, 32, 96>}, {pipeline_mode = #tpu.pipeline_mode<synchronous>, transform_indices = @transform_8, window_bounds = array<i64: 2, 1, 96>}, {pipeline_mode = #tpu.pipeline_mode<synchronous>, transform_indices = @transform_9, window_bounds = array<i64: 2, 32, 32>}, {pipeline_mode = #tpu.pipeline_mode<synchronous>, transform_indices = @transform_10, window_bounds = array<i64: 2, 1, 32>}, {pipeline_mode = #tpu.pipeline_mode<synchronous>, transform_indices = @transform_11, window_bounds = array<i64: 2, 1, 32>}, {pipeline_mode = #tpu.pipeline_mode<synchronous>, transform_indices = @transform_12, window_bounds = array<i64: 2, 1, 32>}, {pipeline_mode = #tpu.pipeline_mode<synchronous>, transform_indices = @transform_13, window_bounds = array<i64: 2, 32, 64>}, {pipeline_mode = #tpu.pipeline_mode<synchronous>, transform_indices = @transform_14, window_bounds = array<i64: 2, 1, 64>}, {pipeline_mode = #tpu.pipeline_mode<synchronous>, transform_indices = @transform_15, window_bounds = array<i64: 2, 64, 32>}, {pipeline_mode = #tpu.pipeline_mode<synchronous>, transform_indices = @transform_16, window_bounds = array<i64: 2, 1, 32>}, {pipeline_mode = #tpu.pipeline_mode<synchronous>, transform_indices = @transform_17, window_bounds = array<i64: 2, 1, 32>}, {pipeline_mode = #tpu.pipeline_mode<synchronous>, transform_indices = @transform_18, window_bounds = array<i64: 2, 1, 32>}, {pipeline_mode = #tpu.pipeline_mode<synchronous>, transform_indices = @transform_19, window_bounds = array<i64: 16, 32>}, {pipeline_mode = #tpu.pipeline_mode<synchronous>, transform_indices = @transform_20, window_bounds = array<i64: 1, 32>}, {pipeline_mode = #tpu.pipeline_mode<synchronous>, transform_indices = @transform_21, window_bounds = array<i64: 2, 32>}, {pipeline_mode = #tpu.pipeline_mode<synchronous>, transform_indices = @transform_22, window_bounds = array<i64: 64, 32>}, {pipeline_mode = #tpu.pipeline_mode<synchronous>, transform_indices = @transform_23, window_bounds = array<i64: 1, 32>}, {pipeline_mode = #tpu.pipeline_mode<synchronous>, transform_indices = @transform_24, window_bounds = array<i64: 1, 32>}, {pipeline_mode = #tpu.pipeline_mode<synchronous>, transform_indices = @transform_25, window_bounds = array<i64: 2, 32, 96>}, {pipeline_mode = #tpu.pipeline_mode<synchronous>, transform_indices = @transform_26, window_bounds = array<i64: 2, 1, 96>}, {pipeline_mode = #tpu.pipeline_mode<synchronous>, transform_indices = @transform_27, window_bounds = array<i64: 2, 32, 32>}, {pipeline_mode = #tpu.pipeline_mode<synchronous>, transform_indices = @transform_28, window_bounds = array<i64: 2, 1, 32>}, {pipeline_mode = #tpu.pipeline_mode<synchronous>, transform_indices = @transform_29, window_bounds = array<i64: 2, 1, 32>}, {pipeline_mode = #tpu.pipeline_mode<synchronous>, transform_indices = @transform_30, window_bounds = array<i64: 2, 1, 32>}, {pipeline_mode = #tpu.pipeline_mode<synchronous>, transform_indices = @transform_31, window_bounds = array<i64: 2, 32, 64>}, {pipeline_mode = #tpu.pipeline_mode<synchronous>, transform_indices = @transform_32, window_bounds = array<i64: 2, 1, 64>}, {pipeline_mode = #tpu.pipeline_mode<synchronous>, transform_indices = @transform_33, window_bounds = array<i64: 2, 64, 32>}, {pipeline_mode = #tpu.pipeline_mode<synchronous>, transform_indices = @transform_34, window_bounds = array<i64: 2, 1, 32>}, {pipeline_mode = #tpu.pipeline_mode<synchronous>, transform_indices = @transform_35, window_bounds = array<i64: 2, 1, 32>}, {pipeline_mode = #tpu.pipeline_mode<synchronous>, transform_indices = @transform_36, window_bounds = array<i64: 2, 1, 32>}, {pipeline_mode = #tpu.pipeline_mode<synchronous>, transform_indices = @transform_37, window_bounds = array<i64: 32, 32>}, {pipeline_mode = #tpu.pipeline_mode<synchronous>, transform_indices = @transform_38, window_bounds = array<i64: 1, 32>}, {pipeline_mode = #tpu.pipeline_mode<synchronous>, transform_indices = @transform_39, window_bounds = array<i64: 32, 32>}, {pipeline_mode = #tpu.pipeline_mode<synchronous>, transform_indices = @transform_40, window_bounds = array<i64: 1, 32>}, {pipeline_mode = #tpu.pipeline_mode<synchronous>, transform_indices = @transform_41, window_bounds = array<i64: 1, 32>}, {pipeline_mode = #tpu.pipeline_mode<synchronous>, transform_indices = @transform_42, window_bounds = array<i64: 1, 32>}, {pipeline_mode = #tpu.pipeline_mode<synchronous>, transform_indices = @transform_43, window_bounds = array<i64: 32, 128>}, {pipeline_mode = #tpu.pipeline_mode<synchronous>, transform_indices = @transform_44, window_bounds = array<i64: 1, 128>}, {transform_indices = @transform_45, window_bounds = array<i64: 1, 16, 32>}, {transform_indices = @transform_46, window_bounds = array<i64: 1, 1, 32>}, {transform_indices = @transform_47, window_bounds = array<i64: 1, 1, 128>}]} {
    %c0 = arith.constant 0 : index
    %c0_0 = arith.constant 0 : index
    %c0_1 = arith.constant 0 : index
    %0 = vector.load %arg5[%c0, %c0_0, %c0_1] : memref<1x1x16xf32, #tpu.memory_space<vmem>>, vector<1x1x16xf32>
    %1 = vector.shape_cast %0 : vector<1x1x16xf32> to vector<1x16xf32>
    %2 = vector.extract_strided_slice %1 {offsets = [0, 0], sizes = [1, 8], strides = [1, 1]} : vector<1x16xf32> to vector<1x8xf32>
    %3 = tpu.iota {dimensions = array<i32: 1>} : vector<1x100xi32>
    %4 = tpu.iota {dimensions = array<i32: 1>} : vector<1x2xi32>
    %5 = arith.index_cast %arg0 : i32 to index
    %c0_2 = arith.constant 0 : index
    %6 = memref.load %arg1[%5, %c0_2] : memref<2x8xi32, #tpu.memory_space<smem>>
    %7 = vector.broadcast %6 : i32 to vector<1x100xi32>
    %8 = arith.cmpi eq, %3, %7 : vector<1x100xi32>
    %9 = arith.extui %8 : vector<1x100xi1> to vector<1x100xi32>
    %10 = arith.sitofp %9 : vector<1x100xi32> to vector<1x100xf32>
    %11 = arith.index_cast %arg0 : i32 to index
    %c1 = arith.constant 1 : index
    %12 = memref.load %arg1[%11, %c1] : memref<2x8xi32, #tpu.memory_space<smem>>
    %13 = vector.broadcast %12 : i32 to vector<1x100xi32>
    %14 = arith.cmpi eq, %3, %13 : vector<1x100xi32>
    %15 = arith.extui %14 : vector<1x100xi1> to vector<1x100xi32>
    %16 = arith.sitofp %15 : vector<1x100xi32> to vector<1x100xf32>
    %17 = arith.index_cast %arg0 : i32 to index
    %c2 = arith.constant 2 : index
    %18 = memref.load %arg1[%17, %c2] : memref<2x8xi32, #tpu.memory_space<smem>>
    %19 = vector.broadcast %18 : i32 to vector<1x100xi32>
    %20 = arith.cmpi eq, %3, %19 : vector<1x100xi32>
    %21 = arith.extui %20 : vector<1x100xi1> to vector<1x100xi32>
    %22 = arith.sitofp %21 : vector<1x100xi32> to vector<1x100xf32>
    %23 = arith.index_cast %arg0 : i32 to index
    %c3 = arith.constant 3 : index
    %24 = memref.load %arg1[%23, %c3] : memref<2x8xi32, #tpu.memory_space<smem>>
    %25 = vector.broadcast %24 : i32 to vector<1x100xi32>
    %26 = arith.cmpi eq, %3, %25 : vector<1x100xi32>
    %27 = arith.extui %26 : vector<1x100xi1> to vector<1x100xi32>
    %28 = arith.sitofp %27 : vector<1x100xi32> to vector<1x100xf32>
    %29 = arith.index_cast %arg0 : i32 to index
    %c4 = arith.constant 4 : index
    %30 = memref.load %arg1[%29, %c4] : memref<2x8xi32, #tpu.memory_space<smem>>
    %31 = vector.broadcast %30 : i32 to vector<1x100xi32>
    %32 = arith.cmpi eq, %3, %31 : vector<1x100xi32>
    %33 = arith.extui %32 : vector<1x100xi1> to vector<1x100xi32>
    %34 = arith.sitofp %33 : vector<1x100xi32> to vector<1x100xf32>
    %35 = arith.index_cast %arg0 : i32 to index
    %c5 = arith.constant 5 : index
    %36 = memref.load %arg1[%35, %c5] : memref<2x8xi32, #tpu.memory_space<smem>>
    %37 = vector.broadcast %36 : i32 to vector<1x100xi32>
    %38 = arith.cmpi eq, %3, %37 : vector<1x100xi32>
    %39 = arith.extui %38 : vector<1x100xi1> to vector<1x100xi32>
    %40 = arith.sitofp %39 : vector<1x100xi32> to vector<1x100xf32>
    %41 = arith.index_cast %arg0 : i32 to index
    %c6 = arith.constant 6 : index
    %42 = memref.load %arg1[%41, %c6] : memref<2x8xi32, #tpu.memory_space<smem>>
    %43 = vector.broadcast %42 : i32 to vector<1x100xi32>
    %44 = arith.cmpi eq, %3, %43 : vector<1x100xi32>
    %45 = arith.extui %44 : vector<1x100xi1> to vector<1x100xi32>
    %46 = arith.sitofp %45 : vector<1x100xi32> to vector<1x100xf32>
    %47 = arith.index_cast %arg0 : i32 to index
    %c7 = arith.constant 7 : index
    %48 = memref.load %arg1[%47, %c7] : memref<2x8xi32, #tpu.memory_space<smem>>
    %49 = vector.broadcast %48 : i32 to vector<1x100xi32>
    %50 = arith.cmpi eq, %3, %49 : vector<1x100xi32>
    %51 = arith.extui %50 : vector<1x100xi1> to vector<1x100xi32>
    %52 = arith.sitofp %51 : vector<1x100xi32> to vector<1x100xf32>
    %53 = tpu.concatenate %10, %16, %22, %28, %34, %40, %46, %52 in 0 : vector<1x100xf32>, vector<1x100xf32>, vector<1x100xf32>, vector<1x100xf32>, vector<1x100xf32>, vector<1x100xf32>, vector<1x100xf32>, vector<1x100xf32> -> vector<8x100xf32>
    %54 = arith.index_cast %arg0 : i32 to index
    %c0_3 = arith.constant 0 : index
    %55 = memref.load %arg2[%54, %c0_3] : memref<2x8xi32, #tpu.memory_space<smem>>
    %56 = vector.broadcast %55 : i32 to vector<1x2xi32>
    %57 = arith.cmpi eq, %4, %56 : vector<1x2xi32>
    %58 = arith.extui %57 : vector<1x2xi1> to vector<1x2xi32>
    %59 = arith.sitofp %58 : vector<1x2xi32> to vector<1x2xf32>
    %60 = arith.index_cast %arg0 : i32 to index
    %c1_4 = arith.constant 1 : index
    %61 = memref.load %arg2[%60, %c1_4] : memref<2x8xi32, #tpu.memory_space<smem>>
    %62 = vector.broadcast %61 : i32 to vector<1x2xi32>
    %63 = arith.cmpi eq, %4, %62 : vector<1x2xi32>
    %64 = arith.extui %63 : vector<1x2xi1> to vector<1x2xi32>
    %65 = arith.sitofp %64 : vector<1x2xi32> to vector<1x2xf32>
    %66 = arith.index_cast %arg0 : i32 to index
    %c2_5 = arith.constant 2 : index
    %67 = memref.load %arg2[%66, %c2_5] : memref<2x8xi32, #tpu.memory_space<smem>>
    %68 = vector.broadcast %67 : i32 to vector<1x2xi32>
    %69 = arith.cmpi eq, %4, %68 : vector<1x2xi32>
    %70 = arith.extui %69 : vector<1x2xi1> to vector<1x2xi32>
    %71 = arith.sitofp %70 : vector<1x2xi32> to vector<1x2xf32>
    %72 = arith.index_cast %arg0 : i32 to index
    %c3_6 = arith.constant 3 : index
    %73 = memref.load %arg2[%72, %c3_6] : memref<2x8xi32, #tpu.memory_space<smem>>
    %74 = vector.broadcast %73 : i32 to vector<1x2xi32>
    %75 = arith.cmpi eq, %4, %74 : vector<1x2xi32>
    %76 = arith.extui %75 : vector<1x2xi1> to vector<1x2xi32>
    %77 = arith.sitofp %76 : vector<1x2xi32> to vector<1x2xf32>
    %78 = arith.index_cast %arg0 : i32 to index
    %c4_7 = arith.constant 4 : index
    %79 = memref.load %arg2[%78, %c4_7] : memref<2x8xi32, #tpu.memory_space<smem>>
    %80 = vector.broadcast %79 : i32 to vector<1x2xi32>
    %81 = arith.cmpi eq, %4, %80 : vector<1x2xi32>
    %82 = arith.extui %81 : vector<1x2xi1> to vector<1x2xi32>
    %83 = arith.sitofp %82 : vector<1x2xi32> to vector<1x2xf32>
    %84 = arith.index_cast %arg0 : i32 to index
    %c5_8 = arith.constant 5 : index
    %85 = memref.load %arg2[%84, %c5_8] : memref<2x8xi32, #tpu.memory_space<smem>>
    %86 = vector.broadcast %85 : i32 to vector<1x2xi32>
    %87 = arith.cmpi eq, %4, %86 : vector<1x2xi32>
    %88 = arith.extui %87 : vector<1x2xi1> to vector<1x2xi32>
    %89 = arith.sitofp %88 : vector<1x2xi32> to vector<1x2xf32>
    %90 = arith.index_cast %arg0 : i32 to index
    %c6_9 = arith.constant 6 : index
    %91 = memref.load %arg2[%90, %c6_9] : memref<2x8xi32, #tpu.memory_space<smem>>
    %92 = vector.broadcast %91 : i32 to vector<1x2xi32>
    %93 = arith.cmpi eq, %4, %92 : vector<1x2xi32>
    %94 = arith.extui %93 : vector<1x2xi1> to vector<1x2xi32>
    %95 = arith.sitofp %94 : vector<1x2xi32> to vector<1x2xf32>
    %96 = arith.index_cast %arg0 : i32 to index
    %c7_10 = arith.constant 7 : index
    %97 = memref.load %arg2[%96, %c7_10] : memref<2x8xi32, #tpu.memory_space<smem>>
    %98 = vector.broadcast %97 : i32 to vector<1x2xi32>
    %99 = arith.cmpi eq, %4, %98 : vector<1x2xi32>
    %100 = arith.extui %99 : vector<1x2xi1> to vector<1x2xi32>
    %101 = arith.sitofp %100 : vector<1x2xi32> to vector<1x2xf32>
    %102 = tpu.concatenate %59, %65, %71, %77, %83, %89, %95, %101 in 0 : vector<1x2xf32>, vector<1x2xf32>, vector<1x2xf32>, vector<1x2xf32>, vector<1x2xf32>, vector<1x2xf32>, vector<1x2xf32>, vector<1x2xf32> -> vector<8x2xf32>
    %c0_11 = arith.constant 0 : index
    %c0_12 = arith.constant 0 : index
    %103 = vector.load %arg6[%c0_11, %c0_12] : memref<100x32xf32, #tpu.memory_space<vmem>>, vector<100x32xf32>
    %cst = arith.constant dense<0.000000e+00> : vector<8x32xf32>
    %104 = tpu.matmul %53, %103, %cst {dimension_numbers = #tpu.dot_dimension_numbers<[1], [0], [0], [1], [0, 0, 1, 1], [], []>} : vector<8x100xf32>, vector<100x32xf32>, vector<8x32xf32> -> vector<8x32xf32>
    %c0_13 = arith.constant 0 : index
    %c0_14 = arith.constant 0 : index
    %105 = vector.load %arg8[%c0_13, %c0_14] : memref<2x32xf32, #tpu.memory_space<vmem>>, vector<2x32xf32>
    %cst_15 = arith.constant dense<0.000000e+00> : vector<8x32xf32>
    %106 = tpu.matmul %102, %105, %cst_15 {dimension_numbers = #tpu.dot_dimension_numbers<[1], [0], [0], [1], [0, 0, 1, 1], [], []>} : vector<8x2xf32>, vector<2x32xf32>, vector<8x32xf32> -> vector<8x32xf32>
    %107 = arith.addf %104, %106 : vector<8x32xf32>
    %c0_16 = arith.constant 0 : index
    %c0_17 = arith.constant 0 : index
    %108 = vector.load %arg7[%c0_16, %c0_17] : memref<64x32xf32, #tpu.memory_space<vmem>>, vector<8x32xf32>
    %109 = arith.addf %107, %108 : vector<8x32xf32>
    %c0_18 = arith.constant 0 : index
    %c0_19 = arith.constant 0 : index
    %110 = vector.load %arg9[%c0_18, %c0_19] : memref<1x32xf32, #tpu.memory_space<vmem>>, vector<1x32xf32>
    %c0_20 = arith.constant 0 : index
    %c0_21 = arith.constant 0 : index
    %111 = vector.load %arg10[%c0_20, %c0_21] : memref<1x32xf32, #tpu.memory_space<vmem>>, vector<1x32xf32>
    %cst_22 = arith.constant dense<0.000000e+00> : vector<8xf32>
    %112 = vector.multi_reduction <add>, %109, %cst_22 [1] : vector<8x32xf32> to vector<8xf32>
    %113 = vector.shape_cast %112 : vector<8xf32> to vector<8x1xf32>
    %cst_23 = arith.constant 3.200000e+01 : f32
    %114 = vector.broadcast %cst_23 : f32 to vector<8x1xf32>
    %115 = arith.divf %113, %114 : vector<8x1xf32>
    %116 = vector.broadcast %115 : vector<8x1xf32> to vector<8x32xf32>
    %117 = arith.subf %109, %116 : vector<8x32xf32>
    %118 = arith.mulf %117, %117 : vector<8x32xf32>
    %cst_24 = arith.constant dense<0.000000e+00> : vector<8xf32>
    %119 = vector.multi_reduction <add>, %118, %cst_24 [1] : vector<8x32xf32> to vector<8xf32>
    %120 = vector.shape_cast %119 : vector<8xf32> to vector<8x1xf32>
    %cst_25 = arith.constant 3.200000e+01 : f32
    %121 = vector.broadcast %cst_25 : f32 to vector<8x1xf32>
    %122 = arith.divf %120, %121 : vector<8x1xf32>
    %123 = vector.broadcast %115 : vector<8x1xf32> to vector<8x32xf32>
    %124 = arith.subf %109, %123 : vector<8x32xf32>
    %cst_26 = arith.constant 9.99999996E-13 : f32
    %125 = vector.broadcast %cst_26 : f32 to vector<8x1xf32>
    %126 = arith.addf %122, %125 : vector<8x1xf32>
    %127 = math.rsqrt %126 : vector<8x1xf32>
    %128 = vector.broadcast %127 : vector<8x1xf32> to vector<8x32xf32>
    %129 = arith.mulf %124, %128 : vector<8x32xf32>
    %130 = vector.broadcast %110 : vector<1x32xf32> to vector<8x32xf32>
    %131 = arith.mulf %129, %130 : vector<8x32xf32>
    %132 = vector.broadcast %111 : vector<1x32xf32> to vector<8x32xf32>
    %133 = arith.addf %131, %132 : vector<8x32xf32>
    %c0_27 = arith.constant 0 : index
    %c0_28 = arith.constant 0 : index
    %c0_29 = arith.constant 0 : index
    %134 = vector.load %arg11[%c0_27, %c0_28, %c0_29] : memref<2x32x96xf32, #tpu.memory_space<vmem>>, vector<1x32x96xf32>
    %135 = vector.shape_cast %134 : vector<1x32x96xf32> to vector<32x96xf32>
    %cst_30 = arith.constant dense<0.000000e+00> : vector<8x96xf32>
    %136 = tpu.matmul %133, %135, %cst_30 {dimension_numbers = #tpu.dot_dimension_numbers<[1], [0], [0], [1], [0, 0, 1, 1], [], []>} : vector<8x32xf32>, vector<32x96xf32>, vector<8x96xf32> -> vector<8x96xf32>
    %c0_31 = arith.constant 0 : index
    %c0_32 = arith.constant 0 : index
    %c0_33 = arith.constant 0 : index
    %137 = vector.load %arg12[%c0_31, %c0_32, %c0_33] : memref<2x1x96xf32, #tpu.memory_space<vmem>>, vector<1x1x96xf32>
    %138 = vector.shape_cast %137 : vector<1x1x96xf32> to vector<1x96xf32>
    %139 = vector.broadcast %138 : vector<1x96xf32> to vector<8x96xf32>
    %140 = arith.addf %136, %139 : vector<8x96xf32>
    %141 = vector.extract_strided_slice %140 {offsets = [0, 0], sizes = [8, 8], strides = [1, 1]} : vector<8x96xf32> to vector<8x8xf32>
    %142 = vector.extract_strided_slice %140 {offsets = [0, 32], sizes = [8, 8], strides = [1, 1]} : vector<8x96xf32> to vector<8x8xf32>
    %cst_34 = arith.constant dense<0.000000e+00> : vector<8x8xf32>
    %143 = tpu.matmul %141, %142, %cst_34 {dimension_numbers = #tpu.dot_dimension_numbers<[1], [1], [0], [0], [0, 0, 1, 0], [], []>} : vector<8x8xf32>, vector<8x8xf32>, vector<8x8xf32> -> vector<8x8xf32>
    %144 = vector.extract_strided_slice %140 {offsets = [0, 8], sizes = [8, 8], strides = [1, 1]} : vector<8x96xf32> to vector<8x8xf32>
    %145 = vector.extract_strided_slice %140 {offsets = [0, 40], sizes = [8, 8], strides = [1, 1]} : vector<8x96xf32> to vector<8x8xf32>
    %cst_35 = arith.constant dense<0.000000e+00> : vector<8x8xf32>
    %146 = tpu.matmul %144, %145, %cst_35 {dimension_numbers = #tpu.dot_dimension_numbers<[1], [1], [0], [0], [0, 0, 1, 0], [], []>} : vector<8x8xf32>, vector<8x8xf32>, vector<8x8xf32> -> vector<8x8xf32>
    %147 = vector.extract_strided_slice %140 {offsets = [0, 16], sizes = [8, 8], strides = [1, 1]} : vector<8x96xf32> to vector<8x8xf32>
    %148 = vector.extract_strided_slice %140 {offsets = [0, 48], sizes = [8, 8], strides = [1, 1]} : vector<8x96xf32> to vector<8x8xf32>
    %cst_36 = arith.constant dense<0.000000e+00> : vector<8x8xf32>
    %149 = tpu.matmul %147, %148, %cst_36 {dimension_numbers = #tpu.dot_dimension_numbers<[1], [1], [0], [0], [0, 0, 1, 0], [], []>} : vector<8x8xf32>, vector<8x8xf32>, vector<8x8xf32> -> vector<8x8xf32>
    %150 = vector.extract_strided_slice %140 {offsets = [0, 24], sizes = [8, 8], strides = [1, 1]} : vector<8x96xf32> to vector<8x8xf32>
    %151 = vector.extract_strided_slice %140 {offsets = [0, 56], sizes = [8, 8], strides = [1, 1]} : vector<8x96xf32> to vector<8x8xf32>
    %cst_37 = arith.constant dense<0.000000e+00> : vector<8x8xf32>
    %152 = tpu.matmul %150, %151, %cst_37 {dimension_numbers = #tpu.dot_dimension_numbers<[1], [1], [0], [0], [0, 0, 1, 0], [], []>} : vector<8x8xf32>, vector<8x8xf32>, vector<8x8xf32> -> vector<8x8xf32>
    %153 = tpu.concatenate %143, %146, %149, %152 in 0 : vector<8x8xf32>, vector<8x8xf32>, vector<8x8xf32>, vector<8x8xf32> -> vector<32x8xf32>
    %154 = vector.broadcast %2 : vector<1x8xf32> to vector<32x8xf32>
    %155 = arith.addf %153, %154 : vector<32x8xf32>
    %cst_38 = arith.constant dense<0xFF800000> : vector<32xf32>
    %156 = vector.multi_reduction <maximumf>, %155, %cst_38 [1] : vector<32x8xf32> to vector<32xf32>
    %157 = vector.shape_cast %156 : vector<32xf32> to vector<32x1xf32>
    %158 = vector.broadcast %157 : vector<32x1xf32> to vector<32x8xf32>
    %159 = arith.subf %155, %158 : vector<32x8xf32>
    %160 = math.exp %159 : vector<32x8xf32>
    %cst_39 = arith.constant dense<0.000000e+00> : vector<32xf32>
    %161 = vector.multi_reduction <add>, %160, %cst_39 [1] : vector<32x8xf32> to vector<32xf32>
    %162 = vector.shape_cast %161 : vector<32xf32> to vector<32x1xf32>
    %163 = tpu.reciprocal %162 {approx = true} : vector<32x1xf32> -> vector<32x1xf32>
    %164 = vector.broadcast %163 : vector<32x1xf32> to vector<32x8xf32>
    %165 = arith.mulf %160, %164 : vector<32x8xf32>
    %166 = vector.extract_strided_slice %165 {offsets = [0, 0], sizes = [8, 8], strides = [1, 1]} : vector<32x8xf32> to vector<8x8xf32>
    %167 = vector.extract_strided_slice %140 {offsets = [0, 64], sizes = [8, 8], strides = [1, 1]} : vector<8x96xf32> to vector<8x8xf32>
    %cst_40 = arith.constant dense<0.000000e+00> : vector<8x8xf32>
    %168 = tpu.matmul %166, %167, %cst_40 {dimension_numbers = #tpu.dot_dimension_numbers<[1], [0], [0], [1], [0, 0, 1, 1], [], []>} : vector<8x8xf32>, vector<8x8xf32>, vector<8x8xf32> -> vector<8x8xf32>
    %c0_41 = arith.constant 0 : index
    %c0_42 = arith.constant 0 : index
    %c0_43 = arith.constant 0 : index
    %169 = vector.load %arg13[%c0_41, %c0_42, %c0_43] : memref<2x32x32xf32, #tpu.memory_space<vmem>>, vector<1x8x32xf32>
    %170 = vector.shape_cast %169 : vector<1x8x32xf32> to vector<8x32xf32>
    %cst_44 = arith.constant dense<0.000000e+00> : vector<8x32xf32>
    %171 = tpu.matmul %168, %170, %cst_44 {dimension_numbers = #tpu.dot_dimension_numbers<[1], [0], [0], [1], [0, 0, 1, 1], [], []>} : vector<8x8xf32>, vector<8x32xf32>, vector<8x32xf32> -> vector<8x32xf32>
    %172 = vector.extract_strided_slice %165 {offsets = [8, 0], sizes = [8, 8], strides = [1, 1]} : vector<32x8xf32> to vector<8x8xf32>
    %173 = vector.extract_strided_slice %140 {offsets = [0, 72], sizes = [8, 8], strides = [1, 1]} : vector<8x96xf32> to vector<8x8xf32>
    %cst_45 = arith.constant dense<0.000000e+00> : vector<8x8xf32>
    %174 = tpu.matmul %172, %173, %cst_45 {dimension_numbers = #tpu.dot_dimension_numbers<[1], [0], [0], [1], [0, 0, 1, 1], [], []>} : vector<8x8xf32>, vector<8x8xf32>, vector<8x8xf32> -> vector<8x8xf32>
    %c0_46 = arith.constant 0 : index
    %c8 = arith.constant 8 : index
    %c0_47 = arith.constant 0 : index
    %175 = vector.load %arg13[%c0_46, %c8, %c0_47] : memref<2x32x32xf32, #tpu.memory_space<vmem>>, vector<1x8x32xf32>
    %176 = vector.shape_cast %175 : vector<1x8x32xf32> to vector<8x32xf32>
    %cst_48 = arith.constant dense<0.000000e+00> : vector<8x32xf32>
    %177 = tpu.matmul %174, %176, %cst_48 {dimension_numbers = #tpu.dot_dimension_numbers<[1], [0], [0], [1], [0, 0, 1, 1], [], []>} : vector<8x8xf32>, vector<8x32xf32>, vector<8x32xf32> -> vector<8x32xf32>
    %178 = arith.addf %171, %177 : vector<8x32xf32>
    %179 = vector.extract_strided_slice %165 {offsets = [16, 0], sizes = [8, 8], strides = [1, 1]} : vector<32x8xf32> to vector<8x8xf32>
    %180 = vector.extract_strided_slice %140 {offsets = [0, 80], sizes = [8, 8], strides = [1, 1]} : vector<8x96xf32> to vector<8x8xf32>
    %cst_49 = arith.constant dense<0.000000e+00> : vector<8x8xf32>
    %181 = tpu.matmul %179, %180, %cst_49 {dimension_numbers = #tpu.dot_dimension_numbers<[1], [0], [0], [1], [0, 0, 1, 1], [], []>} : vector<8x8xf32>, vector<8x8xf32>, vector<8x8xf32> -> vector<8x8xf32>
    %c0_50 = arith.constant 0 : index
    %c16 = arith.constant 16 : index
    %c0_51 = arith.constant 0 : index
    %182 = vector.load %arg13[%c0_50, %c16, %c0_51] : memref<2x32x32xf32, #tpu.memory_space<vmem>>, vector<1x8x32xf32>
    %183 = vector.shape_cast %182 : vector<1x8x32xf32> to vector<8x32xf32>
    %cst_52 = arith.constant dense<0.000000e+00> : vector<8x32xf32>
    %184 = tpu.matmul %181, %183, %cst_52 {dimension_numbers = #tpu.dot_dimension_numbers<[1], [0], [0], [1], [0, 0, 1, 1], [], []>} : vector<8x8xf32>, vector<8x32xf32>, vector<8x32xf32> -> vector<8x32xf32>
    %185 = arith.addf %178, %184 : vector<8x32xf32>
    %186 = vector.extract_strided_slice %165 {offsets = [24, 0], sizes = [8, 8], strides = [1, 1]} : vector<32x8xf32> to vector<8x8xf32>
    %187 = vector.extract_strided_slice %140 {offsets = [0, 88], sizes = [8, 8], strides = [1, 1]} : vector<8x96xf32> to vector<8x8xf32>
    %cst_53 = arith.constant dense<0.000000e+00> : vector<8x8xf32>
    %188 = tpu.matmul %186, %187, %cst_53 {dimension_numbers = #tpu.dot_dimension_numbers<[1], [0], [0], [1], [0, 0, 1, 1], [], []>} : vector<8x8xf32>, vector<8x8xf32>, vector<8x8xf32> -> vector<8x8xf32>
    %c0_54 = arith.constant 0 : index
    %c24 = arith.constant 24 : index
    %c0_55 = arith.constant 0 : index
    %189 = vector.load %arg13[%c0_54, %c24, %c0_55] : memref<2x32x32xf32, #tpu.memory_space<vmem>>, vector<1x8x32xf32>
    %190 = vector.shape_cast %189 : vector<1x8x32xf32> to vector<8x32xf32>
    %cst_56 = arith.constant dense<0.000000e+00> : vector<8x32xf32>
    %191 = tpu.matmul %188, %190, %cst_56 {dimension_numbers = #tpu.dot_dimension_numbers<[1], [0], [0], [1], [0, 0, 1, 1], [], []>} : vector<8x8xf32>, vector<8x32xf32>, vector<8x32xf32> -> vector<8x32xf32>
    %192 = arith.addf %185, %191 : vector<8x32xf32>
    %c0_57 = arith.constant 0 : index
    %c0_58 = arith.constant 0 : index
    %c0_59 = arith.constant 0 : index
    %193 = vector.load %arg14[%c0_57, %c0_58, %c0_59] : memref<2x1x32xf32, #tpu.memory_space<vmem>>, vector<1x1x32xf32>
    %194 = vector.shape_cast %193 : vector<1x1x32xf32> to vector<1x32xf32>
    %195 = vector.broadcast %194 : vector<1x32xf32> to vector<8x32xf32>
    %196 = arith.addf %192, %195 : vector<8x32xf32>
    %197 = arith.addf %196, %133 : vector<8x32xf32>
    %c0_60 = arith.constant 0 : index
    %c0_61 = arith.constant 0 : index
    %c0_62 = arith.constant 0 : index
    %198 = vector.load %arg15[%c0_60, %c0_61, %c0_62] : memref<2x1x32xf32, #tpu.memory_space<vmem>>, vector<1x1x32xf32>
    %199 = vector.shape_cast %198 : vector<1x1x32xf32> to vector<1x32xf32>
    %c0_63 = arith.constant 0 : index
    %c0_64 = arith.constant 0 : index
    %c0_65 = arith.constant 0 : index
    %200 = vector.load %arg16[%c0_63, %c0_64, %c0_65] : memref<2x1x32xf32, #tpu.memory_space<vmem>>, vector<1x1x32xf32>
    %201 = vector.shape_cast %200 : vector<1x1x32xf32> to vector<1x32xf32>
    %cst_66 = arith.constant dense<0.000000e+00> : vector<8xf32>
    %202 = vector.multi_reduction <add>, %197, %cst_66 [1] : vector<8x32xf32> to vector<8xf32>
    %203 = vector.shape_cast %202 : vector<8xf32> to vector<8x1xf32>
    %cst_67 = arith.constant 3.200000e+01 : f32
    %204 = vector.broadcast %cst_67 : f32 to vector<8x1xf32>
    %205 = arith.divf %203, %204 : vector<8x1xf32>
    %206 = vector.broadcast %205 : vector<8x1xf32> to vector<8x32xf32>
    %207 = arith.subf %197, %206 : vector<8x32xf32>
    %208 = arith.mulf %207, %207 : vector<8x32xf32>
    %cst_68 = arith.constant dense<0.000000e+00> : vector<8xf32>
    %209 = vector.multi_reduction <add>, %208, %cst_68 [1] : vector<8x32xf32> to vector<8xf32>
    %210 = vector.shape_cast %209 : vector<8xf32> to vector<8x1xf32>
    %cst_69 = arith.constant 3.200000e+01 : f32
    %211 = vector.broadcast %cst_69 : f32 to vector<8x1xf32>
    %212 = arith.divf %210, %211 : vector<8x1xf32>
    %213 = vector.broadcast %205 : vector<8x1xf32> to vector<8x32xf32>
    %214 = arith.subf %197, %213 : vector<8x32xf32>
    %cst_70 = arith.constant 9.99999996E-13 : f32
    %215 = vector.broadcast %cst_70 : f32 to vector<8x1xf32>
    %216 = arith.addf %212, %215 : vector<8x1xf32>
    %217 = math.rsqrt %216 : vector<8x1xf32>
    %218 = vector.broadcast %217 : vector<8x1xf32> to vector<8x32xf32>
    %219 = arith.mulf %214, %218 : vector<8x32xf32>
    %220 = vector.broadcast %199 : vector<1x32xf32> to vector<8x32xf32>
    %221 = arith.mulf %219, %220 : vector<8x32xf32>
    %222 = vector.broadcast %201 : vector<1x32xf32> to vector<8x32xf32>
    %223 = arith.addf %221, %222 : vector<8x32xf32>
    %c0_71 = arith.constant 0 : index
    %c0_72 = arith.constant 0 : index
    %c0_73 = arith.constant 0 : index
    %224 = vector.load %arg17[%c0_71, %c0_72, %c0_73] : memref<2x32x64xf32, #tpu.memory_space<vmem>>, vector<1x32x64xf32>
    %225 = vector.shape_cast %224 : vector<1x32x64xf32> to vector<32x64xf32>
    %cst_74 = arith.constant dense<0.000000e+00> : vector<8x64xf32>
    %226 = tpu.matmul %223, %225, %cst_74 {dimension_numbers = #tpu.dot_dimension_numbers<[1], [0], [0], [1], [0, 0, 1, 1], [], []>} : vector<8x32xf32>, vector<32x64xf32>, vector<8x64xf32> -> vector<8x64xf32>
    %c0_75 = arith.constant 0 : index
    %c0_76 = arith.constant 0 : index
    %c0_77 = arith.constant 0 : index
    %227 = vector.load %arg18[%c0_75, %c0_76, %c0_77] : memref<2x1x64xf32, #tpu.memory_space<vmem>>, vector<1x1x64xf32>
    %228 = vector.shape_cast %227 : vector<1x1x64xf32> to vector<1x64xf32>
    %229 = vector.broadcast %228 : vector<1x64xf32> to vector<8x64xf32>
    %230 = arith.addf %226, %229 : vector<8x64xf32>
    %cst_78 = arith.constant 5.000000e-01 : f32
    %231 = vector.broadcast %cst_78 : f32 to vector<8x64xf32>
    %232 = arith.mulf %231, %230 : vector<8x64xf32>
    %cst_79 = arith.constant 4.471500e-02 : f32
    %233 = vector.broadcast %cst_79 : f32 to vector<8x64xf32>
    %234 = arith.mulf %233, %230 : vector<8x64xf32>
    %235 = arith.mulf %234, %230 : vector<8x64xf32>
    %236 = arith.mulf %235, %230 : vector<8x64xf32>
    %237 = arith.addf %230, %236 : vector<8x64xf32>
    %cst_80 = arith.constant 0.797884583 : f32
    %238 = vector.broadcast %cst_80 : f32 to vector<8x64xf32>
    %239 = arith.mulf %238, %237 : vector<8x64xf32>
    %240 = math.tanh %239 : vector<8x64xf32>
    %cst_81 = arith.constant 1.000000e+00 : f32
    %241 = vector.broadcast %cst_81 : f32 to vector<8x64xf32>
    %242 = arith.addf %241, %240 : vector<8x64xf32>
    %243 = arith.mulf %232, %242 : vector<8x64xf32>
    %c0_82 = arith.constant 0 : index
    %c0_83 = arith.constant 0 : index
    %c0_84 = arith.constant 0 : index
    %244 = vector.load %arg19[%c0_82, %c0_83, %c0_84] : memref<2x64x32xf32, #tpu.memory_space<vmem>>, vector<1x64x32xf32>
    %245 = vector.shape_cast %244 : vector<1x64x32xf32> to vector<64x32xf32>
    %cst_85 = arith.constant dense<0.000000e+00> : vector<8x32xf32>
    %246 = tpu.matmul %243, %245, %cst_85 {dimension_numbers = #tpu.dot_dimension_numbers<[1], [0], [0], [1], [0, 0, 1, 1], [], []>} : vector<8x64xf32>, vector<64x32xf32>, vector<8x32xf32> -> vector<8x32xf32>
    %c0_86 = arith.constant 0 : index
    %c0_87 = arith.constant 0 : index
    %c0_88 = arith.constant 0 : index
    %247 = vector.load %arg20[%c0_86, %c0_87, %c0_88] : memref<2x1x32xf32, #tpu.memory_space<vmem>>, vector<1x1x32xf32>
    %248 = vector.shape_cast %247 : vector<1x1x32xf32> to vector<1x32xf32>
    %249 = vector.broadcast %248 : vector<1x32xf32> to vector<8x32xf32>
    %250 = arith.addf %246, %249 : vector<8x32xf32>
    %251 = arith.addf %250, %223 : vector<8x32xf32>
    %c0_89 = arith.constant 0 : index
    %c0_90 = arith.constant 0 : index
    %c0_91 = arith.constant 0 : index
    %252 = vector.load %arg21[%c0_89, %c0_90, %c0_91] : memref<2x1x32xf32, #tpu.memory_space<vmem>>, vector<1x1x32xf32>
    %253 = vector.shape_cast %252 : vector<1x1x32xf32> to vector<1x32xf32>
    %c0_92 = arith.constant 0 : index
    %c0_93 = arith.constant 0 : index
    %c0_94 = arith.constant 0 : index
    %254 = vector.load %arg22[%c0_92, %c0_93, %c0_94] : memref<2x1x32xf32, #tpu.memory_space<vmem>>, vector<1x1x32xf32>
    %255 = vector.shape_cast %254 : vector<1x1x32xf32> to vector<1x32xf32>
    %cst_95 = arith.constant dense<0.000000e+00> : vector<8xf32>
    %256 = vector.multi_reduction <add>, %251, %cst_95 [1] : vector<8x32xf32> to vector<8xf32>
    %257 = vector.shape_cast %256 : vector<8xf32> to vector<8x1xf32>
    %cst_96 = arith.constant 3.200000e+01 : f32
    %258 = vector.broadcast %cst_96 : f32 to vector<8x1xf32>
    %259 = arith.divf %257, %258 : vector<8x1xf32>
    %260 = vector.broadcast %259 : vector<8x1xf32> to vector<8x32xf32>
    %261 = arith.subf %251, %260 : vector<8x32xf32>
    %262 = arith.mulf %261, %261 : vector<8x32xf32>
    %cst_97 = arith.constant dense<0.000000e+00> : vector<8xf32>
    %263 = vector.multi_reduction <add>, %262, %cst_97 [1] : vector<8x32xf32> to vector<8xf32>
    %264 = vector.shape_cast %263 : vector<8xf32> to vector<8x1xf32>
    %cst_98 = arith.constant 3.200000e+01 : f32
    %265 = vector.broadcast %cst_98 : f32 to vector<8x1xf32>
    %266 = arith.divf %264, %265 : vector<8x1xf32>
    %267 = vector.broadcast %259 : vector<8x1xf32> to vector<8x32xf32>
    %268 = arith.subf %251, %267 : vector<8x32xf32>
    %cst_99 = arith.constant 9.99999996E-13 : f32
    %269 = vector.broadcast %cst_99 : f32 to vector<8x1xf32>
    %270 = arith.addf %266, %269 : vector<8x1xf32>
    %271 = math.rsqrt %270 : vector<8x1xf32>
    %272 = vector.broadcast %271 : vector<8x1xf32> to vector<8x32xf32>
    %273 = arith.mulf %268, %272 : vector<8x32xf32>
    %274 = vector.broadcast %253 : vector<1x32xf32> to vector<8x32xf32>
    %275 = arith.mulf %273, %274 : vector<8x32xf32>
    %276 = vector.broadcast %255 : vector<1x32xf32> to vector<8x32xf32>
    %277 = arith.addf %275, %276 : vector<8x32xf32>
    %c1_100 = arith.constant 1 : index
    %c0_101 = arith.constant 0 : index
    %c0_102 = arith.constant 0 : index
    %278 = vector.load %arg11[%c1_100, %c0_101, %c0_102] : memref<2x32x96xf32, #tpu.memory_space<vmem>>, vector<1x32x96xf32>
    %279 = vector.shape_cast %278 : vector<1x32x96xf32> to vector<32x96xf32>
    %cst_103 = arith.constant dense<0.000000e+00> : vector<8x96xf32>
    %280 = tpu.matmul %277, %279, %cst_103 {dimension_numbers = #tpu.dot_dimension_numbers<[1], [0], [0], [1], [0, 0, 1, 1], [], []>} : vector<8x32xf32>, vector<32x96xf32>, vector<8x96xf32> -> vector<8x96xf32>
    %c1_104 = arith.constant 1 : index
    %c0_105 = arith.constant 0 : index
    %c0_106 = arith.constant 0 : index
    %281 = vector.load %arg12[%c1_104, %c0_105, %c0_106] : memref<2x1x96xf32, #tpu.memory_space<vmem>>, vector<1x1x96xf32>
    %282 = vector.shape_cast %281 : vector<1x1x96xf32> to vector<1x96xf32>
    %283 = vector.broadcast %282 : vector<1x96xf32> to vector<8x96xf32>
    %284 = arith.addf %280, %283 : vector<8x96xf32>
    %285 = vector.extract_strided_slice %284 {offsets = [0, 0], sizes = [8, 8], strides = [1, 1]} : vector<8x96xf32> to vector<8x8xf32>
    %286 = vector.extract_strided_slice %284 {offsets = [0, 32], sizes = [8, 8], strides = [1, 1]} : vector<8x96xf32> to vector<8x8xf32>
    %cst_107 = arith.constant dense<0.000000e+00> : vector<8x8xf32>
    %287 = tpu.matmul %285, %286, %cst_107 {dimension_numbers = #tpu.dot_dimension_numbers<[1], [1], [0], [0], [0, 0, 1, 0], [], []>} : vector<8x8xf32>, vector<8x8xf32>, vector<8x8xf32> -> vector<8x8xf32>
    %288 = vector.extract_strided_slice %284 {offsets = [0, 8], sizes = [8, 8], strides = [1, 1]} : vector<8x96xf32> to vector<8x8xf32>
    %289 = vector.extract_strided_slice %284 {offsets = [0, 40], sizes = [8, 8], strides = [1, 1]} : vector<8x96xf32> to vector<8x8xf32>
    %cst_108 = arith.constant dense<0.000000e+00> : vector<8x8xf32>
    %290 = tpu.matmul %288, %289, %cst_108 {dimension_numbers = #tpu.dot_dimension_numbers<[1], [1], [0], [0], [0, 0, 1, 0], [], []>} : vector<8x8xf32>, vector<8x8xf32>, vector<8x8xf32> -> vector<8x8xf32>
    %291 = vector.extract_strided_slice %284 {offsets = [0, 16], sizes = [8, 8], strides = [1, 1]} : vector<8x96xf32> to vector<8x8xf32>
    %292 = vector.extract_strided_slice %284 {offsets = [0, 48], sizes = [8, 8], strides = [1, 1]} : vector<8x96xf32> to vector<8x8xf32>
    %cst_109 = arith.constant dense<0.000000e+00> : vector<8x8xf32>
    %293 = tpu.matmul %291, %292, %cst_109 {dimension_numbers = #tpu.dot_dimension_numbers<[1], [1], [0], [0], [0, 0, 1, 0], [], []>} : vector<8x8xf32>, vector<8x8xf32>, vector<8x8xf32> -> vector<8x8xf32>
    %294 = vector.extract_strided_slice %284 {offsets = [0, 24], sizes = [8, 8], strides = [1, 1]} : vector<8x96xf32> to vector<8x8xf32>
    %295 = vector.extract_strided_slice %284 {offsets = [0, 56], sizes = [8, 8], strides = [1, 1]} : vector<8x96xf32> to vector<8x8xf32>
    %cst_110 = arith.constant dense<0.000000e+00> : vector<8x8xf32>
    %296 = tpu.matmul %294, %295, %cst_110 {dimension_numbers = #tpu.dot_dimension_numbers<[1], [1], [0], [0], [0, 0, 1, 0], [], []>} : vector<8x8xf32>, vector<8x8xf32>, vector<8x8xf32> -> vector<8x8xf32>
    %297 = tpu.concatenate %287, %290, %293, %296 in 0 : vector<8x8xf32>, vector<8x8xf32>, vector<8x8xf32>, vector<8x8xf32> -> vector<32x8xf32>
    %298 = vector.broadcast %2 : vector<1x8xf32> to vector<32x8xf32>
    %299 = arith.addf %297, %298 : vector<32x8xf32>
    %cst_111 = arith.constant dense<0xFF800000> : vector<32xf32>
    %300 = vector.multi_reduction <maximumf>, %299, %cst_111 [1] : vector<32x8xf32> to vector<32xf32>
    %301 = vector.shape_cast %300 : vector<32xf32> to vector<32x1xf32>
    %302 = vector.broadcast %301 : vector<32x1xf32> to vector<32x8xf32>
    %303 = arith.subf %299, %302 : vector<32x8xf32>
    %304 = math.exp %303 : vector<32x8xf32>
    %cst_112 = arith.constant dense<0.000000e+00> : vector<32xf32>
    %305 = vector.multi_reduction <add>, %304, %cst_112 [1] : vector<32x8xf32> to vector<32xf32>
    %306 = vector.shape_cast %305 : vector<32xf32> to vector<32x1xf32>
    %307 = tpu.reciprocal %306 {approx = true} : vector<32x1xf32> -> vector<32x1xf32>
    %308 = vector.broadcast %307 : vector<32x1xf32> to vector<32x8xf32>
    %309 = arith.mulf %304, %308 : vector<32x8xf32>
    %310 = vector.extract_strided_slice %309 {offsets = [0, 0], sizes = [8, 8], strides = [1, 1]} : vector<32x8xf32> to vector<8x8xf32>
    %311 = vector.extract_strided_slice %284 {offsets = [0, 64], sizes = [8, 8], strides = [1, 1]} : vector<8x96xf32> to vector<8x8xf32>
    %cst_113 = arith.constant dense<0.000000e+00> : vector<8x8xf32>
    %312 = tpu.matmul %310, %311, %cst_113 {dimension_numbers = #tpu.dot_dimension_numbers<[1], [0], [0], [1], [0, 0, 1, 1], [], []>} : vector<8x8xf32>, vector<8x8xf32>, vector<8x8xf32> -> vector<8x8xf32>
    %c1_114 = arith.constant 1 : index
    %c0_115 = arith.constant 0 : index
    %c0_116 = arith.constant 0 : index
    %313 = vector.load %arg13[%c1_114, %c0_115, %c0_116] : memref<2x32x32xf32, #tpu.memory_space<vmem>>, vector<1x8x32xf32>
    %314 = vector.shape_cast %313 : vector<1x8x32xf32> to vector<8x32xf32>
    %cst_117 = arith.constant dense<0.000000e+00> : vector<8x32xf32>
    %315 = tpu.matmul %312, %314, %cst_117 {dimension_numbers = #tpu.dot_dimension_numbers<[1], [0], [0], [1], [0, 0, 1, 1], [], []>} : vector<8x8xf32>, vector<8x32xf32>, vector<8x32xf32> -> vector<8x32xf32>
    %316 = vector.extract_strided_slice %309 {offsets = [8, 0], sizes = [8, 8], strides = [1, 1]} : vector<32x8xf32> to vector<8x8xf32>
    %317 = vector.extract_strided_slice %284 {offsets = [0, 72], sizes = [8, 8], strides = [1, 1]} : vector<8x96xf32> to vector<8x8xf32>
    %cst_118 = arith.constant dense<0.000000e+00> : vector<8x8xf32>
    %318 = tpu.matmul %316, %317, %cst_118 {dimension_numbers = #tpu.dot_dimension_numbers<[1], [0], [0], [1], [0, 0, 1, 1], [], []>} : vector<8x8xf32>, vector<8x8xf32>, vector<8x8xf32> -> vector<8x8xf32>
    %c1_119 = arith.constant 1 : index
    %c8_120 = arith.constant 8 : index
    %c0_121 = arith.constant 0 : index
    %319 = vector.load %arg13[%c1_119, %c8_120, %c0_121] : memref<2x32x32xf32, #tpu.memory_space<vmem>>, vector<1x8x32xf32>
    %320 = vector.shape_cast %319 : vector<1x8x32xf32> to vector<8x32xf32>
    %cst_122 = arith.constant dense<0.000000e+00> : vector<8x32xf32>
    %321 = tpu.matmul %318, %320, %cst_122 {dimension_numbers = #tpu.dot_dimension_numbers<[1], [0], [0], [1], [0, 0, 1, 1], [], []>} : vector<8x8xf32>, vector<8x32xf32>, vector<8x32xf32> -> vector<8x32xf32>
    %322 = arith.addf %315, %321 : vector<8x32xf32>
    %323 = vector.extract_strided_slice %309 {offsets = [16, 0], sizes = [8, 8], strides = [1, 1]} : vector<32x8xf32> to vector<8x8xf32>
    %324 = vector.extract_strided_slice %284 {offsets = [0, 80], sizes = [8, 8], strides = [1, 1]} : vector<8x96xf32> to vector<8x8xf32>
    %cst_123 = arith.constant dense<0.000000e+00> : vector<8x8xf32>
    %325 = tpu.matmul %323, %324, %cst_123 {dimension_numbers = #tpu.dot_dimension_numbers<[1], [0], [0], [1], [0, 0, 1, 1], [], []>} : vector<8x8xf32>, vector<8x8xf32>, vector<8x8xf32> -> vector<8x8xf32>
    %c1_124 = arith.constant 1 : index
    %c16_125 = arith.constant 16 : index
    %c0_126 = arith.constant 0 : index
    %326 = vector.load %arg13[%c1_124, %c16_125, %c0_126] : memref<2x32x32xf32, #tpu.memory_space<vmem>>, vector<1x8x32xf32>
    %327 = vector.shape_cast %326 : vector<1x8x32xf32> to vector<8x32xf32>
    %cst_127 = arith.constant dense<0.000000e+00> : vector<8x32xf32>
    %328 = tpu.matmul %325, %327, %cst_127 {dimension_numbers = #tpu.dot_dimension_numbers<[1], [0], [0], [1], [0, 0, 1, 1], [], []>} : vector<8x8xf32>, vector<8x32xf32>, vector<8x32xf32> -> vector<8x32xf32>
    %329 = arith.addf %322, %328 : vector<8x32xf32>
    %330 = vector.extract_strided_slice %309 {offsets = [24, 0], sizes = [8, 8], strides = [1, 1]} : vector<32x8xf32> to vector<8x8xf32>
    %331 = vector.extract_strided_slice %284 {offsets = [0, 88], sizes = [8, 8], strides = [1, 1]} : vector<8x96xf32> to vector<8x8xf32>
    %cst_128 = arith.constant dense<0.000000e+00> : vector<8x8xf32>
    %332 = tpu.matmul %330, %331, %cst_128 {dimension_numbers = #tpu.dot_dimension_numbers<[1], [0], [0], [1], [0, 0, 1, 1], [], []>} : vector<8x8xf32>, vector<8x8xf32>, vector<8x8xf32> -> vector<8x8xf32>
    %c1_129 = arith.constant 1 : index
    %c24_130 = arith.constant 24 : index
    %c0_131 = arith.constant 0 : index
    %333 = vector.load %arg13[%c1_129, %c24_130, %c0_131] : memref<2x32x32xf32, #tpu.memory_space<vmem>>, vector<1x8x32xf32>
    %334 = vector.shape_cast %333 : vector<1x8x32xf32> to vector<8x32xf32>
    %cst_132 = arith.constant dense<0.000000e+00> : vector<8x32xf32>
    %335 = tpu.matmul %332, %334, %cst_132 {dimension_numbers = #tpu.dot_dimension_numbers<[1], [0], [0], [1], [0, 0, 1, 1], [], []>} : vector<8x8xf32>, vector<8x32xf32>, vector<8x32xf32> -> vector<8x32xf32>
    %336 = arith.addf %329, %335 : vector<8x32xf32>
    %c1_133 = arith.constant 1 : index
    %c0_134 = arith.constant 0 : index
    %c0_135 = arith.constant 0 : index
    %337 = vector.load %arg14[%c1_133, %c0_134, %c0_135] : memref<2x1x32xf32, #tpu.memory_space<vmem>>, vector<1x1x32xf32>
    %338 = vector.shape_cast %337 : vector<1x1x32xf32> to vector<1x32xf32>
    %339 = vector.broadcast %338 : vector<1x32xf32> to vector<8x32xf32>
    %340 = arith.addf %336, %339 : vector<8x32xf32>
    %341 = arith.addf %340, %277 : vector<8x32xf32>
    %c1_136 = arith.constant 1 : index
    %c0_137 = arith.constant 0 : index
    %c0_138 = arith.constant 0 : index
    %342 = vector.load %arg15[%c1_136, %c0_137, %c0_138] : memref<2x1x32xf32, #tpu.memory_space<vmem>>, vector<1x1x32xf32>
    %343 = vector.shape_cast %342 : vector<1x1x32xf32> to vector<1x32xf32>
    %c1_139 = arith.constant 1 : index
    %c0_140 = arith.constant 0 : index
    %c0_141 = arith.constant 0 : index
    %344 = vector.load %arg16[%c1_139, %c0_140, %c0_141] : memref<2x1x32xf32, #tpu.memory_space<vmem>>, vector<1x1x32xf32>
    %345 = vector.shape_cast %344 : vector<1x1x32xf32> to vector<1x32xf32>
    %cst_142 = arith.constant dense<0.000000e+00> : vector<8xf32>
    %346 = vector.multi_reduction <add>, %341, %cst_142 [1] : vector<8x32xf32> to vector<8xf32>
    %347 = vector.shape_cast %346 : vector<8xf32> to vector<8x1xf32>
    %cst_143 = arith.constant 3.200000e+01 : f32
    %348 = vector.broadcast %cst_143 : f32 to vector<8x1xf32>
    %349 = arith.divf %347, %348 : vector<8x1xf32>
    %350 = vector.broadcast %349 : vector<8x1xf32> to vector<8x32xf32>
    %351 = arith.subf %341, %350 : vector<8x32xf32>
    %352 = arith.mulf %351, %351 : vector<8x32xf32>
    %cst_144 = arith.constant dense<0.000000e+00> : vector<8xf32>
    %353 = vector.multi_reduction <add>, %352, %cst_144 [1] : vector<8x32xf32> to vector<8xf32>
    %354 = vector.shape_cast %353 : vector<8xf32> to vector<8x1xf32>
    %cst_145 = arith.constant 3.200000e+01 : f32
    %355 = vector.broadcast %cst_145 : f32 to vector<8x1xf32>
    %356 = arith.divf %354, %355 : vector<8x1xf32>
    %357 = vector.broadcast %349 : vector<8x1xf32> to vector<8x32xf32>
    %358 = arith.subf %341, %357 : vector<8x32xf32>
    %cst_146 = arith.constant 9.99999996E-13 : f32
    %359 = vector.broadcast %cst_146 : f32 to vector<8x1xf32>
    %360 = arith.addf %356, %359 : vector<8x1xf32>
    %361 = math.rsqrt %360 : vector<8x1xf32>
    %362 = vector.broadcast %361 : vector<8x1xf32> to vector<8x32xf32>
    %363 = arith.mulf %358, %362 : vector<8x32xf32>
    %364 = vector.broadcast %343 : vector<1x32xf32> to vector<8x32xf32>
    %365 = arith.mulf %363, %364 : vector<8x32xf32>
    %366 = vector.broadcast %345 : vector<1x32xf32> to vector<8x32xf32>
    %367 = arith.addf %365, %366 : vector<8x32xf32>
    %c1_147 = arith.constant 1 : index
    %c0_148 = arith.constant 0 : index
    %c0_149 = arith.constant 0 : index
    %368 = vector.load %arg17[%c1_147, %c0_148, %c0_149] : memref<2x32x64xf32, #tpu.memory_space<vmem>>, vector<1x32x64xf32>
    %369 = vector.shape_cast %368 : vector<1x32x64xf32> to vector<32x64xf32>
    %cst_150 = arith.constant dense<0.000000e+00> : vector<8x64xf32>
    %370 = tpu.matmul %367, %369, %cst_150 {dimension_numbers = #tpu.dot_dimension_numbers<[1], [0], [0], [1], [0, 0, 1, 1], [], []>} : vector<8x32xf32>, vector<32x64xf32>, vector<8x64xf32> -> vector<8x64xf32>
    %c1_151 = arith.constant 1 : index
    %c0_152 = arith.constant 0 : index
    %c0_153 = arith.constant 0 : index
    %371 = vector.load %arg18[%c1_151, %c0_152, %c0_153] : memref<2x1x64xf32, #tpu.memory_space<vmem>>, vector<1x1x64xf32>
    %372 = vector.shape_cast %371 : vector<1x1x64xf32> to vector<1x64xf32>
    %373 = vector.broadcast %372 : vector<1x64xf32> to vector<8x64xf32>
    %374 = arith.addf %370, %373 : vector<8x64xf32>
    %cst_154 = arith.constant 5.000000e-01 : f32
    %375 = vector.broadcast %cst_154 : f32 to vector<8x64xf32>
    %376 = arith.mulf %375, %374 : vector<8x64xf32>
    %cst_155 = arith.constant 4.471500e-02 : f32
    %377 = vector.broadcast %cst_155 : f32 to vector<8x64xf32>
    %378 = arith.mulf %377, %374 : vector<8x64xf32>
    %379 = arith.mulf %378, %374 : vector<8x64xf32>
    %380 = arith.mulf %379, %374 : vector<8x64xf32>
    %381 = arith.addf %374, %380 : vector<8x64xf32>
    %cst_156 = arith.constant 0.797884583 : f32
    %382 = vector.broadcast %cst_156 : f32 to vector<8x64xf32>
    %383 = arith.mulf %382, %381 : vector<8x64xf32>
    %384 = math.tanh %383 : vector<8x64xf32>
    %cst_157 = arith.constant 1.000000e+00 : f32
    %385 = vector.broadcast %cst_157 : f32 to vector<8x64xf32>
    %386 = arith.addf %385, %384 : vector<8x64xf32>
    %387 = arith.mulf %376, %386 : vector<8x64xf32>
    %c1_158 = arith.constant 1 : index
    %c0_159 = arith.constant 0 : index
    %c0_160 = arith.constant 0 : index
    %388 = vector.load %arg19[%c1_158, %c0_159, %c0_160] : memref<2x64x32xf32, #tpu.memory_space<vmem>>, vector<1x64x32xf32>
    %389 = vector.shape_cast %388 : vector<1x64x32xf32> to vector<64x32xf32>
    %cst_161 = arith.constant dense<0.000000e+00> : vector<8x32xf32>
    %390 = tpu.matmul %387, %389, %cst_161 {dimension_numbers = #tpu.dot_dimension_numbers<[1], [0], [0], [1], [0, 0, 1, 1], [], []>} : vector<8x64xf32>, vector<64x32xf32>, vector<8x32xf32> -> vector<8x32xf32>
    %c1_162 = arith.constant 1 : index
    %c0_163 = arith.constant 0 : index
    %c0_164 = arith.constant 0 : index
    %391 = vector.load %arg20[%c1_162, %c0_163, %c0_164] : memref<2x1x32xf32, #tpu.memory_space<vmem>>, vector<1x1x32xf32>
    %392 = vector.shape_cast %391 : vector<1x1x32xf32> to vector<1x32xf32>
    %393 = vector.broadcast %392 : vector<1x32xf32> to vector<8x32xf32>
    %394 = arith.addf %390, %393 : vector<8x32xf32>
    %395 = arith.addf %394, %367 : vector<8x32xf32>
    %c1_165 = arith.constant 1 : index
    %c0_166 = arith.constant 0 : index
    %c0_167 = arith.constant 0 : index
    %396 = vector.load %arg21[%c1_165, %c0_166, %c0_167] : memref<2x1x32xf32, #tpu.memory_space<vmem>>, vector<1x1x32xf32>
    %397 = vector.shape_cast %396 : vector<1x1x32xf32> to vector<1x32xf32>
    %c1_168 = arith.constant 1 : index
    %c0_169 = arith.constant 0 : index
    %c0_170 = arith.constant 0 : index
    %398 = vector.load %arg22[%c1_168, %c0_169, %c0_170] : memref<2x1x32xf32, #tpu.memory_space<vmem>>, vector<1x1x32xf32>
    %399 = vector.shape_cast %398 : vector<1x1x32xf32> to vector<1x32xf32>
    %cst_171 = arith.constant dense<0.000000e+00> : vector<8xf32>
    %400 = vector.multi_reduction <add>, %395, %cst_171 [1] : vector<8x32xf32> to vector<8xf32>
    %401 = vector.shape_cast %400 : vector<8xf32> to vector<8x1xf32>
    %cst_172 = arith.constant 3.200000e+01 : f32
    %402 = vector.broadcast %cst_172 : f32 to vector<8x1xf32>
    %403 = arith.divf %401, %402 : vector<8x1xf32>
    %404 = vector.broadcast %403 : vector<8x1xf32> to vector<8x32xf32>
    %405 = arith.subf %395, %404 : vector<8x32xf32>
    %406 = arith.mulf %405, %405 : vector<8x32xf32>
    %cst_173 = arith.constant dense<0.000000e+00> : vector<8xf32>
    %407 = vector.multi_reduction <add>, %406, %cst_173 [1] : vector<8x32xf32> to vector<8xf32>
    %408 = vector.shape_cast %407 : vector<8xf32> to vector<8x1xf32>
    %cst_174 = arith.constant 3.200000e+01 : f32
    %409 = vector.broadcast %cst_174 : f32 to vector<8x1xf32>
    %410 = arith.divf %408, %409 : vector<8x1xf32>
    %411 = vector.broadcast %403 : vector<8x1xf32> to vector<8x32xf32>
    %412 = arith.subf %395, %411 : vector<8x32xf32>
    %cst_175 = arith.constant 9.99999996E-13 : f32
    %413 = vector.broadcast %cst_175 : f32 to vector<8x1xf32>
    %414 = arith.addf %410, %413 : vector<8x1xf32>
    %415 = math.rsqrt %414 : vector<8x1xf32>
    %416 = vector.broadcast %415 : vector<8x1xf32> to vector<8x32xf32>
    %417 = arith.mulf %412, %416 : vector<8x32xf32>
    %418 = vector.broadcast %397 : vector<1x32xf32> to vector<8x32xf32>
    %419 = arith.mulf %417, %418 : vector<8x32xf32>
    %420 = vector.broadcast %399 : vector<1x32xf32> to vector<8x32xf32>
    %421 = arith.addf %419, %420 : vector<8x32xf32>
    %c0_176 = arith.constant 0 : index
    %c0_177 = arith.constant 0 : index
    %c0_178 = arith.constant 0 : index
    %422 = vector.load %arg4[%c0_176, %c0_177, %c0_178] : memref<1x8x16xf32, #tpu.memory_space<vmem>>, vector<1x8x16xf32>
    %423 = vector.shape_cast %422 : vector<1x8x16xf32> to vector<8x16xf32>
    %c0_179 = arith.constant 0 : index
    %c0_180 = arith.constant 0 : index
    %424 = vector.load %arg23[%c0_179, %c0_180] : memref<16x32xf32, #tpu.memory_space<vmem>>, vector<16x32xf32>
    %cst_181 = arith.constant dense<0.000000e+00> : vector<8x32xf32>
    %425 = tpu.matmul %423, %424, %cst_181 {dimension_numbers = #tpu.dot_dimension_numbers<[1], [0], [0], [1], [0, 0, 1, 1], [], []>} : vector<8x16xf32>, vector<16x32xf32>, vector<8x32xf32> -> vector<8x32xf32>
    %c0_182 = arith.constant 0 : index
    %c0_183 = arith.constant 0 : index
    %426 = vector.load %arg24[%c0_182, %c0_183] : memref<1x32xf32, #tpu.memory_space<vmem>>, vector<1x32xf32>
    %427 = vector.broadcast %426 : vector<1x32xf32> to vector<8x32xf32>
    %428 = arith.addf %425, %427 : vector<8x32xf32>
    %c0_184 = arith.constant 0 : index
    %c0_185 = arith.constant 0 : index
    %429 = vector.load %arg25[%c0_184, %c0_185] : memref<2x32xf32, #tpu.memory_space<vmem>>, vector<1x32xf32>
    %430 = vector.broadcast %429 : vector<1x32xf32> to vector<8x32xf32>
    %431 = arith.addf %428, %430 : vector<8x32xf32>
    %c0_186 = arith.constant 0 : index
    %c0_187 = arith.constant 0 : index
    %432 = vector.load %arg26[%c0_186, %c0_187] : memref<64x32xf32, #tpu.memory_space<vmem>>, vector<1x32xf32>
    %433 = vector.broadcast %432 : vector<1x32xf32> to vector<8x32xf32>
    %434 = arith.addf %431, %433 : vector<8x32xf32>
    %c0_188 = arith.constant 0 : index
    %c0_189 = arith.constant 0 : index
    %435 = vector.load %arg27[%c0_188, %c0_189] : memref<1x32xf32, #tpu.memory_space<vmem>>, vector<1x32xf32>
    %c0_190 = arith.constant 0 : index
    %c0_191 = arith.constant 0 : index
    %436 = vector.load %arg28[%c0_190, %c0_191] : memref<1x32xf32, #tpu.memory_space<vmem>>, vector<1x32xf32>
    %cst_192 = arith.constant dense<0.000000e+00> : vector<8xf32>
    %437 = vector.multi_reduction <add>, %434, %cst_192 [1] : vector<8x32xf32> to vector<8xf32>
    %438 = vector.shape_cast %437 : vector<8xf32> to vector<8x1xf32>
    %cst_193 = arith.constant 3.200000e+01 : f32
    %439 = vector.broadcast %cst_193 : f32 to vector<8x1xf32>
    %440 = arith.divf %438, %439 : vector<8x1xf32>
    %441 = vector.broadcast %440 : vector<8x1xf32> to vector<8x32xf32>
    %442 = arith.subf %434, %441 : vector<8x32xf32>
    %443 = arith.mulf %442, %442 : vector<8x32xf32>
    %cst_194 = arith.constant dense<0.000000e+00> : vector<8xf32>
    %444 = vector.multi_reduction <add>, %443, %cst_194 [1] : vector<8x32xf32> to vector<8xf32>
    %445 = vector.shape_cast %444 : vector<8xf32> to vector<8x1xf32>
    %cst_195 = arith.constant 3.200000e+01 : f32
    %446 = vector.broadcast %cst_195 : f32 to vector<8x1xf32>
    %447 = arith.divf %445, %446 : vector<8x1xf32>
    %448 = vector.broadcast %440 : vector<8x1xf32> to vector<8x32xf32>
    %449 = arith.subf %434, %448 : vector<8x32xf32>
    %cst_196 = arith.constant 9.99999996E-13 : f32
    %450 = vector.broadcast %cst_196 : f32 to vector<8x1xf32>
    %451 = arith.addf %447, %450 : vector<8x1xf32>
    %452 = math.rsqrt %451 : vector<8x1xf32>
    %453 = vector.broadcast %452 : vector<8x1xf32> to vector<8x32xf32>
    %454 = arith.mulf %449, %453 : vector<8x32xf32>
    %455 = vector.broadcast %435 : vector<1x32xf32> to vector<8x32xf32>
    %456 = arith.mulf %454, %455 : vector<8x32xf32>
    %457 = vector.broadcast %436 : vector<1x32xf32> to vector<8x32xf32>
    %458 = arith.addf %456, %457 : vector<8x32xf32>
    %459 = tpu.concatenate %421, %458 in 0 : vector<8x32xf32>, vector<8x32xf32> -> vector<16x32xf32>
    %c0_197 = arith.constant 0 : index
    %c0_198 = arith.constant 0 : index
    %c0_199 = arith.constant 0 : index
    %460 = vector.load %arg29[%c0_197, %c0_198, %c0_199] : memref<2x32x96xf32, #tpu.memory_space<vmem>>, vector<1x32x96xf32>
    %461 = vector.shape_cast %460 : vector<1x32x96xf32> to vector<32x96xf32>
    %cst_200 = arith.constant dense<0.000000e+00> : vector<16x96xf32>
    %462 = tpu.matmul %459, %461, %cst_200 {dimension_numbers = #tpu.dot_dimension_numbers<[1], [0], [0], [1], [0, 0, 1, 1], [], []>} : vector<16x32xf32>, vector<32x96xf32>, vector<16x96xf32> -> vector<16x96xf32>
    %c0_201 = arith.constant 0 : index
    %c0_202 = arith.constant 0 : index
    %c0_203 = arith.constant 0 : index
    %463 = vector.load %arg30[%c0_201, %c0_202, %c0_203] : memref<2x1x96xf32, #tpu.memory_space<vmem>>, vector<1x1x96xf32>
    %464 = vector.shape_cast %463 : vector<1x1x96xf32> to vector<1x96xf32>
    %465 = vector.broadcast %464 : vector<1x96xf32> to vector<16x96xf32>
    %466 = arith.addf %462, %465 : vector<16x96xf32>
    %467 = vector.extract_strided_slice %466 {offsets = [0, 0], sizes = [16, 8], strides = [1, 1]} : vector<16x96xf32> to vector<16x8xf32>
    %468 = vector.extract_strided_slice %466 {offsets = [0, 32], sizes = [16, 8], strides = [1, 1]} : vector<16x96xf32> to vector<16x8xf32>
    %cst_204 = arith.constant dense<0.000000e+00> : vector<16x16xf32>
    %469 = tpu.matmul %467, %468, %cst_204 {dimension_numbers = #tpu.dot_dimension_numbers<[1], [1], [0], [0], [0, 0, 1, 0], [], []>} : vector<16x8xf32>, vector<16x8xf32>, vector<16x16xf32> -> vector<16x16xf32>
    %470 = vector.extract_strided_slice %466 {offsets = [0, 8], sizes = [16, 8], strides = [1, 1]} : vector<16x96xf32> to vector<16x8xf32>
    %471 = vector.extract_strided_slice %466 {offsets = [0, 40], sizes = [16, 8], strides = [1, 1]} : vector<16x96xf32> to vector<16x8xf32>
    %cst_205 = arith.constant dense<0.000000e+00> : vector<16x16xf32>
    %472 = tpu.matmul %470, %471, %cst_205 {dimension_numbers = #tpu.dot_dimension_numbers<[1], [1], [0], [0], [0, 0, 1, 0], [], []>} : vector<16x8xf32>, vector<16x8xf32>, vector<16x16xf32> -> vector<16x16xf32>
    %473 = vector.extract_strided_slice %466 {offsets = [0, 16], sizes = [16, 8], strides = [1, 1]} : vector<16x96xf32> to vector<16x8xf32>
    %474 = vector.extract_strided_slice %466 {offsets = [0, 48], sizes = [16, 8], strides = [1, 1]} : vector<16x96xf32> to vector<16x8xf32>
    %cst_206 = arith.constant dense<0.000000e+00> : vector<16x16xf32>
    %475 = tpu.matmul %473, %474, %cst_206 {dimension_numbers = #tpu.dot_dimension_numbers<[1], [1], [0], [0], [0, 0, 1, 0], [], []>} : vector<16x8xf32>, vector<16x8xf32>, vector<16x16xf32> -> vector<16x16xf32>
    %476 = vector.extract_strided_slice %466 {offsets = [0, 24], sizes = [16, 8], strides = [1, 1]} : vector<16x96xf32> to vector<16x8xf32>
    %477 = vector.extract_strided_slice %466 {offsets = [0, 56], sizes = [16, 8], strides = [1, 1]} : vector<16x96xf32> to vector<16x8xf32>
    %cst_207 = arith.constant dense<0.000000e+00> : vector<16x16xf32>
    %478 = tpu.matmul %476, %477, %cst_207 {dimension_numbers = #tpu.dot_dimension_numbers<[1], [1], [0], [0], [0, 0, 1, 0], [], []>} : vector<16x8xf32>, vector<16x8xf32>, vector<16x16xf32> -> vector<16x16xf32>
    %479 = tpu.concatenate %469, %472, %475, %478 in 0 : vector<16x16xf32>, vector<16x16xf32>, vector<16x16xf32>, vector<16x16xf32> -> vector<64x16xf32>
    %480 = vector.broadcast %1 : vector<1x16xf32> to vector<64x16xf32>
    %481 = arith.addf %479, %480 : vector<64x16xf32>
    %cst_208 = arith.constant dense<0xFF800000> : vector<64xf32>
    %482 = vector.multi_reduction <maximumf>, %481, %cst_208 [1] : vector<64x16xf32> to vector<64xf32>
    %483 = vector.shape_cast %482 : vector<64xf32> to vector<64x1xf32>
    %484 = vector.broadcast %483 : vector<64x1xf32> to vector<64x16xf32>
    %485 = arith.subf %481, %484 : vector<64x16xf32>
    %486 = math.exp %485 : vector<64x16xf32>
    %cst_209 = arith.constant dense<0.000000e+00> : vector<64xf32>
    %487 = vector.multi_reduction <add>, %486, %cst_209 [1] : vector<64x16xf32> to vector<64xf32>
    %488 = vector.shape_cast %487 : vector<64xf32> to vector<64x1xf32>
    %489 = tpu.reciprocal %488 {approx = true} : vector<64x1xf32> -> vector<64x1xf32>
    %490 = vector.broadcast %489 : vector<64x1xf32> to vector<64x16xf32>
    %491 = arith.mulf %486, %490 : vector<64x16xf32>
    %492 = vector.extract_strided_slice %491 {offsets = [0, 0], sizes = [16, 16], strides = [1, 1]} : vector<64x16xf32> to vector<16x16xf32>
    %493 = vector.extract_strided_slice %466 {offsets = [0, 64], sizes = [16, 8], strides = [1, 1]} : vector<16x96xf32> to vector<16x8xf32>
    %cst_210 = arith.constant dense<0.000000e+00> : vector<16x8xf32>
    %494 = tpu.matmul %492, %493, %cst_210 {dimension_numbers = #tpu.dot_dimension_numbers<[1], [0], [0], [1], [0, 0, 1, 1], [], []>} : vector<16x16xf32>, vector<16x8xf32>, vector<16x8xf32> -> vector<16x8xf32>
    %c0_211 = arith.constant 0 : index
    %c0_212 = arith.constant 0 : index
    %c0_213 = arith.constant 0 : index
    %495 = vector.load %arg31[%c0_211, %c0_212, %c0_213] : memref<2x32x32xf32, #tpu.memory_space<vmem>>, vector<1x8x32xf32>
    %496 = vector.shape_cast %495 : vector<1x8x32xf32> to vector<8x32xf32>
    %cst_214 = arith.constant dense<0.000000e+00> : vector<16x32xf32>
    %497 = tpu.matmul %494, %496, %cst_214 {dimension_numbers = #tpu.dot_dimension_numbers<[1], [0], [0], [1], [0, 0, 1, 1], [], []>} : vector<16x8xf32>, vector<8x32xf32>, vector<16x32xf32> -> vector<16x32xf32>
    %498 = vector.extract_strided_slice %491 {offsets = [16, 0], sizes = [16, 16], strides = [1, 1]} : vector<64x16xf32> to vector<16x16xf32>
    %499 = vector.extract_strided_slice %466 {offsets = [0, 72], sizes = [16, 8], strides = [1, 1]} : vector<16x96xf32> to vector<16x8xf32>
    %cst_215 = arith.constant dense<0.000000e+00> : vector<16x8xf32>
    %500 = tpu.matmul %498, %499, %cst_215 {dimension_numbers = #tpu.dot_dimension_numbers<[1], [0], [0], [1], [0, 0, 1, 1], [], []>} : vector<16x16xf32>, vector<16x8xf32>, vector<16x8xf32> -> vector<16x8xf32>
    %c0_216 = arith.constant 0 : index
    %c8_217 = arith.constant 8 : index
    %c0_218 = arith.constant 0 : index
    %501 = vector.load %arg31[%c0_216, %c8_217, %c0_218] : memref<2x32x32xf32, #tpu.memory_space<vmem>>, vector<1x8x32xf32>
    %502 = vector.shape_cast %501 : vector<1x8x32xf32> to vector<8x32xf32>
    %cst_219 = arith.constant dense<0.000000e+00> : vector<16x32xf32>
    %503 = tpu.matmul %500, %502, %cst_219 {dimension_numbers = #tpu.dot_dimension_numbers<[1], [0], [0], [1], [0, 0, 1, 1], [], []>} : vector<16x8xf32>, vector<8x32xf32>, vector<16x32xf32> -> vector<16x32xf32>
    %504 = arith.addf %497, %503 : vector<16x32xf32>
    %505 = vector.extract_strided_slice %491 {offsets = [32, 0], sizes = [16, 16], strides = [1, 1]} : vector<64x16xf32> to vector<16x16xf32>
    %506 = vector.extract_strided_slice %466 {offsets = [0, 80], sizes = [16, 8], strides = [1, 1]} : vector<16x96xf32> to vector<16x8xf32>
    %cst_220 = arith.constant dense<0.000000e+00> : vector<16x8xf32>
    %507 = tpu.matmul %505, %506, %cst_220 {dimension_numbers = #tpu.dot_dimension_numbers<[1], [0], [0], [1], [0, 0, 1, 1], [], []>} : vector<16x16xf32>, vector<16x8xf32>, vector<16x8xf32> -> vector<16x8xf32>
    %c0_221 = arith.constant 0 : index
    %c16_222 = arith.constant 16 : index
    %c0_223 = arith.constant 0 : index
    %508 = vector.load %arg31[%c0_221, %c16_222, %c0_223] : memref<2x32x32xf32, #tpu.memory_space<vmem>>, vector<1x8x32xf32>
    %509 = vector.shape_cast %508 : vector<1x8x32xf32> to vector<8x32xf32>
    %cst_224 = arith.constant dense<0.000000e+00> : vector<16x32xf32>
    %510 = tpu.matmul %507, %509, %cst_224 {dimension_numbers = #tpu.dot_dimension_numbers<[1], [0], [0], [1], [0, 0, 1, 1], [], []>} : vector<16x8xf32>, vector<8x32xf32>, vector<16x32xf32> -> vector<16x32xf32>
    %511 = arith.addf %504, %510 : vector<16x32xf32>
    %512 = vector.extract_strided_slice %491 {offsets = [48, 0], sizes = [16, 16], strides = [1, 1]} : vector<64x16xf32> to vector<16x16xf32>
    %513 = vector.extract_strided_slice %466 {offsets = [0, 88], sizes = [16, 8], strides = [1, 1]} : vector<16x96xf32> to vector<16x8xf32>
    %cst_225 = arith.constant dense<0.000000e+00> : vector<16x8xf32>
    %514 = tpu.matmul %512, %513, %cst_225 {dimension_numbers = #tpu.dot_dimension_numbers<[1], [0], [0], [1], [0, 0, 1, 1], [], []>} : vector<16x16xf32>, vector<16x8xf32>, vector<16x8xf32> -> vector<16x8xf32>
    %c0_226 = arith.constant 0 : index
    %c24_227 = arith.constant 24 : index
    %c0_228 = arith.constant 0 : index
    %515 = vector.load %arg31[%c0_226, %c24_227, %c0_228] : memref<2x32x32xf32, #tpu.memory_space<vmem>>, vector<1x8x32xf32>
    %516 = vector.shape_cast %515 : vector<1x8x32xf32> to vector<8x32xf32>
    %cst_229 = arith.constant dense<0.000000e+00> : vector<16x32xf32>
    %517 = tpu.matmul %514, %516, %cst_229 {dimension_numbers = #tpu.dot_dimension_numbers<[1], [0], [0], [1], [0, 0, 1, 1], [], []>} : vector<16x8xf32>, vector<8x32xf32>, vector<16x32xf32> -> vector<16x32xf32>
    %518 = arith.addf %511, %517 : vector<16x32xf32>
    %c0_230 = arith.constant 0 : index
    %c0_231 = arith.constant 0 : index
    %c0_232 = arith.constant 0 : index
    %519 = vector.load %arg32[%c0_230, %c0_231, %c0_232] : memref<2x1x32xf32, #tpu.memory_space<vmem>>, vector<1x1x32xf32>
    %520 = vector.shape_cast %519 : vector<1x1x32xf32> to vector<1x32xf32>
    %521 = vector.broadcast %520 : vector<1x32xf32> to vector<16x32xf32>
    %522 = arith.addf %518, %521 : vector<16x32xf32>
    %523 = arith.addf %522, %459 : vector<16x32xf32>
    %c0_233 = arith.constant 0 : index
    %c0_234 = arith.constant 0 : index
    %c0_235 = arith.constant 0 : index
    %524 = vector.load %arg33[%c0_233, %c0_234, %c0_235] : memref<2x1x32xf32, #tpu.memory_space<vmem>>, vector<1x1x32xf32>
    %525 = vector.shape_cast %524 : vector<1x1x32xf32> to vector<1x32xf32>
    %c0_236 = arith.constant 0 : index
    %c0_237 = arith.constant 0 : index
    %c0_238 = arith.constant 0 : index
    %526 = vector.load %arg34[%c0_236, %c0_237, %c0_238] : memref<2x1x32xf32, #tpu.memory_space<vmem>>, vector<1x1x32xf32>
    %527 = vector.shape_cast %526 : vector<1x1x32xf32> to vector<1x32xf32>
    %cst_239 = arith.constant dense<0.000000e+00> : vector<16xf32>
    %528 = vector.multi_reduction <add>, %523, %cst_239 [1] : vector<16x32xf32> to vector<16xf32>
    %529 = vector.shape_cast %528 : vector<16xf32> to vector<16x1xf32>
    %cst_240 = arith.constant 3.200000e+01 : f32
    %530 = vector.broadcast %cst_240 : f32 to vector<16x1xf32>
    %531 = arith.divf %529, %530 : vector<16x1xf32>
    %532 = vector.broadcast %531 : vector<16x1xf32> to vector<16x32xf32>
    %533 = arith.subf %523, %532 : vector<16x32xf32>
    %534 = arith.mulf %533, %533 : vector<16x32xf32>
    %cst_241 = arith.constant dense<0.000000e+00> : vector<16xf32>
    %535 = vector.multi_reduction <add>, %534, %cst_241 [1] : vector<16x32xf32> to vector<16xf32>
    %536 = vector.shape_cast %535 : vector<16xf32> to vector<16x1xf32>
    %cst_242 = arith.constant 3.200000e+01 : f32
    %537 = vector.broadcast %cst_242 : f32 to vector<16x1xf32>
    %538 = arith.divf %536, %537 : vector<16x1xf32>
    %539 = vector.broadcast %531 : vector<16x1xf32> to vector<16x32xf32>
    %540 = arith.subf %523, %539 : vector<16x32xf32>
    %cst_243 = arith.constant 9.99999996E-13 : f32
    %541 = vector.broadcast %cst_243 : f32 to vector<16x1xf32>
    %542 = arith.addf %538, %541 : vector<16x1xf32>
    %543 = math.rsqrt %542 : vector<16x1xf32>
    %544 = vector.broadcast %543 : vector<16x1xf32> to vector<16x32xf32>
    %545 = arith.mulf %540, %544 : vector<16x32xf32>
    %546 = vector.broadcast %525 : vector<1x32xf32> to vector<16x32xf32>
    %547 = arith.mulf %545, %546 : vector<16x32xf32>
    %548 = vector.broadcast %527 : vector<1x32xf32> to vector<16x32xf32>
    %549 = arith.addf %547, %548 : vector<16x32xf32>
    %c0_244 = arith.constant 0 : index
    %c0_245 = arith.constant 0 : index
    %c0_246 = arith.constant 0 : index
    %550 = vector.load %arg35[%c0_244, %c0_245, %c0_246] : memref<2x32x64xf32, #tpu.memory_space<vmem>>, vector<1x32x64xf32>
    %551 = vector.shape_cast %550 : vector<1x32x64xf32> to vector<32x64xf32>
    %cst_247 = arith.constant dense<0.000000e+00> : vector<16x64xf32>
    %552 = tpu.matmul %549, %551, %cst_247 {dimension_numbers = #tpu.dot_dimension_numbers<[1], [0], [0], [1], [0, 0, 1, 1], [], []>} : vector<16x32xf32>, vector<32x64xf32>, vector<16x64xf32> -> vector<16x64xf32>
    %c0_248 = arith.constant 0 : index
    %c0_249 = arith.constant 0 : index
    %c0_250 = arith.constant 0 : index
    %553 = vector.load %arg36[%c0_248, %c0_249, %c0_250] : memref<2x1x64xf32, #tpu.memory_space<vmem>>, vector<1x1x64xf32>
    %554 = vector.shape_cast %553 : vector<1x1x64xf32> to vector<1x64xf32>
    %555 = vector.broadcast %554 : vector<1x64xf32> to vector<16x64xf32>
    %556 = arith.addf %552, %555 : vector<16x64xf32>
    %cst_251 = arith.constant 5.000000e-01 : f32
    %557 = vector.broadcast %cst_251 : f32 to vector<16x64xf32>
    %558 = arith.mulf %557, %556 : vector<16x64xf32>
    %cst_252 = arith.constant 4.471500e-02 : f32
    %559 = vector.broadcast %cst_252 : f32 to vector<16x64xf32>
    %560 = arith.mulf %559, %556 : vector<16x64xf32>
    %561 = arith.mulf %560, %556 : vector<16x64xf32>
    %562 = arith.mulf %561, %556 : vector<16x64xf32>
    %563 = arith.addf %556, %562 : vector<16x64xf32>
    %cst_253 = arith.constant 0.797884583 : f32
    %564 = vector.broadcast %cst_253 : f32 to vector<16x64xf32>
    %565 = arith.mulf %564, %563 : vector<16x64xf32>
    %566 = math.tanh %565 : vector<16x64xf32>
    %cst_254 = arith.constant 1.000000e+00 : f32
    %567 = vector.broadcast %cst_254 : f32 to vector<16x64xf32>
    %568 = arith.addf %567, %566 : vector<16x64xf32>
    %569 = arith.mulf %558, %568 : vector<16x64xf32>
    %c0_255 = arith.constant 0 : index
    %c0_256 = arith.constant 0 : index
    %c0_257 = arith.constant 0 : index
    %570 = vector.load %arg37[%c0_255, %c0_256, %c0_257] : memref<2x64x32xf32, #tpu.memory_space<vmem>>, vector<1x64x32xf32>
    %571 = vector.shape_cast %570 : vector<1x64x32xf32> to vector<64x32xf32>
    %cst_258 = arith.constant dense<0.000000e+00> : vector<16x32xf32>
    %572 = tpu.matmul %569, %571, %cst_258 {dimension_numbers = #tpu.dot_dimension_numbers<[1], [0], [0], [1], [0, 0, 1, 1], [], []>} : vector<16x64xf32>, vector<64x32xf32>, vector<16x32xf32> -> vector<16x32xf32>
    %c0_259 = arith.constant 0 : index
    %c0_260 = arith.constant 0 : index
    %c0_261 = arith.constant 0 : index
    %573 = vector.load %arg38[%c0_259, %c0_260, %c0_261] : memref<2x1x32xf32, #tpu.memory_space<vmem>>, vector<1x1x32xf32>
    %574 = vector.shape_cast %573 : vector<1x1x32xf32> to vector<1x32xf32>
    %575 = vector.broadcast %574 : vector<1x32xf32> to vector<16x32xf32>
    %576 = arith.addf %572, %575 : vector<16x32xf32>
    %577 = arith.addf %576, %549 : vector<16x32xf32>
    %c0_262 = arith.constant 0 : index
    %c0_263 = arith.constant 0 : index
    %c0_264 = arith.constant 0 : index
    %578 = vector.load %arg39[%c0_262, %c0_263, %c0_264] : memref<2x1x32xf32, #tpu.memory_space<vmem>>, vector<1x1x32xf32>
    %579 = vector.shape_cast %578 : vector<1x1x32xf32> to vector<1x32xf32>
    %c0_265 = arith.constant 0 : index
    %c0_266 = arith.constant 0 : index
    %c0_267 = arith.constant 0 : index
    %580 = vector.load %arg40[%c0_265, %c0_266, %c0_267] : memref<2x1x32xf32, #tpu.memory_space<vmem>>, vector<1x1x32xf32>
    %581 = vector.shape_cast %580 : vector<1x1x32xf32> to vector<1x32xf32>
    %cst_268 = arith.constant dense<0.000000e+00> : vector<16xf32>
    %582 = vector.multi_reduction <add>, %577, %cst_268 [1] : vector<16x32xf32> to vector<16xf32>
    %583 = vector.shape_cast %582 : vector<16xf32> to vector<16x1xf32>
    %cst_269 = arith.constant 3.200000e+01 : f32
    %584 = vector.broadcast %cst_269 : f32 to vector<16x1xf32>
    %585 = arith.divf %583, %584 : vector<16x1xf32>
    %586 = vector.broadcast %585 : vector<16x1xf32> to vector<16x32xf32>
    %587 = arith.subf %577, %586 : vector<16x32xf32>
    %588 = arith.mulf %587, %587 : vector<16x32xf32>
    %cst_270 = arith.constant dense<0.000000e+00> : vector<16xf32>
    %589 = vector.multi_reduction <add>, %588, %cst_270 [1] : vector<16x32xf32> to vector<16xf32>
    %590 = vector.shape_cast %589 : vector<16xf32> to vector<16x1xf32>
    %cst_271 = arith.constant 3.200000e+01 : f32
    %591 = vector.broadcast %cst_271 : f32 to vector<16x1xf32>
    %592 = arith.divf %590, %591 : vector<16x1xf32>
    %593 = vector.broadcast %585 : vector<16x1xf32> to vector<16x32xf32>
    %594 = arith.subf %577, %593 : vector<16x32xf32>
    %cst_272 = arith.constant 9.99999996E-13 : f32
    %595 = vector.broadcast %cst_272 : f32 to vector<16x1xf32>
    %596 = arith.addf %592, %595 : vector<16x1xf32>
    %597 = math.rsqrt %596 : vector<16x1xf32>
    %598 = vector.broadcast %597 : vector<16x1xf32> to vector<16x32xf32>
    %599 = arith.mulf %594, %598 : vector<16x32xf32>
    %600 = vector.broadcast %579 : vector<1x32xf32> to vector<16x32xf32>
    %601 = arith.mulf %599, %600 : vector<16x32xf32>
    %602 = vector.broadcast %581 : vector<1x32xf32> to vector<16x32xf32>
    %603 = arith.addf %601, %602 : vector<16x32xf32>
    %c1_273 = arith.constant 1 : index
    %c0_274 = arith.constant 0 : index
    %c0_275 = arith.constant 0 : index
    %604 = vector.load %arg29[%c1_273, %c0_274, %c0_275] : memref<2x32x96xf32, #tpu.memory_space<vmem>>, vector<1x32x96xf32>
    %605 = vector.shape_cast %604 : vector<1x32x96xf32> to vector<32x96xf32>
    %cst_276 = arith.constant dense<0.000000e+00> : vector<16x96xf32>
    %606 = tpu.matmul %603, %605, %cst_276 {dimension_numbers = #tpu.dot_dimension_numbers<[1], [0], [0], [1], [0, 0, 1, 1], [], []>} : vector<16x32xf32>, vector<32x96xf32>, vector<16x96xf32> -> vector<16x96xf32>
    %c1_277 = arith.constant 1 : index
    %c0_278 = arith.constant 0 : index
    %c0_279 = arith.constant 0 : index
    %607 = vector.load %arg30[%c1_277, %c0_278, %c0_279] : memref<2x1x96xf32, #tpu.memory_space<vmem>>, vector<1x1x96xf32>
    %608 = vector.shape_cast %607 : vector<1x1x96xf32> to vector<1x96xf32>
    %609 = vector.broadcast %608 : vector<1x96xf32> to vector<16x96xf32>
    %610 = arith.addf %606, %609 : vector<16x96xf32>
    %611 = vector.extract_strided_slice %610 {offsets = [0, 0], sizes = [16, 8], strides = [1, 1]} : vector<16x96xf32> to vector<16x8xf32>
    %612 = vector.extract_strided_slice %610 {offsets = [0, 32], sizes = [16, 8], strides = [1, 1]} : vector<16x96xf32> to vector<16x8xf32>
    %cst_280 = arith.constant dense<0.000000e+00> : vector<16x16xf32>
    %613 = tpu.matmul %611, %612, %cst_280 {dimension_numbers = #tpu.dot_dimension_numbers<[1], [1], [0], [0], [0, 0, 1, 0], [], []>} : vector<16x8xf32>, vector<16x8xf32>, vector<16x16xf32> -> vector<16x16xf32>
    %614 = vector.extract_strided_slice %610 {offsets = [0, 8], sizes = [16, 8], strides = [1, 1]} : vector<16x96xf32> to vector<16x8xf32>
    %615 = vector.extract_strided_slice %610 {offsets = [0, 40], sizes = [16, 8], strides = [1, 1]} : vector<16x96xf32> to vector<16x8xf32>
    %cst_281 = arith.constant dense<0.000000e+00> : vector<16x16xf32>
    %616 = tpu.matmul %614, %615, %cst_281 {dimension_numbers = #tpu.dot_dimension_numbers<[1], [1], [0], [0], [0, 0, 1, 0], [], []>} : vector<16x8xf32>, vector<16x8xf32>, vector<16x16xf32> -> vector<16x16xf32>
    %617 = vector.extract_strided_slice %610 {offsets = [0, 16], sizes = [16, 8], strides = [1, 1]} : vector<16x96xf32> to vector<16x8xf32>
    %618 = vector.extract_strided_slice %610 {offsets = [0, 48], sizes = [16, 8], strides = [1, 1]} : vector<16x96xf32> to vector<16x8xf32>
    %cst_282 = arith.constant dense<0.000000e+00> : vector<16x16xf32>
    %619 = tpu.matmul %617, %618, %cst_282 {dimension_numbers = #tpu.dot_dimension_numbers<[1], [1], [0], [0], [0, 0, 1, 0], [], []>} : vector<16x8xf32>, vector<16x8xf32>, vector<16x16xf32> -> vector<16x16xf32>
    %620 = vector.extract_strided_slice %610 {offsets = [0, 24], sizes = [16, 8], strides = [1, 1]} : vector<16x96xf32> to vector<16x8xf32>
    %621 = vector.extract_strided_slice %610 {offsets = [0, 56], sizes = [16, 8], strides = [1, 1]} : vector<16x96xf32> to vector<16x8xf32>
    %cst_283 = arith.constant dense<0.000000e+00> : vector<16x16xf32>
    %622 = tpu.matmul %620, %621, %cst_283 {dimension_numbers = #tpu.dot_dimension_numbers<[1], [1], [0], [0], [0, 0, 1, 0], [], []>} : vector<16x8xf32>, vector<16x8xf32>, vector<16x16xf32> -> vector<16x16xf32>
    %623 = tpu.concatenate %613, %616, %619, %622 in 0 : vector<16x16xf32>, vector<16x16xf32>, vector<16x16xf32>, vector<16x16xf32> -> vector<64x16xf32>
    %624 = vector.broadcast %1 : vector<1x16xf32> to vector<64x16xf32>
    %625 = arith.addf %623, %624 : vector<64x16xf32>
    %cst_284 = arith.constant dense<0xFF800000> : vector<64xf32>
    %626 = vector.multi_reduction <maximumf>, %625, %cst_284 [1] : vector<64x16xf32> to vector<64xf32>
    %627 = vector.shape_cast %626 : vector<64xf32> to vector<64x1xf32>
    %628 = vector.broadcast %627 : vector<64x1xf32> to vector<64x16xf32>
    %629 = arith.subf %625, %628 : vector<64x16xf32>
    %630 = math.exp %629 : vector<64x16xf32>
    %cst_285 = arith.constant dense<0.000000e+00> : vector<64xf32>
    %631 = vector.multi_reduction <add>, %630, %cst_285 [1] : vector<64x16xf32> to vector<64xf32>
    %632 = vector.shape_cast %631 : vector<64xf32> to vector<64x1xf32>
    %633 = tpu.reciprocal %632 {approx = true} : vector<64x1xf32> -> vector<64x1xf32>
    %634 = vector.broadcast %633 : vector<64x1xf32> to vector<64x16xf32>
    %635 = arith.mulf %630, %634 : vector<64x16xf32>
    %636 = vector.extract_strided_slice %635 {offsets = [0, 0], sizes = [16, 16], strides = [1, 1]} : vector<64x16xf32> to vector<16x16xf32>
    %637 = vector.extract_strided_slice %610 {offsets = [0, 64], sizes = [16, 8], strides = [1, 1]} : vector<16x96xf32> to vector<16x8xf32>
    %cst_286 = arith.constant dense<0.000000e+00> : vector<16x8xf32>
    %638 = tpu.matmul %636, %637, %cst_286 {dimension_numbers = #tpu.dot_dimension_numbers<[1], [0], [0], [1], [0, 0, 1, 1], [], []>} : vector<16x16xf32>, vector<16x8xf32>, vector<16x8xf32> -> vector<16x8xf32>
    %c1_287 = arith.constant 1 : index
    %c0_288 = arith.constant 0 : index
    %c0_289 = arith.constant 0 : index
    %639 = vector.load %arg31[%c1_287, %c0_288, %c0_289] : memref<2x32x32xf32, #tpu.memory_space<vmem>>, vector<1x8x32xf32>
    %640 = vector.shape_cast %639 : vector<1x8x32xf32> to vector<8x32xf32>
    %cst_290 = arith.constant dense<0.000000e+00> : vector<16x32xf32>
    %641 = tpu.matmul %638, %640, %cst_290 {dimension_numbers = #tpu.dot_dimension_numbers<[1], [0], [0], [1], [0, 0, 1, 1], [], []>} : vector<16x8xf32>, vector<8x32xf32>, vector<16x32xf32> -> vector<16x32xf32>
    %642 = vector.extract_strided_slice %635 {offsets = [16, 0], sizes = [16, 16], strides = [1, 1]} : vector<64x16xf32> to vector<16x16xf32>
    %643 = vector.extract_strided_slice %610 {offsets = [0, 72], sizes = [16, 8], strides = [1, 1]} : vector<16x96xf32> to vector<16x8xf32>
    %cst_291 = arith.constant dense<0.000000e+00> : vector<16x8xf32>
    %644 = tpu.matmul %642, %643, %cst_291 {dimension_numbers = #tpu.dot_dimension_numbers<[1], [0], [0], [1], [0, 0, 1, 1], [], []>} : vector<16x16xf32>, vector<16x8xf32>, vector<16x8xf32> -> vector<16x8xf32>
    %c1_292 = arith.constant 1 : index
    %c8_293 = arith.constant 8 : index
    %c0_294 = arith.constant 0 : index
    %645 = vector.load %arg31[%c1_292, %c8_293, %c0_294] : memref<2x32x32xf32, #tpu.memory_space<vmem>>, vector<1x8x32xf32>
    %646 = vector.shape_cast %645 : vector<1x8x32xf32> to vector<8x32xf32>
    %cst_295 = arith.constant dense<0.000000e+00> : vector<16x32xf32>
    %647 = tpu.matmul %644, %646, %cst_295 {dimension_numbers = #tpu.dot_dimension_numbers<[1], [0], [0], [1], [0, 0, 1, 1], [], []>} : vector<16x8xf32>, vector<8x32xf32>, vector<16x32xf32> -> vector<16x32xf32>
    %648 = arith.addf %641, %647 : vector<16x32xf32>
    %649 = vector.extract_strided_slice %635 {offsets = [32, 0], sizes = [16, 16], strides = [1, 1]} : vector<64x16xf32> to vector<16x16xf32>
    %650 = vector.extract_strided_slice %610 {offsets = [0, 80], sizes = [16, 8], strides = [1, 1]} : vector<16x96xf32> to vector<16x8xf32>
    %cst_296 = arith.constant dense<0.000000e+00> : vector<16x8xf32>
    %651 = tpu.matmul %649, %650, %cst_296 {dimension_numbers = #tpu.dot_dimension_numbers<[1], [0], [0], [1], [0, 0, 1, 1], [], []>} : vector<16x16xf32>, vector<16x8xf32>, vector<16x8xf32> -> vector<16x8xf32>
    %c1_297 = arith.constant 1 : index
    %c16_298 = arith.constant 16 : index
    %c0_299 = arith.constant 0 : index
    %652 = vector.load %arg31[%c1_297, %c16_298, %c0_299] : memref<2x32x32xf32, #tpu.memory_space<vmem>>, vector<1x8x32xf32>
    %653 = vector.shape_cast %652 : vector<1x8x32xf32> to vector<8x32xf32>
    %cst_300 = arith.constant dense<0.000000e+00> : vector<16x32xf32>
    %654 = tpu.matmul %651, %653, %cst_300 {dimension_numbers = #tpu.dot_dimension_numbers<[1], [0], [0], [1], [0, 0, 1, 1], [], []>} : vector<16x8xf32>, vector<8x32xf32>, vector<16x32xf32> -> vector<16x32xf32>
    %655 = arith.addf %648, %654 : vector<16x32xf32>
    %656 = vector.extract_strided_slice %635 {offsets = [48, 0], sizes = [16, 16], strides = [1, 1]} : vector<64x16xf32> to vector<16x16xf32>
    %657 = vector.extract_strided_slice %610 {offsets = [0, 88], sizes = [16, 8], strides = [1, 1]} : vector<16x96xf32> to vector<16x8xf32>
    %cst_301 = arith.constant dense<0.000000e+00> : vector<16x8xf32>
    %658 = tpu.matmul %656, %657, %cst_301 {dimension_numbers = #tpu.dot_dimension_numbers<[1], [0], [0], [1], [0, 0, 1, 1], [], []>} : vector<16x16xf32>, vector<16x8xf32>, vector<16x8xf32> -> vector<16x8xf32>
    %c1_302 = arith.constant 1 : index
    %c24_303 = arith.constant 24 : index
    %c0_304 = arith.constant 0 : index
    %659 = vector.load %arg31[%c1_302, %c24_303, %c0_304] : memref<2x32x32xf32, #tpu.memory_space<vmem>>, vector<1x8x32xf32>
    %660 = vector.shape_cast %659 : vector<1x8x32xf32> to vector<8x32xf32>
    %cst_305 = arith.constant dense<0.000000e+00> : vector<16x32xf32>
    %661 = tpu.matmul %658, %660, %cst_305 {dimension_numbers = #tpu.dot_dimension_numbers<[1], [0], [0], [1], [0, 0, 1, 1], [], []>} : vector<16x8xf32>, vector<8x32xf32>, vector<16x32xf32> -> vector<16x32xf32>
    %662 = arith.addf %655, %661 : vector<16x32xf32>
    %c1_306 = arith.constant 1 : index
    %c0_307 = arith.constant 0 : index
    %c0_308 = arith.constant 0 : index
    %663 = vector.load %arg32[%c1_306, %c0_307, %c0_308] : memref<2x1x32xf32, #tpu.memory_space<vmem>>, vector<1x1x32xf32>
    %664 = vector.shape_cast %663 : vector<1x1x32xf32> to vector<1x32xf32>
    %665 = vector.broadcast %664 : vector<1x32xf32> to vector<16x32xf32>
    %666 = arith.addf %662, %665 : vector<16x32xf32>
    %667 = arith.addf %666, %603 : vector<16x32xf32>
    %c1_309 = arith.constant 1 : index
    %c0_310 = arith.constant 0 : index
    %c0_311 = arith.constant 0 : index
    %668 = vector.load %arg33[%c1_309, %c0_310, %c0_311] : memref<2x1x32xf32, #tpu.memory_space<vmem>>, vector<1x1x32xf32>
    %669 = vector.shape_cast %668 : vector<1x1x32xf32> to vector<1x32xf32>
    %c1_312 = arith.constant 1 : index
    %c0_313 = arith.constant 0 : index
    %c0_314 = arith.constant 0 : index
    %670 = vector.load %arg34[%c1_312, %c0_313, %c0_314] : memref<2x1x32xf32, #tpu.memory_space<vmem>>, vector<1x1x32xf32>
    %671 = vector.shape_cast %670 : vector<1x1x32xf32> to vector<1x32xf32>
    %cst_315 = arith.constant dense<0.000000e+00> : vector<16xf32>
    %672 = vector.multi_reduction <add>, %667, %cst_315 [1] : vector<16x32xf32> to vector<16xf32>
    %673 = vector.shape_cast %672 : vector<16xf32> to vector<16x1xf32>
    %cst_316 = arith.constant 3.200000e+01 : f32
    %674 = vector.broadcast %cst_316 : f32 to vector<16x1xf32>
    %675 = arith.divf %673, %674 : vector<16x1xf32>
    %676 = vector.broadcast %675 : vector<16x1xf32> to vector<16x32xf32>
    %677 = arith.subf %667, %676 : vector<16x32xf32>
    %678 = arith.mulf %677, %677 : vector<16x32xf32>
    %cst_317 = arith.constant dense<0.000000e+00> : vector<16xf32>
    %679 = vector.multi_reduction <add>, %678, %cst_317 [1] : vector<16x32xf32> to vector<16xf32>
    %680 = vector.shape_cast %679 : vector<16xf32> to vector<16x1xf32>
    %cst_318 = arith.constant 3.200000e+01 : f32
    %681 = vector.broadcast %cst_318 : f32 to vector<16x1xf32>
    %682 = arith.divf %680, %681 : vector<16x1xf32>
    %683 = vector.broadcast %675 : vector<16x1xf32> to vector<16x32xf32>
    %684 = arith.subf %667, %683 : vector<16x32xf32>
    %cst_319 = arith.constant 9.99999996E-13 : f32
    %685 = vector.broadcast %cst_319 : f32 to vector<16x1xf32>
    %686 = arith.addf %682, %685 : vector<16x1xf32>
    %687 = math.rsqrt %686 : vector<16x1xf32>
    %688 = vector.broadcast %687 : vector<16x1xf32> to vector<16x32xf32>
    %689 = arith.mulf %684, %688 : vector<16x32xf32>
    %690 = vector.broadcast %669 : vector<1x32xf32> to vector<16x32xf32>
    %691 = arith.mulf %689, %690 : vector<16x32xf32>
    %692 = vector.broadcast %671 : vector<1x32xf32> to vector<16x32xf32>
    %693 = arith.addf %691, %692 : vector<16x32xf32>
    %c1_320 = arith.constant 1 : index
    %c0_321 = arith.constant 0 : index
    %c0_322 = arith.constant 0 : index
    %694 = vector.load %arg35[%c1_320, %c0_321, %c0_322] : memref<2x32x64xf32, #tpu.memory_space<vmem>>, vector<1x32x64xf32>
    %695 = vector.shape_cast %694 : vector<1x32x64xf32> to vector<32x64xf32>
    %cst_323 = arith.constant dense<0.000000e+00> : vector<16x64xf32>
    %696 = tpu.matmul %693, %695, %cst_323 {dimension_numbers = #tpu.dot_dimension_numbers<[1], [0], [0], [1], [0, 0, 1, 1], [], []>} : vector<16x32xf32>, vector<32x64xf32>, vector<16x64xf32> -> vector<16x64xf32>
    %c1_324 = arith.constant 1 : index
    %c0_325 = arith.constant 0 : index
    %c0_326 = arith.constant 0 : index
    %697 = vector.load %arg36[%c1_324, %c0_325, %c0_326] : memref<2x1x64xf32, #tpu.memory_space<vmem>>, vector<1x1x64xf32>
    %698 = vector.shape_cast %697 : vector<1x1x64xf32> to vector<1x64xf32>
    %699 = vector.broadcast %698 : vector<1x64xf32> to vector<16x64xf32>
    %700 = arith.addf %696, %699 : vector<16x64xf32>
    %cst_327 = arith.constant 5.000000e-01 : f32
    %701 = vector.broadcast %cst_327 : f32 to vector<16x64xf32>
    %702 = arith.mulf %701, %700 : vector<16x64xf32>
    %cst_328 = arith.constant 4.471500e-02 : f32
    %703 = vector.broadcast %cst_328 : f32 to vector<16x64xf32>
    %704 = arith.mulf %703, %700 : vector<16x64xf32>
    %705 = arith.mulf %704, %700 : vector<16x64xf32>
    %706 = arith.mulf %705, %700 : vector<16x64xf32>
    %707 = arith.addf %700, %706 : vector<16x64xf32>
    %cst_329 = arith.constant 0.797884583 : f32
    %708 = vector.broadcast %cst_329 : f32 to vector<16x64xf32>
    %709 = arith.mulf %708, %707 : vector<16x64xf32>
    %710 = math.tanh %709 : vector<16x64xf32>
    %cst_330 = arith.constant 1.000000e+00 : f32
    %711 = vector.broadcast %cst_330 : f32 to vector<16x64xf32>
    %712 = arith.addf %711, %710 : vector<16x64xf32>
    %713 = arith.mulf %702, %712 : vector<16x64xf32>
    %c1_331 = arith.constant 1 : index
    %c0_332 = arith.constant 0 : index
    %c0_333 = arith.constant 0 : index
    %714 = vector.load %arg37[%c1_331, %c0_332, %c0_333] : memref<2x64x32xf32, #tpu.memory_space<vmem>>, vector<1x64x32xf32>
    %715 = vector.shape_cast %714 : vector<1x64x32xf32> to vector<64x32xf32>
    %cst_334 = arith.constant dense<0.000000e+00> : vector<16x32xf32>
    %716 = tpu.matmul %713, %715, %cst_334 {dimension_numbers = #tpu.dot_dimension_numbers<[1], [0], [0], [1], [0, 0, 1, 1], [], []>} : vector<16x64xf32>, vector<64x32xf32>, vector<16x32xf32> -> vector<16x32xf32>
    %c1_335 = arith.constant 1 : index
    %c0_336 = arith.constant 0 : index
    %c0_337 = arith.constant 0 : index
    %717 = vector.load %arg38[%c1_335, %c0_336, %c0_337] : memref<2x1x32xf32, #tpu.memory_space<vmem>>, vector<1x1x32xf32>
    %718 = vector.shape_cast %717 : vector<1x1x32xf32> to vector<1x32xf32>
    %719 = vector.broadcast %718 : vector<1x32xf32> to vector<16x32xf32>
    %720 = arith.addf %716, %719 : vector<16x32xf32>
    %721 = arith.addf %720, %693 : vector<16x32xf32>
    %c1_338 = arith.constant 1 : index
    %c0_339 = arith.constant 0 : index
    %c0_340 = arith.constant 0 : index
    %722 = vector.load %arg39[%c1_338, %c0_339, %c0_340] : memref<2x1x32xf32, #tpu.memory_space<vmem>>, vector<1x1x32xf32>
    %723 = vector.shape_cast %722 : vector<1x1x32xf32> to vector<1x32xf32>
    %c1_341 = arith.constant 1 : index
    %c0_342 = arith.constant 0 : index
    %c0_343 = arith.constant 0 : index
    %724 = vector.load %arg40[%c1_341, %c0_342, %c0_343] : memref<2x1x32xf32, #tpu.memory_space<vmem>>, vector<1x1x32xf32>
    %725 = vector.shape_cast %724 : vector<1x1x32xf32> to vector<1x32xf32>
    %cst_344 = arith.constant dense<0.000000e+00> : vector<16xf32>
    %726 = vector.multi_reduction <add>, %721, %cst_344 [1] : vector<16x32xf32> to vector<16xf32>
    %727 = vector.shape_cast %726 : vector<16xf32> to vector<16x1xf32>
    %cst_345 = arith.constant 3.200000e+01 : f32
    %728 = vector.broadcast %cst_345 : f32 to vector<16x1xf32>
    %729 = arith.divf %727, %728 : vector<16x1xf32>
    %730 = vector.broadcast %729 : vector<16x1xf32> to vector<16x32xf32>
    %731 = arith.subf %721, %730 : vector<16x32xf32>
    %732 = arith.mulf %731, %731 : vector<16x32xf32>
    %cst_346 = arith.constant dense<0.000000e+00> : vector<16xf32>
    %733 = vector.multi_reduction <add>, %732, %cst_346 [1] : vector<16x32xf32> to vector<16xf32>
    %734 = vector.shape_cast %733 : vector<16xf32> to vector<16x1xf32>
    %cst_347 = arith.constant 3.200000e+01 : f32
    %735 = vector.broadcast %cst_347 : f32 to vector<16x1xf32>
    %736 = arith.divf %734, %735 : vector<16x1xf32>
    %737 = vector.broadcast %729 : vector<16x1xf32> to vector<16x32xf32>
    %738 = arith.subf %721, %737 : vector<16x32xf32>
    %cst_348 = arith.constant 9.99999996E-13 : f32
    %739 = vector.broadcast %cst_348 : f32 to vector<16x1xf32>
    %740 = arith.addf %736, %739 : vector<16x1xf32>
    %741 = math.rsqrt %740 : vector<16x1xf32>
    %742 = vector.broadcast %741 : vector<16x1xf32> to vector<16x32xf32>
    %743 = arith.mulf %738, %742 : vector<16x32xf32>
    %744 = vector.broadcast %723 : vector<1x32xf32> to vector<16x32xf32>
    %745 = arith.mulf %743, %744 : vector<16x32xf32>
    %746 = vector.broadcast %725 : vector<1x32xf32> to vector<16x32xf32>
    %747 = arith.addf %745, %746 : vector<16x32xf32>
    %c0_349 = arith.constant 0 : index
    %c0_350 = arith.constant 0 : index
    %c0_351 = arith.constant 0 : index
    %748 = vector.load %arg49[%c0_349, %c0_350, %c0_351] : memref<1x16x32xf32, #tpu.memory_space<vmem>>, vector<1x16x32xf32>
    %749 = vector.shape_cast %748 : vector<1x16x32xf32> to vector<16x32xf32>
    %750 = vector.shape_cast %747 : vector<16x32xf32> to vector<1x16x32xf32>
    tpu.vector_store %arg49[%c0_349, %c0_350, %c0_351], %750 {strides = array<i32>} : memref<1x16x32xf32, #tpu.memory_space<vmem>>, vector<1x16x32xf32>,
    %751 = vector.extract_strided_slice %747 {offsets = [0, 0], sizes = [1, 32], strides = [1, 1]} : vector<16x32xf32> to vector<1x32xf32>
    %c0_352 = arith.constant 0 : index
    %c0_353 = arith.constant 0 : index
    %752 = vector.load %arg41[%c0_352, %c0_353] : memref<32x32xf32, #tpu.memory_space<vmem>>, vector<32x32xf32>
    %cst_354 = arith.constant dense<0.000000e+00> : vector<1x32xf32>
    %753 = tpu.matmul %751, %752, %cst_354 {dimension_numbers = #tpu.dot_dimension_numbers<[1], [0], [0], [1], [0, 0, 1, 1], [], []>} : vector<1x32xf32>, vector<32x32xf32>, vector<1x32xf32> -> vector<1x32xf32>
    %c0_355 = arith.constant 0 : index
    %c0_356 = arith.constant 0 : index
    %754 = vector.load %arg42[%c0_355, %c0_356] : memref<1x32xf32, #tpu.memory_space<vmem>>, vector<1x32xf32>
    %755 = arith.addf %753, %754 : vector<1x32xf32>
    %756 = math.tanh %755 : vector<1x32xf32>
    %c0_357 = arith.constant 0 : index
    %c0_358 = arith.constant 0 : index
    %c0_359 = arith.constant 0 : index
    %757 = vector.load %arg50[%c0_357, %c0_358, %c0_359] : memref<1x1x32xf32, #tpu.memory_space<vmem>>, vector<1x1x32xf32>
    %758 = vector.shape_cast %757 : vector<1x1x32xf32> to vector<1x32xf32>
    %759 = vector.shape_cast %756 : vector<1x32xf32> to vector<1x1x32xf32>
    tpu.vector_store %arg50[%c0_357, %c0_358, %c0_359], %759 {strides = array<i32>} : memref<1x1x32xf32, #tpu.memory_space<vmem>>, vector<1x1x32xf32>,
    %760 = arith.index_cast %arg0 : i32 to index
    %761 = memref.load %arg3[%760] : memref<2xi32, #tpu.memory_space<smem>>
    %762 = tpu.iota {dimensions = array<i32: 1>} : vector<1x16xi32>
    %763 = vector.broadcast %761 : i32 to vector<1x16xi32>
    %764 = arith.cmpi eq, %762, %763 : vector<1x16xi32>
    %765 = arith.extui %764 : vector<1x16xi1> to vector<1x16xi32>
    %766 = arith.sitofp %765 : vector<1x16xi32> to vector<1x16xf32>
    %cst_360 = arith.constant dense<0.000000e+00> : vector<1x32xf32>
    %767 = tpu.matmul %766, %747, %cst_360 {dimension_numbers = #tpu.dot_dimension_numbers<[1], [0], [0], [1], [0, 0, 1, 1], [], []>} : vector<1x16xf32>, vector<16x32xf32>, vector<1x32xf32> -> vector<1x32xf32>
    %c0_361 = arith.constant 0 : index
    %c0_362 = arith.constant 0 : index
    %768 = vector.load %arg43[%c0_361, %c0_362] : memref<32x32xf32, #tpu.memory_space<vmem>>, vector<32x32xf32>
    %cst_363 = arith.constant dense<0.000000e+00> : vector<1x32xf32>
    %769 = tpu.matmul %767, %768, %cst_363 {dimension_numbers = #tpu.dot_dimension_numbers<[1], [0], [0], [1], [0, 0, 1, 1], [], []>} : vector<1x32xf32>, vector<32x32xf32>, vector<1x32xf32> -> vector<1x32xf32>
    %c0_364 = arith.constant 0 : index
    %c0_365 = arith.constant 0 : index
    %770 = vector.load %arg44[%c0_364, %c0_365] : memref<1x32xf32, #tpu.memory_space<vmem>>, vector<1x32xf32>
    %771 = arith.addf %769, %770 : vector<1x32xf32>
    %cst_366 = arith.constant 5.000000e-01 : f32
    %772 = vector.broadcast %cst_366 : f32 to vector<1x32xf32>
    %773 = arith.mulf %772, %771 : vector<1x32xf32>
    %cst_367 = arith.constant 4.471500e-02 : f32
    %774 = vector.broadcast %cst_367 : f32 to vector<1x32xf32>
    %775 = arith.mulf %774, %771 : vector<1x32xf32>
    %776 = arith.mulf %775, %771 : vector<1x32xf32>
    %777 = arith.mulf %776, %771 : vector<1x32xf32>
    %778 = arith.addf %771, %777 : vector<1x32xf32>
    %cst_368 = arith.constant 0.797884583 : f32
    %779 = vector.broadcast %cst_368 : f32 to vector<1x32xf32>
    %780 = arith.mulf %779, %778 : vector<1x32xf32>
    %781 = math.tanh %780 : vector<1x32xf32>
    %cst_369 = arith.constant 1.000000e+00 : f32
    %782 = vector.broadcast %cst_369 : f32 to vector<1x32xf32>
    %783 = arith.addf %782, %781 : vector<1x32xf32>
    %784 = arith.mulf %773, %783 : vector<1x32xf32>
    %c0_370 = arith.constant 0 : index
    %c0_371 = arith.constant 0 : index
    %785 = vector.load %arg45[%c0_370, %c0_371] : memref<1x32xf32, #tpu.memory_space<vmem>>, vector<1x32xf32>
    %c0_372 = arith.constant 0 : index
    %c0_373 = arith.constant 0 : index
    %786 = vector.load %arg46[%c0_372, %c0_373] : memref<1x32xf32, #tpu.memory_space<vmem>>, vector<1x32xf32>
    %cst_374 = arith.constant dense<0.000000e+00> : vector<1xf32>
    %787 = vector.multi_reduction <add>, %784, %cst_374 [1] : vector<1x32xf32> to vector<1xf32>
    %788 = vector.shape_cast %787 : vector<1xf32> to vector<1x1xf32>
    %cst_375 = arith.constant 3.200000e+01 : f32
    %789 = vector.broadcast %cst_375 : f32 to vector<1x1xf32>
    %790 = arith.divf %788, %789 : vector<1x1xf32>
    %791 = vector.broadcast %790 : vector<1x1xf32> to vector<1x32xf32>
    %792 = arith.subf %784, %791 : vector<1x32xf32>
    %793 = arith.mulf %792, %792 : vector<1x32xf32>
    %cst_376 = arith.constant dense<0.000000e+00> : vector<1xf32>
    %794 = vector.multi_reduction <add>, %793, %cst_376 [1] : vector<1x32xf32> to vector<1xf32>
    %795 = vector.shape_cast %794 : vector<1xf32> to vector<1x1xf32>
    %cst_377 = arith.constant 3.200000e+01 : f32
    %796 = vector.broadcast %cst_377 : f32 to vector<1x1xf32>
    %797 = arith.divf %795, %796 : vector<1x1xf32>
    %798 = vector.broadcast %790 : vector<1x1xf32> to vector<1x32xf32>
    %799 = arith.subf %784, %798 : vector<1x32xf32>
    %cst_378 = arith.constant 9.99999996E-13 : f32
    %800 = vector.broadcast %cst_378 : f32 to vector<1x1xf32>
    %801 = arith.addf %797, %800 : vector<1x1xf32>
    %802 = math.rsqrt %801 : vector<1x1xf32>
    %803 = vector.broadcast %802 : vector<1x1xf32> to vector<1x32xf32>
    %804 = arith.mulf %799, %803 : vector<1x32xf32>
    %805 = arith.mulf %804, %785 : vector<1x32xf32>
    %806 = arith.addf %805, %786 : vector<1x32xf32>
    %c0_379 = arith.constant 0 : index
    %c0_380 = arith.constant 0 : index
    %807 = vector.load %arg47[%c0_379, %c0_380] : memref<32x128xf32, #tpu.memory_space<vmem>>, vector<32x128xf32>
    %cst_381 = arith.constant dense<0.000000e+00> : vector<1x128xf32>
    %808 = tpu.matmul %806, %807, %cst_381 {dimension_numbers = #tpu.dot_dimension_numbers<[1], [0], [0], [1], [0, 0, 1, 1], [], []>} : vector<1x32xf32>, vector<32x128xf32>, vector<1x128xf32> -> vector<1x128xf32>
    %c0_382 = arith.constant 0 : index
    %c0_383 = arith.constant 0 : index
    %809 = vector.load %arg48[%c0_382, %c0_383] : memref<1x128xf32, #tpu.memory_space<vmem>>, vector<1x128xf32>
    %810 = arith.addf %808, %809 : vector<1x128xf32>
    %c0_384 = arith.constant 0 : index
    %c0_385 = arith.constant 0 : index
    %c0_386 = arith.constant 0 : index
    %811 = vector.load %arg51[%c0_384, %c0_385, %c0_386] : memref<1x1x128xf32, #tpu.memory_space<vmem>>, vector<1x1x128xf32>
    %812 = vector.shape_cast %811 : vector<1x1x128xf32> to vector<1x128xf32>
    %813 = vector.shape_cast %810 : vector<1x128xf32> to vector<1x1x128xf32>
    tpu.vector_store %arg51[%c0_384, %c0_385, %c0_386], %813 {strides = array<i32>} : memref<1x1x128xf32, #tpu.memory_space<vmem>>, vector<1x1x128xf32>,
    return
  }
  func.func @transform_0(%arg0: i32, %arg1: memref<2x8xi32, #tpu.memory_space<smem>>, %arg2: memref<2x8xi32, #tpu.memory_space<smem>>, %arg3: memref<2xi32, #tpu.memory_space<smem>>) -> (i32, i32, i32) {
    %c0_i32 = arith.constant 0 : i32
    %c0_i32_0 = arith.constant 0 : i32
    %c0_i32_1 = arith.constant 0 : i32
    return %arg0, %c0_i32, %c0_i32_0 : i32, i32, i32
  }
  func.func @transform_1(%arg0: i32, %arg1: memref<2x8xi32, #tpu.memory_space<smem>>, %arg2: memref<2x8xi32, #tpu.memory_space<smem>>, %arg3: memref<2xi32, #tpu.memory_space<smem>>) -> (i32, i32, i32) {
    %c0_i32 = arith.constant 0 : i32
    %c0_i32_0 = arith.constant 0 : i32
    %c0_i32_1 = arith.constant 0 : i32
    return %arg0, %c0_i32, %c0_i32_0 : i32, i32, i32
  }
  func.func @transform_2(%arg0: i32, %arg1: memref<2x8xi32, #tpu.memory_space<smem>>, %arg2: memref<2x8xi32, #tpu.memory_space<smem>>, %arg3: memref<2xi32, #tpu.memory_space<smem>>) -> (i32, i32) {
    %c0_i32 = arith.constant 0 : i32
    %c0_i32_0 = arith.constant 0 : i32
    %c0_i32_1 = arith.constant 0 : i32
    return %c0_i32, %c0_i32_0 : i32, i32
  }
  func.func @transform_3(%arg0: i32, %arg1: memref<2x8xi32, #tpu.memory_space<smem>>, %arg2: memref<2x8xi32, #tpu.memory_space<smem>>, %arg3: memref<2xi32, #tpu.memory_space<smem>>) -> (i32, i32) {
    %c0_i32 = arith.constant 0 : i32
    %c0_i32_0 = arith.constant 0 : i32
    %c0_i32_1 = arith.constant 0 : i32
    return %c0_i32, %c0_i32_0 : i32, i32
  }
  func.func @transform_4(%arg0: i32, %arg1: memref<2x8xi32, #tpu.memory_space<smem>>, %arg2: memref<2x8xi32, #tpu.memory_space<smem>>, %arg3: memref<2xi32, #tpu.memory_space<smem>>) -> (i32, i32) {
    %c0_i32 = arith.constant 0 : i32
    %c0_i32_0 = arith.constant 0 : i32
    %c0_i32_1 = arith.constant 0 : i32
    return %c0_i32, %c0_i32_0 : i32, i32
  }
  func.func @transform_5(%arg0: i32, %arg1: memref<2x8xi32, #tpu.memory_space<smem>>, %arg2: memref<2x8xi32, #tpu.memory_space<smem>>, %arg3: memref<2xi32, #tpu.memory_space<smem>>) -> (i32, i32) {
    %c0_i32 = arith.constant 0 : i32
    %c0_i32_0 = arith.constant 0 : i32
    %c0_i32_1 = arith.constant 0 : i32
    return %c0_i32, %c0_i32_0 : i32, i32
  }
  func.func @transform_6(%arg0: i32, %arg1: memref<2x8xi32, #tpu.memory_space<smem>>, %arg2: memref<2x8xi32, #tpu.memory_space<smem>>, %arg3: memref<2xi32, #tpu.memory_space<smem>>) -> (i32, i32) {
    %c0_i32 = arith.constant 0 : i32
    %c0_i32_0 = arith.constant 0 : i32
    %c0_i32_1 = arith.constant 0 : i32
    return %c0_i32, %c0_i32_0 : i32, i32
  }
  func.func @transform_7(%arg0: i32, %arg1: memref<2x8xi32, #tpu.memory_space<smem>>, %arg2: memref<2x8xi32, #tpu.memory_space<smem>>, %arg3: memref<2xi32, #tpu.memory_space<smem>>) -> (i32, i32, i32) {
    %c0_i32 = arith.constant 0 : i32
    %c0_i32_0 = arith.constant 0 : i32
    %c0_i32_1 = arith.constant 0 : i32
    %c0_i32_2 = arith.constant 0 : i32
    return %c0_i32, %c0_i32_0, %c0_i32_1 : i32, i32, i32
  }
  func.func @transform_8(%arg0: i32, %arg1: memref<2x8xi32, #tpu.memory_space<smem>>, %arg2: memref<2x8xi32, #tpu.memory_space<smem>>, %arg3: memref<2xi32, #tpu.memory_space<smem>>) -> (i32, i32, i32) {
    %c0_i32 = arith.constant 0 : i32
    %c0_i32_0 = arith.constant 0 : i32
    %c0_i32_1 = arith.constant 0 : i32
    %c0_i32_2 = arith.constant 0 : i32
    return %c0_i32, %c0_i32_0, %c0_i32_1 : i32, i32, i32
  }
  func.func @transform_9(%arg0: i32, %arg1: memref<2x8xi32, #tpu.memory_space<smem>>, %arg2: memref<2x8xi32, #tpu.memory_space<smem>>, %arg3: memref<2xi32, #tpu.memory_space<smem>>) -> (i32, i32, i32) {
    %c0_i32 = arith.constant 0 : i32
    %c0_i32_0 = arith.constant 0 : i32
    %c0_i32_1 = arith.constant 0 : i32
    %c0_i32_2 = arith.constant 0 : i32
    return %c0_i32, %c0_i32_0, %c0_i32_1 : i32, i32, i32
  }
  func.func @transform_10(%arg0: i32, %arg1: memref<2x8xi32, #tpu.memory_space<smem>>, %arg2: memref<2x8xi32, #tpu.memory_space<smem>>, %arg3: memref<2xi32, #tpu.memory_space<smem>>) -> (i32, i32, i32) {
    %c0_i32 = arith.constant 0 : i32
    %c0_i32_0 = arith.constant 0 : i32
    %c0_i32_1 = arith.constant 0 : i32
    %c0_i32_2 = arith.constant 0 : i32
    return %c0_i32, %c0_i32_0, %c0_i32_1 : i32, i32, i32
  }
  func.func @transform_11(%arg0: i32, %arg1: memref<2x8xi32, #tpu.memory_space<smem>>, %arg2: memref<2x8xi32, #tpu.memory_space<smem>>, %arg3: memref<2xi32, #tpu.memory_space<smem>>) -> (i32, i32, i32) {
    %c0_i32 = arith.constant 0 : i32
    %c0_i32_0 = arith.constant 0 : i32
    %c0_i32_1 = arith.constant 0 : i32
    %c0_i32_2 = arith.constant 0 : i32
    return %c0_i32, %c0_i32_0, %c0_i32_1 : i32, i32, i32
  }
  func.func @transform_12(%arg0: i32, %arg1: memref<2x8xi32, #tpu.memory_space<smem>>, %arg2: memref<2x8xi32, #tpu.memory_space<smem>>, %arg3: memref<2xi32, #tpu.memory_space<smem>>) -> (i32, i32, i32) {
    %c0_i32 = arith.constant 0 : i32
    %c0_i32_0 = arith.constant 0 : i32
    %c0_i32_1 = arith.constant 0 : i32
    %c0_i32_2 = arith.constant 0 : i32
    return %c0_i32, %c0_i32_0, %c0_i32_1 : i32, i32, i32
  }
  func.func @transform_13(%arg0: i32, %arg1: memref<2x8xi32, #tpu.memory_space<smem>>, %arg2: memref<2x8xi32, #tpu.memory_space<smem>>, %arg3: memref<2xi32, #tpu.memory_space<smem>>) -> (i32, i32, i32) {
    %c0_i32 = arith.constant 0 : i32
    %c0_i32_0 = arith.constant 0 : i32
    %c0_i32_1 = arith.constant 0 : i32
    %c0_i32_2 = arith.constant 0 : i32
    return %c0_i32, %c0_i32_0, %c0_i32_1 : i32, i32, i32
  }
  func.func @transform_14(%arg0: i32, %arg1: memref<2x8xi32, #tpu.memory_space<smem>>, %arg2: memref<2x8xi32, #tpu.memory_space<smem>>, %arg3: memref<2xi32, #tpu.memory_space<smem>>) -> (i32, i32, i32) {
    %c0_i32 = arith.constant 0 : i32
    %c0_i32_0 = arith.constant 0 : i32
    %c0_i32_1 = arith.constant 0 : i32
    %c0_i32_2 = arith.constant 0 : i32
    return %c0_i32, %c0_i32_0, %c0_i32_1 : i32, i32, i32
  }
  func.func @transform_15(%arg0: i32, %arg1: memref<2x8xi32, #tpu.memory_space<smem>>, %arg2: memref<2x8xi32, #tpu.memory_space<smem>>, %arg3: memref<2xi32, #tpu.memory_space<smem>>) -> (i32, i32, i32) {
    %c0_i32 = arith.constant 0 : i32
    %c0_i32_0 = arith.constant 0 : i32
    %c0_i32_1 = arith.constant 0 : i32
    %c0_i32_2 = arith.constant 0 : i32
    return %c0_i32, %c0_i32_0, %c0_i32_1 : i32, i32, i32
  }
  func.func @transform_16(%arg0: i32, %arg1: memref<2x8xi32, #tpu.memory_space<smem>>, %arg2: memref<2x8xi32, #tpu.memory_space<smem>>, %arg3: memref<2xi32, #tpu.memory_space<smem>>) -> (i32, i32, i32) {
    %c0_i32 = arith.constant 0 : i32
    %c0_i32_0 = arith.constant 0 : i32
    %c0_i32_1 = arith.constant 0 : i32
    %c0_i32_2 = arith.constant 0 : i32
    return %c0_i32, %c0_i32_0, %c0_i32_1 : i32, i32, i32
  }
  func.func @transform_17(%arg0: i32, %arg1: memref<2x8xi32, #tpu.memory_space<smem>>, %arg2: memref<2x8xi32, #tpu.memory_space<smem>>, %arg3: memref<2xi32, #tpu.memory_space<smem>>) -> (i32, i32, i32) {
    %c0_i32 = arith.constant 0 : i32
    %c0_i32_0 = arith.constant 0 : i32
    %c0_i32_1 = arith.constant 0 : i32
    %c0_i32_2 = arith.constant 0 : i32
    return %c0_i32, %c0_i32_0, %c0_i32_1 : i32, i32, i32
  }
  func.func @transform_18(%arg0: i32, %arg1: memref<2x8xi32, #tpu.memory_space<smem>>, %arg2: memref<2x8xi32, #tpu.memory_space<smem>>, %arg3: memref<2xi32, #tpu.memory_space<smem>>) -> (i32, i32, i32) {
    %c0_i32 = arith.constant 0 : i32
    %c0_i32_0 = arith.constant 0 : i32
    %c0_i32_1 = arith.constant 0 : i32
    %c0_i32_2 = arith.constant 0 : i32
    return %c0_i32, %c0_i32_0, %c0_i32_1 : i32, i32, i32
  }
  func.func @transform_19(%arg0: i32, %arg1: memref<2x8xi32, #tpu.memory_space<smem>>, %arg2: memref<2x8xi32, #tpu.memory_space<smem>>, %arg3: memref<2xi32, #tpu.memory_space<smem>>) -> (i32, i32) {
    %c0_i32 = arith.constant 0 : i32
    %c0_i32_0 = arith.constant 0 : i32
    %c0_i32_1 = arith.constant 0 : i32
    return %c0_i32, %c0_i32_0 : i32, i32
  }
  func.func @transform_20(%arg0: i32, %arg1: memref<2x8xi32, #tpu.memory_space<smem>>, %arg2: memref<2x8xi32, #tpu.memory_space<smem>>, %arg3: memref<2xi32, #tpu.memory_space<smem>>) -> (i32, i32) {
    %c0_i32 = arith.constant 0 : i32
    %c0_i32_0 = arith.constant 0 : i32
    %c0_i32_1 = arith.constant 0 : i32
    return %c0_i32, %c0_i32_0 : i32, i32
  }
  func.func @transform_21(%arg0: i32, %arg1: memref<2x8xi32, #tpu.memory_space<smem>>, %arg2: memref<2x8xi32, #tpu.memory_space<smem>>, %arg3: memref<2xi32, #tpu.memory_space<smem>>) -> (i32, i32) {
    %c0_i32 = arith.constant 0 : i32
    %c0_i32_0 = arith.constant 0 : i32
    %c0_i32_1 = arith.constant 0 : i32
    return %c0_i32, %c0_i32_0 : i32, i32
  }
  func.func @transform_22(%arg0: i32, %arg1: memref<2x8xi32, #tpu.memory_space<smem>>, %arg2: memref<2x8xi32, #tpu.memory_space<smem>>, %arg3: memref<2xi32, #tpu.memory_space<smem>>) -> (i32, i32) {
    %c0_i32 = arith.constant 0 : i32
    %c0_i32_0 = arith.constant 0 : i32
    %c0_i32_1 = arith.constant 0 : i32
    return %c0_i32, %c0_i32_0 : i32, i32
  }
  func.func @transform_23(%arg0: i32, %arg1: memref<2x8xi32, #tpu.memory_space<smem>>, %arg2: memref<2x8xi32, #tpu.memory_space<smem>>, %arg3: memref<2xi32, #tpu.memory_space<smem>>) -> (i32, i32) {
    %c0_i32 = arith.constant 0 : i32
    %c0_i32_0 = arith.constant 0 : i32
    %c0_i32_1 = arith.constant 0 : i32
    return %c0_i32, %c0_i32_0 : i32, i32
  }
  func.func @transform_24(%arg0: i32, %arg1: memref<2x8xi32, #tpu.memory_space<smem>>, %arg2: memref<2x8xi32, #tpu.memory_space<smem>>, %arg3: memref<2xi32, #tpu.memory_space<smem>>) -> (i32, i32) {
    %c0_i32 = arith.constant 0 : i32
    %c0_i32_0 = arith.constant 0 : i32
    %c0_i32_1 = arith.constant 0 : i32
    return %c0_i32, %c0_i32_0 : i32, i32
  }
  func.func @transform_25(%arg0: i32, %arg1: memref<2x8xi32, #tpu.memory_space<smem>>, %arg2: memref<2x8xi32, #tpu.memory_space<smem>>, %arg3: memref<2xi32, #tpu.memory_space<smem>>) -> (i32, i32, i32) {
    %c0_i32 = arith.constant 0 : i32
    %c0_i32_0 = arith.constant 0 : i32
    %c0_i32_1 = arith.constant 0 : i32
    %c0_i32_2 = arith.constant 0 : i32
    return %c0_i32, %c0_i32_0, %c0_i32_1 : i32, i32, i32
  }
  func.func @transform_26(%arg0: i32, %arg1: memref<2x8xi32, #tpu.memory_space<smem>>, %arg2: memref<2x8xi32, #tpu.memory_space<smem>>, %arg3: memref<2xi32, #tpu.memory_space<smem>>) -> (i32, i32, i32) {
    %c0_i32 = arith.constant 0 : i32
    %c0_i32_0 = arith.constant 0 : i32
    %c0_i32_1 = arith.constant 0 : i32
    %c0_i32_2 = arith.constant 0 : i32
    return %c0_i32, %c0_i32_0, %c0_i32_1 : i32, i32, i32
  }
  func.func @transform_27(%arg0: i32, %arg1: memref<2x8xi32, #tpu.memory_space<smem>>, %arg2: memref<2x8xi32, #tpu.memory_space<smem>>, %arg3: memref<2xi32, #tpu.memory_space<smem>>) -> (i32, i32, i32) {
    %c0_i32 = arith.constant 0 : i32
    %c0_i32_0 = arith.constant 0 : i32
    %c0_i32_1 = arith.constant 0 : i32
    %c0_i32_2 = arith.constant 0 : i32
    return %c0_i32, %c0_i32_0, %c0_i32_1 : i32, i32, i32
  }
  func.func @transform_28(%arg0: i32, %arg1: memref<2x8xi32, #tpu.memory_space<smem>>, %arg2: memref<2x8xi32, #tpu.memory_space<smem>>, %arg3: memref<2xi32, #tpu.memory_space<smem>>) -> (i32, i32, i32) {
    %c0_i32 = arith.constant 0 : i32
    %c0_i32_0 = arith.constant 0 : i32
    %c0_i32_1 = arith.constant 0 : i32
    %c0_i32_2 = arith.constant 0 : i32
    return %c0_i32, %c0_i32_0, %c0_i32_1 : i32, i32, i32
  }
  func.func @transform_29(%arg0: i32, %arg1: memref<2x8xi32, #tpu.memory_space<smem>>, %arg2: memref<2x8xi32, #tpu.memory_space<smem>>, %arg3: memref<2xi32, #tpu.memory_space<smem>>) -> (i32, i32, i32) {
    %c0_i32 = arith.constant 0 : i32
    %c0_i32_0 = arith.constant 0 : i32
    %c0_i32_1 = arith.constant 0 : i32
    %c0_i32_2 = arith.constant 0 : i32
    return %c0_i32, %c0_i32_0, %c0_i32_1 : i32, i32, i32
  }
  func.func @transform_30(%arg0: i32, %arg1: memref<2x8xi32, #tpu.memory_space<smem>>, %arg2: memref<2x8xi32, #tpu.memory_space<smem>>, %arg3: memref<2xi32, #tpu.memory_space<smem>>) -> (i32, i32, i32) {
    %c0_i32 = arith.constant 0 : i32
    %c0_i32_0 = arith.constant 0 : i32
    %c0_i32_1 = arith.constant 0 : i32
    %c0_i32_2 = arith.constant 0 : i32
    return %c0_i32, %c0_i32_0, %c0_i32_1 : i32, i32, i32
  }
  func.func @transform_31(%arg0: i32, %arg1: memref<2x8xi32, #tpu.memory_space<smem>>, %arg2: memref<2x8xi32, #tpu.memory_space<smem>>, %arg3: memref<2xi32, #tpu.memory_space<smem>>) -> (i32, i32, i32) {
    %c0_i32 = arith.constant 0 : i32
    %c0_i32_0 = arith.constant 0 : i32
    %c0_i32_1 = arith.constant 0 : i32
    %c0_i32_2 = arith.constant 0 : i32
    return %c0_i32, %c0_i32_0, %c0_i32_1 : i32, i32, i32
  }
  func.func @transform_32(%arg0: i32, %arg1: memref<2x8xi32, #tpu.memory_space<smem>>, %arg2: memref<2x8xi32, #tpu.memory_space<smem>>, %arg3: memref<2xi32, #tpu.memory_space<smem>>) -> (i32, i32, i32) {
    %c0_i32 = arith.constant 0 : i32
    %c0_i32_0 = arith.constant 0 : i32
    %c0_i32_1 = arith.constant 0 : i32
    %c0_i32_2 = arith.constant 0 : i32
    return %c0_i32, %c0_i32_0, %c0_i32_1 : i32, i32, i32
  }
  func.func @transform_33(%arg0: i32, %arg1: memref<2x8xi32, #tpu.memory_space<smem>>, %arg2: memref<2x8xi32, #tpu.memory_space<smem>>, %arg3: memref<2xi32, #tpu.memory_space<smem>>) -> (i32, i32, i32) {
    %c0_i32 = arith.constant 0 : i32
    %c0_i32_0 = arith.constant 0 : i32
    %c0_i32_1 = arith.constant 0 : i32
    %c0_i32_2 = arith.constant 0 : i32
    return %c0_i32, %c0_i32_0, %c0_i32_1 : i32, i32, i32
  }
  func.func @transform_34(%arg0: i32, %arg1: memref<2x8xi32, #tpu.memory_space<smem>>, %arg2: memref<2x8xi32, #tpu.memory_space<smem>>, %arg3: memref<2xi32, #tpu.memory_space<smem>>) -> (i32, i32, i32) {
    %c0_i32 = arith.constant 0 : i32
    %c0_i32_0 = arith.constant 0 : i32
    %c0_i32_1 = arith.constant 0 : i32
    %c0_i32_2 = arith.constant 0 : i32
    return %c0_i32, %c0_i32_0, %c0_i32_1 : i32, i32, i32
  }
  func.func @transform_35(%arg0: i32, %arg1: memref<2x8xi32, #tpu.memory_space<smem>>, %arg2: memref<2x8xi32, #tpu.memory_space<smem>>, %arg3: memref<2xi32, #tpu.memory_space<smem>>) -> (i32, i32, i32) {
    %c0_i32 = arith.constant 0 : i32
    %c0_i32_0 = arith.constant 0 : i32
    %c0_i32_1 = arith.constant 0 : i32
    %c0_i32_2 = arith.constant 0 : i32
    return %c0_i32, %c0_i32_0, %c0_i32_1 : i32, i32, i32
  }
  func.func @transform_36(%arg0: i32, %arg1: memref<2x8xi32, #tpu.memory_space<smem>>, %arg2: memref<2x8xi32, #tpu.memory_space<smem>>, %arg3: memref<2xi32, #tpu.memory_space<smem>>) -> (i32, i32, i32) {
    %c0_i32 = arith.constant 0 : i32
    %c0_i32_0 = arith.constant 0 : i32
    %c0_i32_1 = arith.constant 0 : i32
    %c0_i32_2 = arith.constant 0 : i32
    return %c0_i32, %c0_i32_0, %c0_i32_1 : i32, i32, i32
  }
  func.func @transform_37(%arg0: i32, %arg1: memref<2x8xi32, #tpu.memory_space<smem>>, %arg2: memref<2x8xi32, #tpu.memory_space<smem>>, %arg3: memref<2xi32, #tpu.memory_space<smem>>) -> (i32, i32) {
    %c0_i32 = arith.constant 0 : i32
    %c0_i32_0 = arith.constant 0 : i32
    %c0_i32_1 = arith.constant 0 : i32
    return %c0_i32, %c0_i32_0 : i32, i32
  }
  func.func @transform_38(%arg0: i32, %arg1: memref<2x8xi32, #tpu.memory_space<smem>>, %arg2: memref<2x8xi32, #tpu.memory_space<smem>>, %arg3: memref<2xi32, #tpu.memory_space<smem>>) -> (i32, i32) {
    %c0_i32 = arith.constant 0 : i32
    %c0_i32_0 = arith.constant 0 : i32
    %c0_i32_1 = arith.constant 0 : i32
    return %c0_i32, %c0_i32_0 : i32, i32
  }
  func.func @transform_39(%arg0: i32, %arg1: memref<2x8xi32, #tpu.memory_space<smem>>, %arg2: memref<2x8xi32, #tpu.memory_space<smem>>, %arg3: memref<2xi32, #tpu.memory_space<smem>>) -> (i32, i32) {
    %c0_i32 = arith.constant 0 : i32
    %c0_i32_0 = arith.constant 0 : i32
    %c0_i32_1 = arith.constant 0 : i32
    return %c0_i32, %c0_i32_0 : i32, i32
  }
  func.func @transform_40(%arg0: i32, %arg1: memref<2x8xi32, #tpu.memory_space<smem>>, %arg2: memref<2x8xi32, #tpu.memory_space<smem>>, %arg3: memref<2xi32, #tpu.memory_space<smem>>) -> (i32, i32) {
    %c0_i32 = arith.constant 0 : i32
    %c0_i32_0 = arith.constant 0 : i32
    %c0_i32_1 = arith.constant 0 : i32
    return %c0_i32, %c0_i32_0 : i32, i32
  }
  func.func @transform_41(%arg0: i32, %arg1: memref<2x8xi32, #tpu.memory_space<smem>>, %arg2: memref<2x8xi32, #tpu.memory_space<smem>>, %arg3: memref<2xi32, #tpu.memory_space<smem>>) -> (i32, i32) {
    %c0_i32 = arith.constant 0 : i32
    %c0_i32_0 = arith.constant 0 : i32
    %c0_i32_1 = arith.constant 0 : i32
    return %c0_i32, %c0_i32_0 : i32, i32
  }
  func.func @transform_42(%arg0: i32, %arg1: memref<2x8xi32, #tpu.memory_space<smem>>, %arg2: memref<2x8xi32, #tpu.memory_space<smem>>, %arg3: memref<2xi32, #tpu.memory_space<smem>>) -> (i32, i32) {
    %c0_i32 = arith.constant 0 : i32
    %c0_i32_0 = arith.constant 0 : i32
    %c0_i32_1 = arith.constant 0 : i32
    return %c0_i32, %c0_i32_0 : i32, i32
  }
  func.func @transform_43(%arg0: i32, %arg1: memref<2x8xi32, #tpu.memory_space<smem>>, %arg2: memref<2x8xi32, #tpu.memory_space<smem>>, %arg3: memref<2xi32, #tpu.memory_space<smem>>) -> (i32, i32) {
    %c0_i32 = arith.constant 0 : i32
    %c0_i32_0 = arith.constant 0 : i32
    %c0_i32_1 = arith.constant 0 : i32
    return %c0_i32, %c0_i32_0 : i32, i32
  }
  func.func @transform_44(%arg0: i32, %arg1: memref<2x8xi32, #tpu.memory_space<smem>>, %arg2: memref<2x8xi32, #tpu.memory_space<smem>>, %arg3: memref<2xi32, #tpu.memory_space<smem>>) -> (i32, i32) {
    %c0_i32 = arith.constant 0 : i32
    %c0_i32_0 = arith.constant 0 : i32
    %c0_i32_1 = arith.constant 0 : i32
    return %c0_i32, %c0_i32_0 : i32, i32
  }
  func.func @transform_45(%arg0: i32, %arg1: memref<2x8xi32, #tpu.memory_space<smem>>, %arg2: memref<2x8xi32, #tpu.memory_space<smem>>, %arg3: memref<2xi32, #tpu.memory_space<smem>>) -> (i32, i32, i32) {
    %c0_i32 = arith.constant 0 : i32
    %c0_i32_0 = arith.constant 0 : i32
    %c0_i32_1 = arith.constant 0 : i32
    return %arg0, %c0_i32, %c0_i32_0 : i32, i32, i32
  }
  func.func @transform_46(%arg0: i32, %arg1: memref<2x8xi32, #tpu.memory_space<smem>>, %arg2: memref<2x8xi32, #tpu.memory_space<smem>>, %arg3: memref<2xi32, #tpu.memory_space<smem>>) -> (i32, i32, i32) {
    %c0_i32 = arith.constant 0 : i32
    %c0_i32_0 = arith.constant 0 : i32
    %c0_i32_1 = arith.constant 0 : i32
    return %arg0, %c0_i32, %c0_i32_0 : i32, i32, i32
  }
  func.func @transform_47(%arg0: i32, %arg1: memref<2x8xi32, #tpu.memory_space<smem>>, %arg2: memref<2x8xi32, #tpu.memory_space<smem>>, %arg3: memref<2xi32, #tpu.memory_space<smem>>) -> (i32, i32, i32) {
    %c0_i32 = arith.constant 0 : i32
    %c0_i32_0 = arith.constant 0 : i32
    %c0_i32_1 = arith.constant 0 : i32
    return %arg0, %c0_i32, %c0_i32_0 : i32, i32, i32
  }
}

</mosaic_0001>

<bundles_post_ra>
// kernel: forward.1
= control target key start
LH: loop header
LB: loop body
LE: loop exit
PB: predicated region body
PF: predicated region fallthrough
CT: control target
= control target key end

     0   :  { %s6589_s6 = smov 3   ;;  %s6590_s10 = smov 4   ;;  %s7953_s0 = inlined_call_operand.smem [shape: u32[51], index: -1, kind: input, shape index: {}] }
   0x1   :  { %s6683_s5 = sld [smem:[%s7953_s0]]   ;;  %s6591_s14 = smov 5  }
   0x2   :  { %s6688_s9 = sld [smem:[%s7953_s0 + %s6589_s6]]   ;;  %s6592_s18 = smov 6  }
   0x3   :  { %s6693_s13 = sld [smem:[%s7953_s0 + %s6590_s10]]   ;;  %s6593_s22 = smov 7  }
   0x4   :  { %s6698_s17 = sld [smem:[%s7953_s0 + %s6591_s14]]   ;;  %s6594_s26 = smov 8  }
   0x5   :  { %s6703_s21 = sld [smem:[%s7953_s0 + %s6592_s18]]   ;;  %s6595_s30 = smov 9  }
   0x6   :  { %s6708_s25 = sld [smem:[%s7953_s0 + %s6593_s22]]   ;;  %s6596_s4 = smov 10  }
   0x7   :  { %s6713_s29 = sld [smem:[%s7953_s0 + %s6594_s26]]   ;;  %s6597_s10 = smov 11  }
   0x8   :  { %8030 = sst [smem:[#allocation48_spill]] %s6688_s9  ;;  %s6598_s15 = smov 12  }
   0x9   :  { %8031 = sst [smem:[#allocation49_spill]] %s6693_s13  ;;  %s6599_s20 = smov 13  }
   0xa   :  { %8032 = sst [smem:[#allocation50_spill]] %s6698_s17  ;;  %s6600_s26 = smov 14  }
   0xb   :  { %8033 = sst [smem:[#allocation51_spill]] %s6703_s21  ;;  %s6601_s1 = smov 15  }
   0xc   :  { %8034 = sst [smem:[#allocation52_spill]] %s6708_s25  ;;  %s6602_s7 = smov 16  }
   0xd   :  { %8035 = sst [smem:[#allocation53_spill]] %s6713_s29  ;;  %s6604_s22 = smov 18  }
   0xe   :  { %s6718_s3 = sld [smem:[%s7953_s0 + %s6595_s30]]   ;;  %s6605_s28 = smov 19  }
   0xf   :  { %s6723_s8 = sld [smem:[%s7953_s0 + %s6596_s4]]   ;;  %s6632_s29 = smov 46  }
  0x10   :  { %s6728_s14 = sld [smem:[%s7953_s0 + %s6597_s10]]   ;;  %s6635_s18 = smov 49  }
  0x11   :  { %s6733_s19 = sld [smem:[%s7953_s0 + %s6598_s15]]   ;;  %s6603_s15 = smov 17  }
  0x12   :  { %s6738_s24 = sld [smem:[%s7953_s0 + %s6599_s20]]   ;;  %s5915_s17 = scalar_lea.vmem %s6683_s5, 2 }
  0x13   :  { %s6743_s30 = sld [smem:[%s7953_s0 + %s6600_s26]]   ;;  %s6636_s26 = smov 50  }
  0x14   :  { %8036 = sst [smem:[#allocation54_spill]] %s6718_s3 }
  0x15   :  { %8037 = sst [smem:[#allocation55_spill]] %s6723_s8 }
  0x16   :  { %8038 = sst [smem:[#allocation56_spill]] %s6728_s14 }
  0x17   :  { %8039 = sst [smem:[#allocation57_spill]] %s6733_s19 }
  0x18   :  { %8040 = sst [smem:[#allocation58_spill]] %s6738_s24 }
  0x19   :  { %8041 = sst [smem:[#allocation59_spill]] %s6743_s30 }
  0x1a   :  { %s6748_s6 = sld [smem:[%s7953_s0 + %s6601_s1]]  }
  0x1b   :  { %s6753_s12 = sld [smem:[%s7953_s0 + %s6602_s7]]   ;;  %s6606_s7 = smov 20  }
  0x1c   :  { %s6758_s20 = sld [smem:[%s7953_s0 + %s6603_s15]]   ;;  %s6607_s15 = smov 21  }
  0x1d   :  { %s6763_s27 = sld [smem:[%s7953_s0 + %s6604_s22]]   ;;  %s6608_s22 = smov 22  }
  0x1e   :  { %s6768_s4 = sld [smem:[%s7953_s0 + %s6605_s28]]   ;;  %s6609_s28 = smov 23  }
  0x1f   :  { %s6773_s9 = sld [smem:[%s7953_s0 + %s6606_s7]]   ;;  %s6610_s7 = smov 24  }
  0x20   :  { %8042 = sst [smem:[#allocation60_spill]] %s6748_s6 }
  0x21   :  { %8043 = sst [smem:[#allocation61_spill]] %s6753_s12 }
  0x22   :  { %8044 = sst [smem:[#allocation62_spill]] %s6758_s20 }
  0x23   :  { %8045 = sst [smem:[#allocation63_spill]] %s6763_s27 }
  0x24   :  { %8046 = sst [smem:[#allocation64_spill]] %s6768_s4 }
  0x25   :  { %8047 = sst [smem:[#allocation65_spill]] %s6773_s9 }
  0x26   :  { %s6778_s6 = sld [smem:[%s7953_s0 + %s6607_s15]]   ;;  %s6611_s15 = smov 25  }
  0x27   :  { %s6783_s27 = sld [smem:[%s7953_s0 + %s6608_s22]]   ;;  %s6612_s22 = smov 26  }
  0x28   :  { %s6788_s30 = sld [smem:[%s7953_s0 + %s6609_s28]]   ;;  %s6613_s28 = smov 27  }
  0x29   :  { %s6793_s9 = sld [smem:[%s7953_s0 + %s6610_s7]]   ;;  %s6614_s7 = smov 28  }
  0x2a   :  { %s6903_s8 = sld [smem:[%s7953_s0 + %s6632_s29]]  }
  0x2b   :  { %s6919_s29 = sld [smem:[%s7953_s0 + %s6635_s18]]  }
  0x2c   :  { %8048 = sst [smem:[#allocation66_spill]] %s6778_s6 }
  0x2d   :  { %8049 = sst [smem:[#allocation67_spill]] %s6783_s27 }
  0x2e   :  { %8050 = sst [smem:[#allocation68_spill]] %s6788_s30 }
  0x2f   :  { %8051 = sst [smem:[#allocation69_spill]] %s6793_s9 }
  0x30   :  { %s6798_s6 = sld [smem:[%s7953_s0 + %s6611_s15]]   ;;  %s6615_s15 = smov 29  }
  0x31   :  { %s6803_s27 = sld [smem:[%s7953_s0 + %s6612_s22]]   ;;  %s6616_s22 = smov 30  }
  0x32   :  { %s6808_s30 = sld [smem:[%s7953_s0 + %s6613_s28]]   ;;  %s6617_s28 = smov 31  }
  0x33   :  { %s6813_s9 = sld [smem:[%s7953_s0 + %s6614_s7]]   ;;  %s6618_s7 = smov 32  }
  0x34   :  { %8072 = sst [smem:[#allocation90_spill]] %s6903_s8 }
  0x35   :  { %8075 = sst [smem:[#allocation93_spill]] %s6919_s29 }
  0x36   :  { %8052 = sst [smem:[#allocation70_spill]] %s6798_s6 }
  0x37   :  { %8053 = sst [smem:[#allocation71_spill]] %s6803_s27 }
  0x38   :  { %8054 = sst [smem:[#allocation72_spill]] %s6808_s30 }
  0x39   :  { %8055 = sst [smem:[#allocation73_spill]] %s6813_s9 }
  0x3a   :  { %s6818_s6 = sld [smem:[%s7953_s0 + %s6615_s15]]   ;;  %s6619_s15 = smov 33  }
  0x3b   :  { %s6823_s27 = sld [smem:[%s7953_s0 + %s6616_s22]]   ;;  %s6620_s22 = smov 34  }
  0x3c   :  { %s6828_s30 = sld [smem:[%s7953_s0 + %s6617_s28]]   ;;  %s6621_s28 = smov 35  }
  0x3d   :  { %s6833_s9 = sld [smem:[%s7953_s0 + %s6618_s7]]   ;;  %s6622_s7 = smov 36  }
  0x3e   :  { %s6838_s12 = sld [smem:[%s7953_s0 + %s6619_s15]]   ;;  %s6623_s15 = smov 37  }
  0x3f   :  { %s6848_s24 = sld [smem:[%s7953_s0 + %s6621_s28]]   ;;  %s6625_s28 = smov 39  }
  0x40   :  { %8056 = sst [smem:[#allocation74_spill]] %s6818_s6 }
  0x41   :  { %8057 = sst [smem:[#allocation75_spill]] %s6823_s27 }
  0x42   :  { %s6843_s27 = sld [smem:[%s7953_s0 + %s6620_s22]]   ;;  %s6624_s22 = smov 38  }
  0x43   :  { %8058 = sst [smem:[#allocation76_spill]] %s6833_s9 }
  0x44   :  { %8059 = sst [smem:[#allocation77_spill]] %s6838_s12 }
  0x45   :  { %8061 = sst [smem:[#allocation79_spill]] %s6848_s24 }
  0x46   :  { %s6853_s19 = sld [smem:[%s7953_s0 + %s6622_s7]]   ;;  %s6626_s7 = smov 40  }
  0x47   :  { %s6858_s13 = sld [smem:[%s7953_s0 + %s6623_s15]]   ;;  %s6627_s15 = smov 41  }
  0x48   :  { %8060 = sst [smem:[#allocation78_spill]] %s6843_s27 }
  0x49   :  { %s6863_s27 = sld [smem:[%s7953_s0 + %s6624_s22]]   ;;  %s6628_s22 = smov 42  }
  0x4a   :  { %s6868_s14 = sld [smem:[%s7953_s0 + %s6625_s28]]   ;;  %s6629_s28 = smov 43  }
  0x4b   :  { %s6878_s23 = sld [smem:[%s7953_s0 + %s6627_s15]]   ;;  %s6631_s15 = smov 45  }
  0x4c   :  { %8062 = sst [smem:[#allocation80_spill]] %s6853_s19 }
  0x4d   :  { %8063 = sst [smem:[#allocation81_spill]] %s6858_s13 }
  0x4e   :  { %s6873_s19 = sld [smem:[%s7953_s0 + %s6626_s7]]   ;;  %s6630_s7 = smov 44  }
  0x4f   :  { %8064 = sst [smem:[#allocation82_spill]] %s6863_s27 }
  0x50   :  { %8065 = sst [smem:[#allocation83_spill]] %s6868_s14 }
  0x51   :  { %8067 = sst [smem:[#allocation85_spill]] %s6878_s23 }
  0x52   :  { %s6883_s1 = sld [smem:[%s7953_s0 + %s6628_s22]]  }
  0x53   :  { %s6888_s10 = sld [smem:[%s7953_s0 + %s6629_s28]]   ;;  %s6633_s28 = smov 47  }
  0x54   :  { %8066 = sst [smem:[#allocation84_spill]] %s6873_s19 }
  0x55   :  { %s6893_s16 = sld [smem:[%s7953_s0 + %s6630_s7]]   ;;  %s6634_s7 = smov 48  }
  0x56   :  { %s6898_s25 = sld [smem:[%s7953_s0 + %s6631_s15]]   ;;  %s108_s15 = sshll.u32 %s6683_s5, 4  ;;  %s109_s15 = int_to_ptr.vmem [resolvable:$true] %s108_s15 }
  0x57   :  { %s6908_s19 = sld [smem:[%s7953_s0 + %s6633_s28]]   ;;  %s5911_s28 = sshra.s32 %s109_s15, 4  ;;  %s5912_s28 = int_to_ptr.vmem [resolvable:$true] %s5911_s28 }
  0x58   :  { %8068 = sst [smem:[#allocation86_spill]] %s6883_s1  ;;  %s5913_s2 = scalar_lea.vmem %s5912_s28, 2 }
  0x59   :  { %8069 = sst [smem:[#allocation87_spill]] %s6888_s10  ;;  %p5914_p0 = scmp.ne.s32.totalorder %s5912_s28, %s5913_s2 }
  0x5a   :  { %s6913_s21 = sld [smem:[%s7953_s0 + %s6634_s7]]   ;;  %p5916_p1 = scmp.lt.s32.totalorder %s5912_s28, %s6683_s5 }
  0x5b   :  { %8070 = sst [smem:[#allocation88_spill]] %s6893_s16  ;;  %p5917_p2 = scmp.lt.s32.totalorder %s5915_s17, %s5913_s2 }
  0x5c   :  { %8071 = sst [smem:[#allocation89_spill]] %s6898_s25 }
  0x5d   :  { %8073 = sst [smem:[#allocation91_spill]] %s6908_s19  ;;  %p5918_p3 = por %p5917_p2, %p5916_p1 }
  0x5e   :  { %s6924_s1 = sld [smem:[%s7953_s0 + %s6636_s26]]  }
  0x5f   :  { %p5919_p4 = pnand %p5918_p3, %p5914_p0 }
  0x60   :  { %8074 = sst [smem:[#allocation92_spill]] %s6913_s21 }
  0x64   :  { %8076 = sst [smem:[#allocation94_spill]] %s6924_s1 }
  0x65   :  { %5922 = shalt.err (!%p5919_p4)  }
  0x66   :  { %s6637_s25 = smov [#allocation3]   ;;  %s6638_s7 = smov 1  }
  0x67   :  { %111 = dma.vmem_to_smem %s109_s15, 32, %s6637_s25, [#allocation2] }
  0x68   :  { %s5124_s22 = sld [smem:[%s7953_s0 + %s6638_s7]]   ;;  %s6639_s10 = smov 2  }
  0x69   :  { %s5125_s1 = sld [smem:[%s7953_s0 + %s6639_s10]]  }
  0x6e   :  { %s113_s21 = sshll.u32 %s5124_s22, 4  ;;  %s5927_s2 = scalar_lea.vmem %s5124_s22, 2  ;;  %s114_s21 = int_to_ptr.vmem [resolvable:$true] %s113_s21 }
  0x6f   :  { %s118_s29 = sshll.u32 %s5125_s1, 4  ;;  %s5923_s5 = sshra.s32 %s114_s21, 4  ;;  %s5924_s5 = int_to_ptr.vmem [resolvable:$true] %s5923_s5  ;;  %s119_s29 = int_to_ptr.vmem [resolvable:$true] %s118_s29 }
  0x70   :  { %s5925_s28 = scalar_lea.vmem %s5924_s5, 2  ;;  %p5928_p6 = scmp.lt.s32.totalorder %s5924_s5, %s5124_s22 }
  0x71   :  { %p5926_p5 = scmp.ne.s32.totalorder %s5924_s5, %s5925_s28  ;;  %p5929_p7 = scmp.lt.s32.totalorder %s5927_s2, %s5925_s28 }
  0x73   :  { %p5930_p8 = por %p5929_p7, %p5928_p6 }
  0x75   :  { %p5931_p9 = pnand %p5930_p8, %p5926_p5 }
  0x77   :  { %5934 = shalt.err (!%p5931_p9)  }
  0x78   :  { %s6640_s15 = smov [#allocation4]   ;;  %s5935_s17 = sshra.s32 %s119_s29, 4  ;;  %s5936_s17 = int_to_ptr.vmem [resolvable:$true] %s5935_s17 }
  0x79   :  { %116 = dma.vmem_to_smem %s114_s21, 32, %s6640_s15, [#allocation2] }
  0x7a   :  { %s5937_s25 = scalar_lea.vmem %s5936_s17, 1  ;;  %s5939_s0 = scalar_lea.vmem %s5125_s1, 1 }
  0x7b   :  { %p5938_p10 = scmp.ne.s32.totalorder %s5936_s17, %s5937_s25  ;;  %p5940_p11 = scmp.lt.s32.totalorder %s5936_s17, %s5125_s1 }
  0x7c   :  { %p5941_p12 = scmp.lt.s32.totalorder %s5939_s0, %s5937_s25 }
  0x7e   :  { %p5942_p13 = por %p5941_p12, %p5940_p11 }
  0x80   :  { %p5943_p0 = pnand %p5942_p13, %p5938_p10 }
  0x82   :  { %5946 = shalt.err (!%p5943_p0)  }
  0x83   :  { %s6641_s7 = smov [#allocation5]  }
  0x84   :  { %121 = dma.vmem_to_smem %s119_s29, 16, %s6641_s7, [#allocation2] }
  0x85   :  { %6527 = dma.done.wait [#allocation2], 80 }
  0x86   :  { %6528 = vsyncadd [#allocation2], 4294967216 }
  0x87   :  { %124 = sfence }
  0x88   :  { %125 = vsyncpa [#allocation7], 0 }
  0x89   :  { %126 = vsyncpa [#allocation10], 0 }
  0x8a   :  { %127 = vsyncpa [#allocation13], 0 }
  0x8b   :  { %128 = vsyncpa [#allocation16], 0 }
  0x8c   :  { %129 = vsyncpa [#allocation19], 0 }
  0x8d   :  { %130 = vsyncpa [#allocation22], 0 }
  0x8e   :  { %131 = vsyncpa [#allocation25], 0 }
  0x8f   :  { %132 = vsyncpa [#allocation28], 0 }
  0x90   :  { %133 = vsyncpa [#allocation31], 0 }
  0x91   :  { %134 = vsyncpa [#allocation8], 0 }
  0x92   :  { %136 = vsyncpa [#allocation8 + $0x1], 0 }
  0x93   :  { %137 = vsyncpa [#allocation34], 0 }
  0x94   :  { %139 = vsyncpa [#allocation34 + $0x1], 0  ;;  %s6934_s21 = smov 0   ;;  %s6936_s1 = smov 0  }
  0x95   :  { %s6938_s29 = smov 0   ;;  %s6940_s11 = smov 0  }
  0x96 LB: > { %s8077_s27 = sld [smem:[#allocation82_spill]]  ;;  %s6955_s18 = sadd.s32 4294967295, %s6587_s11   ;;  %s6575_s21 = sphi %s6934_s21, %s8154_s21   ;;  %s6587_s11 = sphi %s6940_s11, %s8151_s11   ;;  %s6583_s29 = sphi %s6938_s29, %s8153_s29   ;;  %s6579_s1 = sphi %s6936_s1, %s8155_s1  }
  0x97   : > { %s8078_s24 = sld [smem:[#allocation79_spill]]  ;;  %s7978_s22 = sadd.s32 4294967294, %s6587_s11  }
  0x98   : > { %s8079_s23 = sld [smem:[#allocation85_spill]]  ;;  %s6959_s10 = sadd.s32 1, %s6587_s11  }
  0x99   : > { %s8080_s19 = sld [smem:[#allocation91_spill]]  ;;  %s1107_s8 = sadd.s32 1, %s6583_s29 }
  0x9a   : > { %s8081_s16 = sld [smem:[#allocation88_spill]]  ;;  %s1104_s26 = ssub.s32 %s6587_s11, %s6959_s10 }
  0x9b   : > { %s8082_s14 = sld [smem:[#allocation83_spill]]  ;;  %p1117_p1 = scmp.ne.s32.totalorder %s6583_s29, %s6579_s1 }
  0x9c   : > { %s8083_s13 = sld [smem:[#allocation81_spill]]  ;;  %p1105_p2 = scmp.eq.s32.totalorder %s1104_s26, 0 }
  0x9d   : > { %s8084_s12 = sld [smem:[#allocation77_spill]]  ;;  %p1118_p3 = scmp.eq.s32.totalorder %s6955_s18, 1 }
  0x9e   : > { %s8085_s9 = sld [smem:[#allocation76_spill]]  ;;  %p1123_p4 = scmp.ne.s32.totalorder %s6579_s1, %s6575_s21 }
  0x9f   : > { %s8086_s6 = sld [smem:[#allocation74_spill]]  ;;  %p1124_p5 = scmp.eq.s32.totalorder %s7978_s22, 1 }
  0xa0   : > { %s8087_s4 = sld [smem:[#allocation64_spill]]  ;;  %p6974_p6 = por %p1118_p3, %p1117_p1 }
  0xa1   : > { %s8088_s3 = sld [smem:[#allocation54_spill]]  ;;  %p6978_p7 = por %p1124_p5, %p1123_p4 }
  0xa2   : > { %s8089_s20 = sld [smem:[#allocation62_spill]]  ;;  %p5176_p8 = scmp.ge.s32.totalorder %s6587_s11, 1 }
  0xa3   : > { %8090 = sst [smem:[#allocation95_spill]] %s6575_s21  ;;  %p1183_p9 = scmp.lt.s32.totalorder %s6587_s11, 3 }
  0xa4   : > { %8091 = sst [smem:[#allocation96_spill]] %s6583_s29  ;;  %p5535_p10 = scmp.eq.s32.totalorder %s6955_s18, 0 }
  0xa5   : > { %8092 = sst [smem:[#allocation97_spill]] %s6959_s10  ;;  %p6985_p11 = pnand %p5176_p8, %p1183_p9 }
  0xa6   : > { %s6972_s5 = scalar_select %p1105_p2, %s6583_s29, %s1107_s8  }
  0xa7   : > { %s8095_s2 = scalar_select %p6978_p7, 1, 0 }
  0xa8   : > { %8093 = sst [smem:[#allocation98_spill]] %s6972_s5  ;;  %s1239_s17 = sshll.u32 %s8089_s20, 4  ;;  %s1240_s17 = int_to_ptr.hbm [resolvable:$true] %s1239_s17 }
  0xa9   : > { %8096 = sst [smem:[#allocation99_spill]] %s8095_s2  ;;  %p5476_p12 = pneg %p6985_p11 }
  0xaa   : > { %s6642_s25 = smov [#allocation9]   ;;  %s1297_s8 = sshll.u32 %s8086_s6, 4  ;;  %s6999_s8 = int_to_ptr.hbm [resolvable:$true] %s1297_s8 }
  0xab   : > { %s1241_s0 = sshll.u32 %s6642_s25, 4  ;;  %p6994_p13 = pnand %p5535_p10, %p5476_p12  ;;  %s1242_s0 = int_to_ptr.vmem [resolvable:$true] %s1241_s0 }
  0xac   : > { %s5947_s26 = sshra.s32 %s1240_s17, 4  ;;  %s5954_s25 = scalar_lea.hbm %s8089_s20, 2  ;;  %s5948_s26 = int_to_ptr.hbm [resolvable:$true] %s5947_s26 }
  0xad   : > { %s5949_s22 = scalar_lea.hbm %s5948_s26, 2  ;;  %p7003_p1 = pneg %p6994_p13 }
  0xae   : > { %p5950_p0 = scmp.ne.s32.totalorder %s5948_s26, %s5949_s22  ;;  %p5955_p4 = scmp.lt.s32.totalorder %s5948_s26, %s8089_s20 }
  0xaf   : > { %p5956_p5 = scmp.lt.s32.totalorder %s5954_s25, %s5949_s22 }
  0xb0   : > { %p5952_p2 = pnand %p7003_p1, %p5950_p0 }
  0xb1   : > { %p5957_p8 = por %p5956_p5, %p5955_p4 }
  0xb2   : > { %p5953_p3 = pneg %p5952_p2 }
  0xb4   : > { %p5958_p9 = pnand %p5957_p8, %p5953_p3 }
  0xb6   : > { %5961 = shalt.err (!%p5958_p9)
}
  0xb7   : > { %s6643_s29 = smov 16   ;;  %s6644_s10 = smov 1  }
  0xb8   : > { %5482 = dma.hbm_to_vmem [thread:$0]  (!%p6994_p13), %s1240_s17, 32, %s1242_s0, [#allocation10], %s6643_s29, %s6643_s29, %s6644_s10  }
  0xb9   : > { %s6645_s2 = smov [#allocation12]   ;;  %s1328_s26 = sshll.u32 %s8085_s9, 4  ;;  %s7017_s26 = int_to_ptr.hbm [resolvable:$true] %s1328_s26 }
  0xba   : > { %s1299_s21 = sshll.u32 %s6645_s2, 4  ;;  %s5977_s22 = sshra.s32 %s6999_s8, 4  ;;  %s1300_s21 = int_to_ptr.vmem [resolvable:$true] %s1299_s21  ;;  %s5978_s22 = int_to_ptr.hbm [resolvable:$true] %s5977_s22 }
  0xbb   : > { %s5979_s25 = scalar_lea.hbm %s5978_s22, 2  ;;  %s5984_s20 = scalar_lea.hbm %s8086_s6, 2 }
  0xbc   : > { %p5980_p12 = scmp.ne.s32.totalorder %s5978_s22, %s5979_s25  ;;  %p5985_p3 = scmp.lt.s32.totalorder %s5978_s22, %s8086_s6 }
  0xbd   : > { %p5986_p4 = scmp.lt.s32.totalorder %s5984_s20, %s5979_s25 }
  0xbe   : > { %p5982_p0 = pnand %p5980_p12, %p7003_p1 }
  0xbf   : > { %p5987_p5 = por %p5986_p4, %p5985_p3 }
  0xc0   : > { %p5983_p2 = pneg %p5982_p0 }
  0xc2   : > { %p5988_p8 = pnand %p5987_p5, %p5983_p2 }
  0xc4   : > { %5991 = shalt.err (!%p5988_p8)
}
  0xc5   : > { %5488 = dma.hbm_to_vmem [thread:$0]  (!%p6994_p13), %s6999_s8, 32, %s1300_s21, [#allocation13], %s6643_s29, %s6643_s29, %s6644_s10  }
  0xc6   : > { %s1359_s2 = sshll.u32 %s8078_s24, 4  ;;  %s6646_s17 = smov [#allocation15]   ;;  %s7031_s2 = int_to_ptr.hbm [resolvable:$true] %s1359_s2 }
  0xc7   : > { %s1330_s0 = sshll.u32 %s6646_s17, 4  ;;  %s6007_s20 = sshra.s32 %s7017_s26, 4  ;;  %s1331_s0 = int_to_ptr.vmem [resolvable:$true] %s1330_s0  ;;  %s6008_s20 = int_to_ptr.hbm [resolvable:$true] %s6007_s20 }
  0xc8   : > { %s6009_s22 = scalar_lea.hbm %s6008_s20, 2  ;;  %s6014_s25 = scalar_lea.hbm %s8085_s9, 2 }
  0xc9   : > { %p6010_p9 = scmp.ne.s32.totalorder %s6008_s20, %s6009_s22  ;;  %p6015_p2 = scmp.lt.s32.totalorder %s6008_s20, %s8085_s9 }
  0xca   : > { %p6016_p3 = scmp.lt.s32.totalorder %s6014_s25, %s6009_s22 }
  0xcb   : > { %p6012_p12 = pnand %p6010_p9, %p7003_p1 }
  0xcc   : > { %p6017_p4 = por %p6016_p3, %p6015_p2 }
  0xcd   : > { %p6013_p0 = pneg %p6012_p12 }
  0xcf   : > { %p6018_p5 = pnand %p6017_p4, %p6013_p0 }
  0xd1   : > { %6021 = shalt.err (!%p6018_p5)
}
  0xd2   : > { %5494 = dma.hbm_to_vmem [thread:$0]  (!%p6994_p13), %s7017_s26, 32, %s1331_s0, [#allocation16], %s6643_s29, %s6643_s29, %s6644_s10  }
  0xd3   : > { %s6647_s21 = smov [#allocation18]   ;;  %s1390_s17 = sshll.u32 %s8077_s27, 4  ;;  %s7045_s17 = int_to_ptr.hbm [resolvable:$true] %s1390_s17 }
  0xd4   : > { %s1361_s8 = sshll.u32 %s6647_s21, 4  ;;  %s6037_s20 = sshra.s32 %s7031_s2, 4  ;;  %s1362_s8 = int_to_ptr.vmem [resolvable:$true] %s1361_s8  ;;  %s6038_s20 = int_to_ptr.hbm [resolvable:$true] %s6037_s20 }
  0xd5   : > { %s6039_s22 = scalar_lea.hbm %s6038_s20, 2  ;;  %s6044_s25 = scalar_lea.hbm %s8078_s24, 2 }
  0xd6   : > { %p6040_p8 = scmp.ne.s32.totalorder %s6038_s20, %s6039_s22  ;;  %p6045_p0 = scmp.lt.s32.totalorder %s6038_s20, %s8078_s24 }
  0xd7   : > { %p6046_p2 = scmp.lt.s32.totalorder %s6044_s25, %s6039_s22 }
  0xd8   : > { %p6042_p9 = pnand %p6040_p8, %p7003_p1 }
  0xd9   : > { %p6047_p3 = por %p6046_p2, %p6045_p0 }
  0xda   : > { %p6043_p12 = pneg %p6042_p9 }
  0xdc   : > { %p6048_p4 = pnand %p6047_p3, %p6043_p12 }
  0xde   : > { %6051 = shalt.err (!%p6048_p4)
}
  0xdf   : > { %5500 = dma.hbm_to_vmem [thread:$0]  (!%p6994_p13), %s7031_s2, 32, %s1362_s8, [#allocation19], %s6643_s29, %s6643_s29, %s6644_s10  }
  0xe0   : > { %s1422_s26 = sshll.u32 %s8079_s23, 4  ;;  %s6648_s0 = smov [#allocation21]   ;;  %s7059_s26 = int_to_ptr.hbm [resolvable:$true] %s1422_s26 }
  0xe1   : > { %s1392_s21 = sshll.u32 %s6648_s0, 4  ;;  %s6067_s20 = sshra.s32 %s7045_s17, 4  ;;  %s1393_s21 = int_to_ptr.vmem [resolvable:$true] %s1392_s21  ;;  %s6068_s20 = int_to_ptr.hbm [resolvable:$true] %s6067_s20 }
  0xe2   : > { %s6069_s22 = scalar_lea.hbm %s6068_s20, 2  ;;  %s6074_s25 = scalar_lea.hbm %s8077_s27, 2 }
  0xe3   : > { %p6070_p5 = scmp.ne.s32.totalorder %s6068_s20, %s6069_s22  ;;  %p6075_p12 = scmp.lt.s32.totalorder %s6068_s20, %s8077_s27 }
  0xe4   : > { %p6076_p0 = scmp.lt.s32.totalorder %s6074_s25, %s6069_s22 }
  0xe5   : > { %p6072_p8 = pnand %p6070_p5, %p7003_p1 }
  0xe6   : > { %p6077_p2 = por %p6076_p0, %p6075_p12 }
  0xe7   : > { %p6073_p9 = pneg %p6072_p8 }
  0xe9   : > { %p6078_p3 = pnand %p6077_p2, %p6073_p9 }
  0xeb   : > { %6081 = shalt.err (!%p6078_p3)
}
  0xec   : > { %5506 = dma.hbm_to_vmem [thread:$0]  (!%p6994_p13), %s7045_s17, 32, %s1393_s21, [#allocation22], %s6643_s29, %s6643_s29, %s6644_s10  }
  0xed   : > { %s6649_s2 = smov [#allocation24]   ;;  %s1449_s0 = sshll.u32 %s8081_s16, 4  ;;  %s7073_s0 = int_to_ptr.hbm [resolvable:$true] %s1449_s0 }
  0xee   : > { %s1424_s8 = sshll.u32 %s6649_s2, 4  ;;  %s6097_s20 = sshra.s32 %s7059_s26, 4  ;;  %s1425_s8 = int_to_ptr.vmem [resolvable:$true] %s1424_s8  ;;  %s6098_s20 = int_to_ptr.hbm [resolvable:$true] %s6097_s20 }
  0xef   : > { %s6099_s22 = scalar_lea.hbm %s6098_s20, 1  ;;  %s6104_s25 = scalar_lea.hbm %s8079_s23, 1 }
  0xf0   : > { %p6100_p4 = scmp.ne.s32.totalorder %s6098_s20, %s6099_s22  ;;  %p6105_p9 = scmp.lt.s32.totalorder %s6098_s20, %s8079_s23 }
  0xf1   : > { %p6106_p12 = scmp.lt.s32.totalorder %s6104_s25, %s6099_s22 }
  0xf2   : > { %p6102_p5 = pnand %p6100_p4, %p7003_p1 }
  0xf3   : > { %p6107_p0 = por %p6106_p12, %p6105_p9 }
  0xf4   : > { %p6103_p8 = pneg %p6102_p5 }
  0xf6   : > { %p6108_p2 = pnand %p6107_p0, %p6103_p8 }
  0xf8   : > { %6111 = shalt.err (!%p6108_p2)
}
  0xf9   : > { %5512 = dma.hbm_to_vmem [thread:$0]  (!%p6994_p13), %s7059_s26, 16, %s1425_s8, [#allocation25]  }
  0xfa   : > { %s1207_s17 = sshll.u32 %s8088_s3, 4  ;;  %s6650_s21 = smov [#allocation27]   ;;  %s7084_s17 = int_to_ptr.hbm [resolvable:$true] %s1207_s17 }
  0xfb   : > { %s1451_s2 = sshll.u32 %s6650_s21, 4  ;;  %s6127_s20 = sshra.s32 %s7073_s0, 4  ;;  %s1452_s2 = int_to_ptr.vmem [resolvable:$true] %s1451_s2  ;;  %s6128_s20 = int_to_ptr.hbm [resolvable:$true] %s6127_s20 }
  0xfc   : > { %s6129_s22 = scalar_lea.hbm %s6128_s20, 1  ;;  %s6134_s25 = scalar_lea.hbm %s8081_s16, 1 }
  0xfd   : > { %p6130_p3 = scmp.ne.s32.totalorder %s6128_s20, %s6129_s22  ;;  %p6135_p8 = scmp.lt.s32.totalorder %s6128_s20, %s8081_s16 }
  0xfe   : > { %p6136_p9 = scmp.lt.s32.totalorder %s6134_s25, %s6129_s22 }
  0xff   : > { %p6132_p4 = pnand %p6130_p3, %p7003_p1 }
 0x100   : > { %p6137_p12 = por %p6136_p9, %p6135_p8 }
 0x101   : > { %p6133_p5 = pneg %p6132_p4 }
 0x103   : > { %p6138_p0 = pnand %p6137_p12, %p6133_p5 }
 0x105   : > { %6141 = shalt.err (!%p6138_p0)
}
 0x106   : > { %5518 = dma.hbm_to_vmem [thread:$0]  (!%p6994_p13), %s7073_s0, 16, %s1452_s2, [#allocation28]  }
 0x107   : > { %s6651_s26 = smov [#allocation6]   ;;  %s1256_s21 = sshll.u32 %s8087_s4, 4  ;;  %s7095_s21 = int_to_ptr.hbm [resolvable:$true] %s1256_s21 }
 0x108   : > { %s1209_s8 = sshll.u32 %s6651_s26, 4  ;;  %s6157_s20 = sshra.s32 %s7084_s17, 4  ;;  %s1210_s8 = int_to_ptr.vmem [resolvable:$true] %s1209_s8  ;;  %s6158_s20 = int_to_ptr.hbm [resolvable:$true] %s6157_s20 }
 0x109   : > { %s6159_s22 = scalar_lea.hbm %s6158_s20, 1  ;;  %s6164_s25 = scalar_lea.hbm %s8088_s3, 1 }
 0x10a   : > { %p6160_p2 = scmp.ne.s32.totalorder %s6158_s20, %s6159_s22  ;;  %p6165_p5 = scmp.lt.s32.totalorder %s6158_s20, %s8088_s3 }
 0x10b   : > { %p6166_p8 = scmp.lt.s32.totalorder %s6164_s25, %s6159_s22 }
 0x10c   : > { %p6162_p3 = pnand %p6160_p2, %p7003_p1 }
 0x10d   : > { %p6167_p9 = por %p6166_p8, %p6165_p5 }
 0x10e   : > { %p6163_p4 = pneg %p6162_p3 }
 0x110   : > { %p6168_p12 = pnand %p6167_p9, %p6163_p4 }
 0x112   : > { %6171 = shalt.err (!%p6168_p12)
}
 0x113   : > { %5479 = dma.hbm_to_vmem [thread:$0]  (!%p6994_p13), %s7084_s17, 16, %s1210_s8, [#allocation7]  }
 0x114   : > { %s1314_s0 = sshll.u32 %s6828_s30, 4  ;;  %s6652_s2 = smov [#allocation11]   ;;  %s7106_s0 = int_to_ptr.hbm [resolvable:$true] %s1314_s0 }
 0x115   : > { %s1258_s26 = sshll.u32 %s6652_s2, 4  ;;  %s6187_s20 = sshra.s32 %s7095_s21, 4  ;;  %s1259_s26 = int_to_ptr.vmem [resolvable:$true] %s1258_s26  ;;  %s6188_s20 = int_to_ptr.hbm [resolvable:$true] %s6187_s20 }
 0x116   : > { %s6189_s22 = scalar_lea.hbm %s6188_s20, 2  ;;  %s6194_s25 = scalar_lea.hbm %s8087_s4, 2 }
 0x117   : > { %p6190_p0 = scmp.ne.s32.totalorder %s6188_s20, %s6189_s22  ;;  %p6195_p4 = scmp.lt.s32.totalorder %s6188_s20, %s8087_s4 }
 0x118   : > { %p6196_p5 = scmp.lt.s32.totalorder %s6194_s25, %s6189_s22 }
 0x119   : > { %p6192_p2 = pnand %p6190_p0, %p7003_p1 }
 0x11a   : > { %p6197_p8 = por %p6196_p5, %p6195_p4 }
 0x11b   : > { %p6193_p3 = pneg %p6192_p2 }
 0x11d   : > { %p6198_p9 = pnand %p6197_p8, %p6193_p3 }
 0x11f   : > { %6201 = shalt.err (!%p6198_p9)
}
 0x120   : > { %5485 = dma.hbm_to_vmem [thread:$0]  (!%p6994_p13), %s7095_s21, 32, %s1259_s26, [#allocation10], %s6643_s29, %s6643_s29, %s6644_s10  }
 0x121   : > { %s6653_s17 = smov [#allocation14]   ;;  %s1342_s2 = sshll.u32 %s8084_s12, 4  ;;  %s7120_s2 = int_to_ptr.hbm [resolvable:$true] %s1342_s2 }
 0x122   : > { %s1316_s8 = sshll.u32 %s6653_s17, 4  ;;  %s6217_s20 = sshra.s32 %s7106_s0, 4  ;;  %s1317_s8 = int_to_ptr.vmem [resolvable:$true] %s1316_s8  ;;  %s6218_s20 = int_to_ptr.hbm [resolvable:$true] %s6217_s20 }
 0x123   : > { %s6219_s22 = scalar_lea.hbm %s6218_s20, 2  ;;  %s6224_s25 = scalar_lea.hbm %s6828_s30, 2 }
 0x124   : > { %p6220_p12 = scmp.ne.s32.totalorder %s6218_s20, %s6219_s22  ;;  %p6225_p3 = scmp.lt.s32.totalorder %s6218_s20, %s6828_s30 }
 0x125   : > { %p6226_p4 = scmp.lt.s32.totalorder %s6224_s25, %s6219_s22 }
 0x126   : > { %p6222_p0 = pnand %p6220_p12, %p7003_p1 }
 0x127   : > { %p6227_p5 = por %p6226_p4, %p6225_p3 }
 0x128   : > { %p6223_p2 = pneg %p6222_p0 }
 0x12a   : > { %p6228_p8 = pnand %p6227_p5, %p6223_p2 }
 0x12c   : > { %6231 = shalt.err (!%p6228_p8)
}
 0x12d   : > { %5491 = dma.hbm_to_vmem [thread:$0]  (!%p6994_p13), %s7106_s0, 32, %s1317_s8, [#allocation13], %s6643_s29, %s6643_s29, %s6644_s10  }
 0x12e   : > { %s1376_s21 = sshll.u32 %s8083_s13, 4  ;;  %s6654_s26 = smov [#allocation17]   ;;  %s7134_s21 = int_to_ptr.hbm [resolvable:$true] %s1376_s21 }
 0x12f   : > { %s1344_s17 = sshll.u32 %s6654_s26, 4  ;;  %s6247_s20 = sshra.s32 %s7120_s2, 4  ;;  %s1345_s17 = int_to_ptr.vmem [resolvable:$true] %s1344_s17  ;;  %s6248_s20 = int_to_ptr.hbm [resolvable:$true] %s6247_s20 }
 0x130   : > { %s6249_s22 = scalar_lea.hbm %s6248_s20, 2  ;;  %s6254_s25 = scalar_lea.hbm %s8084_s12, 2 }
 0x131   : > { %p6250_p9 = scmp.ne.s32.totalorder %s6248_s20, %s6249_s22  ;;  %p6255_p2 = scmp.lt.s32.totalorder %s6248_s20, %s8084_s12 }
 0x132   : > { %p6256_p3 = scmp.lt.s32.totalorder %s6254_s25, %s6249_s22 }
 0x133   : > { %p6252_p12 = pnand %p6250_p9, %p7003_p1 }
 0x134   : > { %p6257_p4 = por %p6256_p3, %p6255_p2 }
 0x135   : > { %p6253_p0 = pneg %p6252_p12 }
 0x137   : > { %p6258_p5 = pnand %p6257_p4, %p6253_p0 }
 0x139   : > { %6261 = shalt.err (!%p6258_p5)
}
 0x13a   : > { %5497 = dma.hbm_to_vmem [thread:$0]  (!%p6994_p13), %s7120_s2, 32, %s1345_s17, [#allocation16], %s6643_s29, %s6643_s29, %s6644_s10  }
 0x13b   : > { %s6655_s0 = smov [#allocation20]   ;;  %s1404_s26 = sshll.u32 %s8082_s14, 4  ;;  %s7148_s26 = int_to_ptr.hbm [resolvable:$true] %s1404_s26 }
 0x13c   : > { %s1378_s8 = sshll.u32 %s6655_s0, 4  ;;  %s6277_s20 = sshra.s32 %s7134_s21, 4  ;;  %s1379_s8 = int_to_ptr.vmem [resolvable:$true] %s1378_s8  ;;  %s6278_s20 = int_to_ptr.hbm [resolvable:$true] %s6277_s20 }
 0x13d   : > { %s6279_s22 = scalar_lea.hbm %s6278_s20, 2  ;;  %s6284_s25 = scalar_lea.hbm %s8083_s13, 2 }
 0x13e   : > { %p6280_p8 = scmp.ne.s32.totalorder %s6278_s20, %s6279_s22  ;;  %p6285_p0 = scmp.lt.s32.totalorder %s6278_s20, %s8083_s13 }
 0x13f   : > { %p6286_p2 = scmp.lt.s32.totalorder %s6284_s25, %s6279_s22 }
 0x140   : > { %p6282_p9 = pnand %p6280_p8, %p7003_p1 }
 0x141   : > { %p6287_p3 = por %p6286_p2, %p6285_p0 }
 0x142   : > { %p6283_p12 = pneg %p6282_p9 }
 0x144   : > { %p6288_p4 = pnand %p6287_p3, %p6283_p12 }
 0x146   : > { %6291 = shalt.err (!%p6288_p4)
}
 0x147   : > { %s8100_s2 = sld [smem:[#allocation87_spill]]  ;;  %s6656_s0 = smov [#allocation23]  }
 0x148   : > { %5503 = dma.hbm_to_vmem [thread:$0]  (!%p6994_p13), %s7134_s21, 32, %s1379_s8, [#allocation19], %s6643_s29, %s6643_s29, %s6644_s10  }
 0x149   : > { %s1406_s3 = sshll.u32 %s6656_s0, 4  ;;  %s6307_s20 = sshra.s32 %s7148_s26, 4  ;;  %s1407_s3 = int_to_ptr.vmem [resolvable:$true] %s1406_s3  ;;  %s6308_s20 = int_to_ptr.hbm [resolvable:$true] %s6307_s20 }
 0x14a   : > { %s6309_s22 = scalar_lea.hbm %s6308_s20, 2  ;;  %s6314_s25 = scalar_lea.hbm %s8082_s14, 2 }
 0x14b   : > { %p6310_p5 = scmp.ne.s32.totalorder %s6308_s20, %s6309_s22  ;;  %p6315_p12 = scmp.lt.s32.totalorder %s6308_s20, %s8082_s14 }
 0x14c   : > { %p6316_p0 = scmp.lt.s32.totalorder %s6314_s25, %s6309_s22 }
 0x14d   : > { %s1437_s17 = sshll.u32 %s8100_s2, 4  ;;  %p6312_p8 = pnand %p6310_p5, %p7003_p1  ;;  %s7162_s17 = int_to_ptr.hbm [resolvable:$true] %s1437_s17 }
 0x14e   : > { %p6317_p2 = por %p6316_p0, %p6315_p12 }
 0x14f   : > { %p6313_p9 = pneg %p6312_p8 }
 0x151   : > { %p6318_p3 = pnand %p6317_p2, %p6313_p9 }
 0x153   : > { %6321 = shalt.err (!%p6318_p3)
}
 0x154   : > { %s8101_s21 = sld [smem:[#allocation89_spill]]  ;;  %s6657_s0 = smov [#allocation26]  }
 0x155   : > { %5509 = dma.hbm_to_vmem [thread:$0]  (!%p6994_p13), %s7148_s26, 32, %s1407_s3, [#allocation22], %s6643_s29, %s6643_s29, %s6644_s10  }
 0x156   : > { %s1439_s4 = sshll.u32 %s6657_s0, 4  ;;  %s6337_s20 = sshra.s32 %s7162_s17, 4  ;;  %s1440_s4 = int_to_ptr.vmem [resolvable:$true] %s1439_s4  ;;  %s6338_s20 = int_to_ptr.hbm [resolvable:$true] %s6337_s20 }
 0x157   : > { %s6339_s22 = scalar_lea.hbm %s6338_s20, 1  ;;  %s6344_s25 = scalar_lea.hbm %s8100_s2, 1 }
 0x158   : > { %p6340_p4 = scmp.ne.s32.totalorder %s6338_s20, %s6339_s22  ;;  %p6345_p9 = scmp.lt.s32.totalorder %s6338_s20, %s8100_s2 }
 0x159   : > { %p6346_p12 = scmp.lt.s32.totalorder %s6344_s25, %s6339_s22 }
 0x15a   : > { %s8102_s8 = smov %s8101_s21  ;;  %s1461_s6 = sshll.u32 %s8101_s21, 4  ;;  %s7176_s6 = int_to_ptr.hbm [resolvable:$true] %s1461_s6 }
 0x15b   : > { %p6342_p5 = pnand %p6340_p4, %p7003_p1  ;;  %p6347_p0 = por %p6346_p12, %p6345_p9 }
 0x15d   : > { %p6343_p8 = pneg %p6342_p5 }
 0x15f   : > { %p6348_p2 = pnand %p6347_p0, %p6343_p8 }
 0x161   : > { %6351 = shalt.err (!%p6348_p2)
}
 0x162   : > { %5515 = dma.hbm_to_vmem [thread:$0]  (!%p6994_p13), %s7162_s17, 16, %s1440_s4, [#allocation25]  }
 0x163   : > { %s1476_s3 = sshll.u32 %s8080_s19, 4  ;;  %s6658_s29 = smov [#allocation29]   ;;  %s7187_s3 = int_to_ptr.hbm [resolvable:$true] %s1476_s3 }
 0x164   : > { %s1463_s10 = sshll.u32 %s6658_s29, 4  ;;  %s6367_s26 = sshra.s32 %s7176_s6, 4  ;;  %s1464_s10 = int_to_ptr.vmem [resolvable:$true] %s1463_s10  ;;  %s6368_s26 = int_to_ptr.hbm [resolvable:$true] %s6367_s26 }
 0x165   : > { %s6369_s21 = scalar_lea.hbm %s6368_s26, 1  ;;  %s6374_s0 = scalar_lea.hbm %s8102_s8, 1 }
 0x166   : > { %p6370_p3 = scmp.ne.s32.totalorder %s6368_s26, %s6369_s21  ;;  %p6375_p8 = scmp.lt.s32.totalorder %s6368_s26, %s8102_s8 }
 0x167   : > { %p6376_p9 = scmp.lt.s32.totalorder %s6374_s0, %s6369_s21 }
 0x168   : > { %p6372_p4 = pnand %p6370_p3, %p7003_p1 }
 0x169   : > { %p6377_p12 = por %p6376_p9, %p6375_p8 }
 0x16a   : > { %p6373_p5 = pneg %p6372_p4 }
 0x16c   : > { %p6378_p0 = pnand %p6377_p12, %p6373_p5 }
 0x16e   : > { %6381 = shalt.err (!%p6378_p0)
}
 0x16f   : > { %5521 = dma.hbm_to_vmem [thread:$0]  (!%p6994_p13), %s7176_s6, 16, %s1464_s10, [#allocation28]  }
 0x170   : > { %s6659_s4 = smov [#allocation30]   ;;  %s6397_s20 = sshra.s32 %s7187_s3, 4  ;;  %s6398_s20 = int_to_ptr.hbm [resolvable:$true] %s6397_s20 }
 0x171   : > { %s1478_s17 = sshll.u32 %s6659_s4, 4  ;;  %s6399_s22 = scalar_lea.hbm %s6398_s20, 1  ;;  %s1479_s17 = int_to_ptr.vmem [resolvable:$true] %s1478_s17 }
 0x172   : > { %p6400_p2 = scmp.ne.s32.totalorder %s6398_s20, %s6399_s22  ;;  %s6404_s25 = scalar_lea.hbm %s8080_s19, 1 }
 0x173   : > { %p6405_p5 = scmp.lt.s32.totalorder %s6398_s20, %s8080_s19  ;;  %p6406_p8 = scmp.lt.s32.totalorder %s6404_s25, %s6399_s22 }
 0x174   : > { %p6402_p3 = pnand %p6400_p2, %p7003_p1 }
 0x175   : > { %p6407_p9 = por %p6406_p8, %p6405_p5 }
 0x176   : > { %p6403_p4 = pneg %p6402_p3 }
 0x178   : > { %p6408_p12 = pnand %p6407_p9, %p6403_p4 }
 0x17a   : > { %6411 = shalt.err (!%p6408_p12)
}
 0x17b   : > { %5524 = dma.hbm_to_vmem [thread:$0]  (!%p6994_p13), %s7187_s3, 16, %s1479_s17, [#allocation31]  }
 0x17c   : > { %1504 = sbr.rel (%p6985_p11) target bundleno = 9063 (0x2367), region = 200 }
 0x181   : > { %6530 = dma.done.wait (%p5535_p10), [#allocation7], 16  }
 0x182   : > { %6532 = vsyncadd (%p5535_p10), [#allocation7], 4294967280 }
 0x183   : > { %6534 = dma.done.wait (%p5535_p10), [#allocation10], 64  }
 0x184   : > { %6536 = vsyncadd (%p5535_p10), [#allocation10], 4294967232 }
 0x185   : > { %6538 = dma.done.wait (%p5535_p10), [#allocation13], 64  }
 0x186   : > { %6540 = vsyncadd (%p5535_p10), [#allocation13], 4294967232 }
 0x187   : > { %6542 = dma.done.wait (%p5535_p10), [#allocation16], 64  }
 0x188   : > { %6544 = vsyncadd (%p5535_p10), [#allocation16], 4294967232 }
 0x189   : > { %6546 = dma.done.wait (%p5535_p10), [#allocation19], 64  }
 0x18a   : > { %6548 = vsyncadd (%p5535_p10), [#allocation19], 4294967232 }
 0x18b   : > { %6550 = dma.done.wait (%p5535_p10), [#allocation22], 64  }
 0x18c   : > { %6552 = vsyncadd (%p5535_p10), [#allocation22], 4294967232 }
 0x18d   : > { %6554 = dma.done.wait (%p5535_p10), [#allocation25], 32  }
 0x18e   : > { %6556 = vsyncadd (%p5535_p10), [#allocation25], 4294967264 }
 0x18f   : > { %6558 = dma.done.wait (%p5535_p10), [#allocation28], 32  }
 0x190   : > { %6560 = vsyncadd (%p5535_p10), [#allocation28], 4294967264 }
 0x191   : > { %6562 = dma.done.wait (%p5535_p10), [#allocation31], 16  }
 0x192   : > { %6564 = vsyncadd (%p5535_p10), [#allocation31], 4294967280  ;;  %s8103_s6 = sld [smem:[#allocation50_spill]]  ;;  %v1710_v0 = vlaneseq  ;;  %s7244_s5 = sshll.u32 %s6955_s18, 7  ;;  %vm1766_vm0 = vcmask 1043456   ;;  %vm1760_vm1 = vcmask 1040384  }
 0x193   : > { %s1713_s15 = sld [smem:[#allocation3 + %s7244_s5]]  ;;  %s1718_s7 = sadd.s32 1, %s7244_s5  ;;  %vm1762_vm2 = vcmask 1041408   ;;  %vm1764_vm4 = vcmask 1042432   ;;  %vm1768_vm5 = vcmask 1044480   ;;  %v6660_v7 = vmov 0.0  }
 0x194   : > { %s1719_s3 = sld [smem:[#allocation3 + %s1718_s7]]  ;;  %s1724_s29 = sadd.s32 2, %s7244_s5  ;;  %v7252_v1 = vand.u32 127, %v1710_v0  ;;  %vm1770_vm7 = vcmask 1045504   ;;  %vm1772_vm9 = vcmask 1046528   ;;  %vm1835_vm11 = vcmask 15360  }
 0x195   : > { %s7249_s10 = sld [smem:[#allocation3 + %s1724_s29]]  ;;  %s1730_s26 = sadd.s32 3, %s7244_s5 }
 0x196   : > { %s7254_s21 = sld [smem:[#allocation3 + %s1730_s26]]  ;;  %s1736_s17 = sadd.s32 4, %s7244_s5 }
 0x197   : > { %s7257_s0 = sld [smem:[#allocation4 + %s7244_s5]]  ;;  %s1742_s22 = sadd.s32 5, %s7244_s5 }
 0x198   : > { %s7259_s4 = sld [smem:[#allocation4 + %s1718_s7]]  ;;  %v1833_v2 = vld [vmem:[%s8103_s6 + $0x60] sm:$0xf]  ;;  %v1832_v3 = vld [vmem:[%s8103_s6 + $0x58] sm:$0xff]  ;;  %s1748_s7 = sadd.s32 6, %s7244_s5  ;;  %v1831_v6 = vld [vmem:[%s8103_s6 + $0x50] sm:$0xff] }
 0x199   : > { %v1714_v4 = vstv %s1713_s15  ;;  %s7264_s20 = sld [smem:[#allocation4 + %s1724_s29]]  ;;  %5232 = vmatpush.msk.msra.mxu1 %vm1766_vm0, %v1833_v2  ;;  %s1754_s29 = sadd.s32 7, %s7244_s5  ;;  %v1830_v12 = vld [vmem:[%s8103_s6 + $0x48] sm:$0xff]  ;;  %v1829_v13 = vld [vmem:[%s8103_s6 + $0x40] sm:$0xff]  ;;  %v1828_v21 = vld [vmem:[%s8103_s6 + $0x38] sm:$0xff] }
 0x19a   : > { %vm1715_vm3 = vcmp.eq.s32.totalorder %v7252_v1, %v1714_v4  ;;  %v1720_v5 = vstv %s1719_s3  ;;  %s7269_s25 = sld [smem:[#allocation4 + %s1730_s26]]  ;;  %v1827_v33 = vld [vmem:[%s8103_s6 + $0x30] sm:$0xff]  ;;  %v1826_v40 = vld [vmem:[%s8103_s6 + $0x28] sm:$0xff]  ;;  %v1825_v47 = vld [vmem:[%s8103_s6 + $0x20] sm:$0xff]  ;;  %p1702_p10 = scmp.lt.s32.totalorder %s6955_s18, 1 }
 0x19b   : > { %v5214_v8 = vsel %vm1715_vm3, 1.0, %v6660_v7  ;;  %vm1721_vm6 = vcmp.eq.s32.totalorder %v7252_v1, %v1720_v5  ;;  %v1726_v9 = vstv %s7249_s10  ;;  %s8104_s15 = sld [smem:[#allocation52_spill]]  ;;  %1873 = vmatpush.msra.mxu1 %v1832_v3  ;;  %v1824_v51 = vld [vmem:[%s8103_s6 + $0x18] sm:$0xff]  ;;  %v1823_v55 = vld [vmem:[%s8103_s6 + $0x10] sm:$0xff]  ;;  %v1822_v59 = vld [vmem:[%s8103_s6 + $0x8] sm:$0xff]  ;;  %s8120_s2 = smov 96  }
 0x19c   : > { %s7279_s3 = sld [smem:[#allocation4 + %s1736_s17]]  ;;  %v5215_v10 = vsel %vm1721_vm6, 1.0, %v6660_v7  ;;  %vm1727_vm8 = vcmp.eq.s32.totalorder %v7252_v1, %v1726_v9  ;;  %v1732_v11 = vstv %s7254_s21  ;;  %v1821_v61 = vld [vmem:[%s8103_s6] sm:$0xff]  ;;  %s8121_s6 = smov 120  }
 0x19d   : > { %s7286_s26 = sld [smem:[#allocation4 + %s1742_s22]]  ;;  %v5216_v14 = vsel %vm1727_vm8, 1.0, %v6660_v7  ;;  %vm1733_vm10 = vcmp.eq.s32.totalorder %v7252_v1, %v1732_v11  ;;  %v1761_v15 = vsel %vm1760_vm1, %v5214_v8, %v5215_v10  ;;  %v1775_v16 = vstv %s7257_s0  ;;  %1874 = vmatpush.msra.mxu1 %v1831_v6  ;;  %s8124_s8 = smov 72  }
 0x19e   : > { %s7297_s10 = sld [smem:[#allocation4 + %s1748_s7]]  ;;  %v5217_v18 = vsel %vm1733_vm10, 1.0, %v6660_v7  ;;  %v1763_v19 = vsel %vm1762_vm2, %v1761_v15, %v5216_v14  ;;  %vm1776_vm12 = vcmp.eq.s32.totalorder %v7252_v1, %v1775_v16  ;;  %v1780_v20 = vstv %s7259_s4  ;;  %s8125_s9 = smov 80  }
 0x19f   : > { %s7306_s21 = sld [smem:[#allocation4 + %s1754_s29]]  ;;  %v5222_v22 = vsel %vm1776_vm12, 1.0, %v6660_v7  ;;  %vm1781_vm13 = vcmp.eq.s32.totalorder %v7252_v1, %v1780_v20  ;;  %v1785_v23 = vstv %s7264_s20  ;;  %1875 = vmatpush.msra.mxu1 %v1830_v12  ;;  %v1765_v24 = vsel %vm1764_vm4, %v1763_v19, %v5217_v18  ;;  %s8127_s12 = smov 56  }
 0x1a0   : > { %s7314_s0 = sld [smem:[#allocation3 + %s1736_s17]]  ;;  %v5223_v25 = vsel %vm1781_vm13, 1.0, %v6660_v7  ;;  %vm1786_vm14 = vcmp.eq.s32.totalorder %v7252_v1, %v1785_v23  ;;  %v1790_v26 = vstv %s7269_s25  ;;  %v6661_v6 = vmov 32.0   ;;  %s8128_s13 = smov 64  }
 0x1a1   : > { %v1834_v17 = vld [vmem:[%s8104_s15] sm:$0x3]  ;;  %s7322_s4 = sld [smem:[#allocation3 + %s1742_s22]]  ;;  %v5224_v27 = vsel %vm1786_vm14, 1.0, %v6660_v7  ;;  %vm1791_vm15 = vcmp.eq.s32.totalorder %v7252_v1, %v1790_v26  ;;  %v1814_v28 = vsel %vm1760_vm1, %v5222_v22, %v5223_v25  ;;  %1876 = vmatpush.msra.mxu1 %v1829_v13  ;;  %5766 = vrcp.f32 %v6661_v6  ;;  %s8129_s14 = smov 48  }
 0x1a2   : > { %5230 = vmatpush.msk.msra.mxu0 %vm1762_vm2, %v1834_v17  ;;  %v1795_v29 = vstv %s7279_s3  ;;  %s7330_s17 = sld [smem:[#allocation3 + %s1748_s7]]  ;;  %v5225_v30 = vsel %vm1791_vm15, 1.0, %v6660_v7  ;;  %v1815_v31 = vsel %vm1762_vm2, %v1814_v28, %v5224_v27  ;;  %s7998_s3 = smov 80   ;;  %vm1965_vm14 = vcmask 64512  }
 0x1a3   : > { %vm1796_vm3 = vcmp.eq.s32.totalorder %v7252_v1, %v1795_v29  ;;  %v1800_v32 = vstv %s7286_s26  ;;  %s7338_s20 = sld [smem:[#allocation3 + %s1754_s29]]  ;;  %v1816_v34 = vsel %vm1764_vm4, %v1815_v31, %v5225_v30  ;;  %1877 = vmatpush.msra.mxu1 %v1828_v21  ;;  %s8002_s29 = smov 112  }
 0x1a4   : > { %v5226_v35 = vsel %vm1796_vm3, 1.0, %v6660_v7  ;;  %vm1801_vm1 = vcmp.eq.s32.totalorder %v7252_v1, %v1800_v32  ;;  %v1805_v36 = vstv %s7297_s10  ;;  %s8105_s5 = sld [smem:[#allocation51_spill]]  ;;  %s8008_s26 = smov 96  }
 0x1a5   : > { %v5227_v37 = vsel %vm1801_vm1, 1.0, %v6660_v7  ;;  %vm1806_vm2 = vcmp.eq.s32.totalorder %v7252_v1, %v1805_v36  ;;  %v1810_v38 = vstv %s7306_s21  ;;  %v1817_v39 = vsel %vm1766_vm0, %v1816_v34, %v5226_v35  ;;  %1878 = vmatpush.msra.mxu1 %v1827_v33  ;;  %s8106_s22 = sld [smem:[#allocation55_spill]]  ;;  %v5727_v35 = vld [vmem:[#allocation6] ss:$0 sm:$0xff]  ;;  %s7988_s10 = smov 64  }
 0x1a6   : > { %v5228_v41 = vsel %vm1806_vm2, 1.0, %v6660_v7  ;;  %vm1811_vm4 = vcmp.eq.s32.totalorder %v7252_v1, %v1810_v38  ;;  %v1818_v42 = vsel %vm1768_vm5, %v1817_v39, %v5227_v37  ;;  %v1738_v43 = vstv %s7314_s0  ;;  %s8107_s25 = sld [smem:[#allocation53_spill]]  ;;  %s8006_s21 = smov 120  }
 0x1a7   : > { %v5229_v44 = vsel %vm1811_vm4, 1.0, %v6660_v7  ;;  %v1819_v45 = vsel %vm1770_vm7, %v1818_v42, %v5228_v41  ;;  %vm1739_vm6 = vcmp.eq.s32.totalorder %v7252_v1, %v1738_v43  ;;  %v1744_v46 = vstv %s7322_s4  ;;  %1879 = vmatpush.msra.mxu1 %v1826_v40  ;;  %v5767_v8 = vpop.eup %5766  ;;  %s8108_s7 = sld [smem:[#allocation56_spill]]  ;;  %s8004_s0 = smov 88  }
 0x1a8   : > { %v1820_v48 = vsel %vm1772_vm9, %v1819_v45, %v5229_v44  ;;  %v5218_v49 = vsel %vm1739_vm6, 1.0, %v6660_v7  ;;  %vm1745_vm8 = vcmp.eq.s32.totalorder %v7252_v1, %v1744_v46  ;;  %v1750_v50 = vstv %s7330_s17  ;;  %s8109_s15 = sld [smem:[#allocation49_spill]]  ;;  %s8130_s16 = smov 40  }
 0x1a9   : > { %5231 = vmatmul.msk.f32.vlgmr.msra.gmra.mxu0 %vm1835_vm11, %v1820_v48  ;;  %v5219_v52 = vsel %vm1745_vm8, 1.0, %v6660_v7  ;;  %vm1751_vm10 = vcmp.eq.s32.totalorder %v7252_v1, %v1750_v50  ;;  %v1756_v53 = vstv %s7338_s20  ;;  %v1767_v54 = vsel %vm1766_vm0, %v1765_v24, %v5218_v49  ;;  %1880 = vmatpush.msra.mxu1 %v1825_v47  ;;  %s7411_s4 = scalar_select %p1702_p10, %s6955_s18, 1 }
 0x1aa   : > { %vm1757_vm12 = vcmp.eq.s32.totalorder %v7252_v1, %v1756_v53  ;;  %v5220_v56 = vsel %vm1751_vm10, 1.0, %v6660_v7  ;;  %v1769_v58 = vsel %vm1768_vm5, %v1767_v54, %v5219_v52  ;;  %vm1862_vm0 = vcmask 818176   ;;  %v1889_v2 = vld [vmem:[%s8105_s5] sm:$0xff]  ;;  %s7996_s20 = smov 104   ;;  %s8000_s5 = smov 72  }
 0x1ab   : > { %v5221_v57 = vsel %vm1757_vm12, 1.0, %v6660_v7  ;;  %1881 = vmatpush.msra.mxu1 %v1824_v51  ;;  %v1771_v60 = vsel %vm1770_vm7, %v1769_v58, %v5220_v56  ;;  %vm1893_vm11 = vcmask 261120   ;;  %v1898_v9 = vmul.f32 32.0, %v5767_v8  ;;  %v1934_v19 = vld [vmem:[%s8106_s22 + $0x18] sm:$0xff]  ;;  %v1933_v20 = vld [vmem:[%s8106_s22 + $0x10] sm:$0xff]  ;;  %v1932_v21 = vld [vmem:[%s8106_s22 + $0x8] sm:$0xff] }
 0x1ac   : > { %v1773_v62 = vsel %vm1772_vm9, %v1771_v60, %v5221_v57  ;;  %vm1902_vm5 = vweird.f32 %v5767_v8  ;;  %1954 = vmatpush.msra.mxu2 %v1934_v19  ;;  %v1931_v22 = vld [vmem:[%s8106_s22] sm:$0xff]  ;;  %vm2417_vm2 = vcmask 523264   ;;  %s8131_s19 = sld [smem:[#allocation48_spill]]  ;;  %s5212_s23 = sshll.u32 %s7411_s4, 3  ;;  %vm3031_vm10 = vcmask 130048  }
 0x1ad   : > { %1882 = vmatpush.msra.mxu1 %v1823_v55  ;;  %v1899_v10 = vsub.f32 1.0, %v1898_v9  ;;  %v5726_v32 = vld [vmem:[%s8107_s25] ss:$0 sm:$0xff]  ;;  %s8110_s25 = sld [smem:[#allocation57_spill]] }
 0x1ae   : > { %1955 = vmatpush.msra.mxu2 %v1933_v20  ;;  %v5728_v38 = vld [vmem:[%s8108_s7] ss:$0 sm:$0xff]  ;;  %s7415_s17 = scalar_lea.vmem %s8109_s15, %s7411_s4  ;;  %s7990_s15 = smov 40  }
 0x1af   : > { %1883 = vmatpush.msra.mxu1 %v1822_v59  ;;  %v1900_v11 = vmul.f32 %v5767_v8, %v1899_v10  ;;  %v7431_v49 = vld [vmem:[%s7415_s17] ss:$0 sm:$0xff]  ;;  %s8135_s27 = sld [smem:[#allocation70_spill]] }
 0x1b0   : > { %1956 = vmatpush.msra.mxu2 %v1932_v21  ;;  %s8140_s4 = sld [smem:[#allocation78_spill]] }
 0x1b1   : > { %1884 = vmatpush.msra.mxu1 %v1821_v61  ;;  %v1901_v12 = vadd.f32 %v5767_v8, %v1900_v11 }
 0x1b2   : > { %5233 = vmatmul.msk.f32.vlgmr.msra.gmra.mxu1 %vm1862_vm0, %v1773_v62  ;;  %1957 = vmatpush.msra.mxu2 %v1931_v22  ;;  %s1705_s24 = scalar_lea.vmem %s8131_s19, %s5212_s23  ;;  %s8138_s23 = sld [smem:[#allocation72_spill]] }
 0x1b3   : > { %v7380_v13 = vsel %vm1902_vm5, %v5767_v8, %v1901_v12  ;;  %s8139_s19 = sld [smem:[#allocation75_spill]] }
 0x226   : > { %v1859_v63 = vpop.f32.mrf.mxu0 }
 0x22f   : > { %v1886_v0 = vpop.f32.mrf.mxu1 }
 0x230   : > { %v1887_v3 = vadd.f32 %v1886_v0, %v1859_v63 }
 0x232   : > { %v1890_v4 = vadd.f32 %v1889_v2, %v1887_v3 }
 0x234   : > { %v1894_v5 = vsel %vm1893_vm11, %v1890_v4, 0.0 }
 0x235   : > { %1895 = vadd.xlane.f32.xlu0 %v1894_v5 }
 0x2a8   : > { %v1896_v14 = vpop.xlane.xlu0 %1895 }
 0x2a9   : > { %v1904_v15 = vmul.f32 %v7380_v13, %v1896_v14 }
 0x2ab   : > { %v1905_v16 = vsub.f32 %v1890_v4, %v1904_v15 }
 0x2ad   : > { %v1906_v17 = vmul.f32 %v1905_v16, %v1905_v16 }
 0x2af   : > { %v1907_v18 = vsel %vm1893_vm11, %v1906_v17, 0.0 }
 0x2b0   : > { %1908 = vadd.xlane.f32.xlu0 %v1907_v18 }
 0x323   : > { %v1909_v23 = vpop.xlane.xlu0 %1908 }
 0x324   : > { %v1910_v24 = vmul.f32 %v1909_v23, %v7380_v13 }
 0x326   : > { %v1911_v25 = vadd.f32 1e-12, %v1910_v24 }
 0x328   : > { %5768 = vrsqrt.f32 %v1911_v25  ;;  %vm1918_vm9 = vweird.f32 %v1911_v25 }
 0x32e   : > { %v5769_v26 = vpop.eup %5768 }
 0x32f   : > { %v1913_v27 = vmul.f32 %v5769_v26, %v1911_v25  ;;  %vm1919_vm7 = vweird.f32 %v5769_v26 }
 0x330   : > { %vm1920_vm13 = vmor %vm1918_vm9, %vm1919_vm7 }
 0x331   : > { %v1914_v28 = vmul.f32 %v5769_v26, %v1913_v27 }
 0x333   : > { %v1915_v29 = vmul.f32 0.5, %v1914_v28 }
 0x335   : > { %v1916_v30 = vsub.f32 1.5, %v1915_v29 }
 0x337   : > { %v1917_v31 = vmul.f32 %v5769_v26, %v1916_v30 }
 0x339   : > { %v1921_v33 = vsel %vm1920_vm13, %v5769_v26, %v1917_v31  ;;  %v2178_v31 = vld [vmem:[%s8110_s25 + $0x8] sm:$0xff] }
 0x33a   : > { %v1922_v34 = vmul.f32 %v1921_v33, %v1905_v16  ;;  %v2151_v16 = vld [vmem:[%s8110_s25] sm:$0xff] }
 0x33c   : > { %v1926_v36 = vmul.f32 %v5726_v32, %v1922_v34 }
 0x33e   : > { %v7390_v37 = vadd.f32 %v5727_v35, %v1926_v36 }
 0x340   : > { %5234 = vmatmul.msk.f32.vlgmr.msra.gmra.mxu2 %vm1893_vm11, %v7390_v37 }
 0x3c3   : > { %v1959_v39 = vpop.f32.mrf.mxu2 }
 0x3c4   : > { %v7395_v40 = vadd.f32 %v5728_v38, %v1959_v39 }
 0x3c6   : > { %2018 = vrot.lane.b32.xlu0 %v7395_v40, %s8002_s29  ;;  %2020 = vrot.lane.b32.xlu2 %v7395_v40, %s7998_s3  ;;  %s8114_s3 = sld [smem:[#allocation60_spill]] }
 0x3c7   : > { %1963 = vrot.lane.b32.xlu1 %v7395_v40, %s8008_s26  ;;  %s8116_s29 = sld [smem:[#allocation65_spill]] }
 0x3ce   : > { %2125 = vrot.lane.b32.xlu0 %v7395_v40, %s7988_s10  ;;  %1990 = vrot.lane.b32.xlu2 %v7395_v40, %s8006_s21  ;;  %s7994_s10 = smov 56   ;;  %s8118_s21 = sld [smem:[#allocation66_spill]] }
 0x3cf   : > { %1992 = vrot.lane.b32.xlu1 %v7395_v40, %s8004_s0  ;;  %s8117_s0 = smov %s8116_s29 }
 0x3d4   : > { %s8119_s26 = smov %s8118_s21 }
 0x3d6   : > { %2046 = vrot.lane.b32.xlu2 %v7395_v40, %s7996_s20  ;;  %s8113_s20 = sld [smem:[#allocation59_spill]] }
 0x3d7   : > { %2048 = vrot.lane.b32.xlu1 %v7395_v40, %s8000_s5  ;;  %s8115_s5 = sld [smem:[#allocation63_spill]] }
 0x420   : > { %v2021_v41 = vpop.permute.xlu2 %2020 }
 0x428   : > { %v1991_v46 = vpop.permute.xlu2 %1990 }
 0x430   : > { %v2047_v48 = vpop.permute.xlu2 %2046 }
 0x438   : > { %v2019_v42 = vpop.permute.xlu0 %2018 }
 0x439   : > { %v1964_v43 = vpop.permute.xlu1 %1963 }
 0x43a   : > { %5235 = vmatpush.xpose.msk.msra.mxu3 %vm1965_vm14, %v1964_v43  ;;  %v2251_v43 = vld [vmem:[%s8110_s25 + $0x10] sm:$0xff] }
 0x43d   : > { %5236 = vmatmul.msk.f32.vlgmr.msra.gmra.mxu3 %vm1965_vm14, %v7395_v40 }
 0x43e   : > { %5239 = vmatpush.xpose.msk.msrb.mxu3 %vm1965_vm14, %v2021_v41  ;;  %v2302_v41 = vld [vmem:[%s8110_s25 + $0x18] sm:$0xff] }
 0x43f   : > { %2321 = vmatpush.msrb.mxu1 %v2302_v41 }
 0x440   : > { %v2126_v44 = vpop.permute.xlu0 %2125 }
 0x441   : > { %v1993_v45 = vpop.permute.xlu1 %1992 }
 0x442   : > { %5237 = vmatpush.xpose.msk.msrb.mxu0 %vm1965_vm14, %v1993_v45 }
 0x445   : > { %5238 = vmatmul.msk.f32.vlgmr.msrb.gmra.mxu0 %vm1965_vm14, %v1991_v46  ;;  %5240 = vmatmul.msk.f32.vlgmr.msrb.gmra.mxu3 %vm1965_vm14, %v2019_v42 }
 0x446   : > { %2146 = vmatpush.msra.mxu0 %v2126_v44 }
 0x448   : > { %2220 = vmatpush.msrb.mxu0 %v2151_v16  ;;  %v5732_v16 = vld [vmem:[%s8114_s3] ss:$0 sm:$0xff] }
 0x449   : > { %v2049_v47 = vpop.permute.xlu1 %2048 }
 0x44a   : > { %5241 = vmatpush.xpose.msk.msrb.mxu2 %vm1965_vm14, %v2049_v47 }
 0x44d   : > { %5242 = vmatmul.msk.f32.vlgmr.msrb.gmra.mxu2 %vm1965_vm14, %v2047_v48 }
 0x44e   : > { %2197 = vmatpush.msra.mxu2 %v2178_v31 }
 0x450   : > { %2270 = vmatpush.msrb.mxu2 %v2251_v43 }
 0x4c0   : > { %v1987_v50 = vpop.f32.mrf.mxu3 }
 0x4c1   : > { %v2077_v51 = vadd.f32 %v7431_v49, %v1987_v50 }
 0x4c2   : > { %v2015_v52 = vpop.f32.mrf.mxu0 }
 0x4c3   : > { %v2078_v53 = vadd.f32 %v7431_v49, %v2015_v52  ;;  %v2081_v54 = vsel %vm1965_vm14, %v2077_v51, -inf }
 0x4c4   : > { %2082 = vmax.xlane.f32.xlu1 %v2081_v54 }
 0x4c5   : > { %v2084_v55 = vsel %vm1965_vm14, %v2078_v53, -inf }
 0x4c6   : > { %2085 = vmax.xlane.f32.xlu0 %v2084_v55 }
 0x4c8   : > { %v2043_v3 = vpop.f32.mrf.mxu3 }
 0x4c9   : > { %v2079_v5 = vadd.f32 %v7431_v49, %v2043_v3 }
 0x4cb   : > { %v2087_v10 = vsel %vm1965_vm14, %v2079_v5, -inf }
 0x4d0   : > { %v2071_v56 = vpop.f32.mrf.mxu2 }
 0x4d1   : > { %v2080_v57 = vadd.f32 %v7431_v49, %v2071_v56 }
 0x4d3   : > { %v2090_v58 = vsel %vm1965_vm14, %v2080_v57, -inf }
 0x4d4   : > { %2091 = vmax.xlane.f32.xlu1 %v2090_v58 }
 0x537   : > { %v2083_v59 = vpop.xlane.xlu1 %2082 }
 0x538   : > { %v2093_v60 = vsub.f32 %v2077_v51, %v2083_v59 }
 0x539   : > { %v2086_v62 = vpop.xlane.xlu0 %2085 }
 0x53a   : > { %v2097_v61 = vmul.f32 1.442695, %v2093_v60  ;;  %v2094_v0 = vsub.f32 %v2078_v53, %v2086_v62 }
 0x53c   : > { %5770 = vpow2.f32 %v2097_v61  ;;  %v2099_v4 = vmul.f32 1.442695, %v2094_v0 }
 0x53e   : > { %5772 = vpow2.f32 %v2099_v4 }
 0x542   : > { %v5771_v63 = vpop.eup %5770 }
 0x543   : > { %v2105_v2 = vsel %vm1965_vm14, %v5771_v63, 0.0 }
 0x544   : > { %2106 = vadd.xlane.f32.xlu2 %v2105_v2  ;;  %v5773_v11 = vpop.eup %5772 }
 0x545   : > { %v2108_v14 = vsel %vm1965_vm14, %v5773_v11, 0.0 }
 0x547   : > { %v2092_v6 = vpop.xlane.xlu1 %2091 }
 0x548   : > { %v2096_v8 = vsub.f32 %v2080_v57, %v2092_v6 }
 0x54a   : > { %v2103_v9 = vmul.f32 1.442695, %v2096_v8 }
 0x54c   : > { %5774 = vpow2.f32 %v2103_v9  ;;  %2088 = vmax.xlane.f32.xlu2 %v2087_v10 }
 0x552   : > { %v5775_v12 = vpop.eup %5774 }
 0x553   : > { %v2114_v15 = vsel %vm1965_vm14, %v5775_v12, 0.0 }
 0x554   : > { %2109 = vadd.xlane.f32.xlu2 %v2108_v14  ;;  %2115 = vadd.xlane.f32.xlu0 %v2114_v15 }
 0x568   : > { %2276 = vrot.lane.b32.xlu0 %v7395_v40, %s7990_s15  ;;  %s7992_s15 = smov 48  }
 0x56c   : > { %2152 = vrot.lane.b32.xlu2 %v7395_v40, %s7994_s10  ;;  %s8112_s10 = sld [smem:[#allocation61_spill]] }
 0x572   : > { %v2368_v62 = vld [vmem:[%s8112_s10 + $0x18] sm:$0xff]  ;;  %v2366_v0 = vld [vmem:[%s8112_s10 + $0x8] sm:$0xff]  ;;  %v2365_v2 = vld [vmem:[%s8112_s10] sm:$0xff] }
 0x5b7   : > { %v2107_v17 = vpop.xlane.xlu2 %2106 }
 0x5b8   : > { %5776 = vrcp.f32 %v2107_v17 }
 0x5be   : > { %v5777_v18 = vpop.eup %5776 }
 0x5bf   : > { %v2121_v19 = vmul.f32 %v5777_v18, %v5771_v63  ;;  %v2089_v20 = vpop.xlane.xlu2 %2088  ;;  %v2367_v63 = vld [vmem:[%s8112_s10 + $0x10] sm:$0xff] }
 0x5c0   : > { %v2095_v21 = vsub.f32 %v2079_v5, %v2089_v20  ;;  %v2411_v20 = vld [vmem:[%s8115_s5 + $0x30] sm:$0xff] }
 0x5c1   : > { %5243 = vmatmul.msk.f32.vlgmr.msra.gmra.mxu0 %vm1965_vm14, %v2121_v19  ;;  %v2412_v19 = vld [vmem:[%s8115_s5 + $0x38] sm:$0xff] }
 0x5c2   : > { %v2101_v22 = vmul.f32 1.442695, %v2095_v21  ;;  %v2410_v21 = vld [vmem:[%s8115_s5 + $0x28] sm:$0xff] }
 0x5c4   : > { %5778 = vpow2.f32 %v2101_v22  ;;  %v2409_v22 = vld [vmem:[%s8115_s5 + $0x20] sm:$0xff] }
 0x5c7   : > { %v2110_v23 = vpop.xlane.xlu2 %2109  ;;  %v2116_v29 = vpop.xlane.xlu0 %2115 }
 0x5c8   : > { %5780 = vrcp.f32 %v2110_v23  ;;  %v2408_v23 = vld [vmem:[%s8115_s5 + $0x18] sm:$0xff] }
 0x5c9   : > { %5782 = vrcp.f32 %v2116_v29 }
 0x5ca   : > { %v5779_v24 = vpop.eup %5778 }
 0x5cb   : > { %v2111_v25 = vsel %vm1965_vm14, %v5779_v24, 0.0 }
 0x5cc   : > { %2112 = vadd.xlane.f32.xlu1 %v2111_v25  ;;  %v2406_v25 = vld [vmem:[%s8115_s5 + $0x8] sm:$0xff] }
 0x5ce   : > { %v5781_v26 = vpop.eup %5780 }
 0x5cf   : > { %v2122_v27 = vmul.f32 %v5781_v26, %v5773_v11  ;;  %v2153_v28 = vpop.permute.xlu2 %2152  ;;  %v5783_v33 = vpop.eup %5782  ;;  %v2405_v26 = vld [vmem:[%s8115_s5] sm:$0xff] }
 0x5d0   : > { %2173 = vmatpush.msra.mxu3 %v2153_v28  ;;  %v2124_v34 = vmul.f32 %v5783_v33, %v5775_v12  ;;  %v5731_v12 = vld [vmem:[%s8113_s20] ss:$0 sm:$0xff] }
 0x5d1   : > { %5244 = vmatmul.msk.f32.vlgmr.msra.gmra.mxu3 %vm1965_vm14, %v2122_v27  ;;  %v5733_v27 = vld [vmem:[#allocation9] ss:$0 sm:$0xff] }
 0x5da   : > { %v2277_v30 = vpop.permute.xlu0 %2276 }
 0x5db   : > { %2297 = vmatpush.msra.mxu0 %v2277_v30 }
 0x5e5   : > { %2225 = vrot.lane.b32.xlu1 %v7395_v40, %s7992_s15  ;;  %s8111_s15 = sld [smem:[#allocation58_spill]] }
 0x5eb   : > { %v5730_v51 = vld [vmem:[%s8111_s15] ss:$0 sm:$0xff] }
 0x63e   : > { %v2148_v32 = vpop.f32.mrf.mxu0 }
 0x63f   : > { %5246 = vmatmul.msk.f32.vlgmr.msrb.gmra.mxu0 %vm1965_vm14, %v2148_v32  ;;  %v2113_v35 = vpop.xlane.xlu1 %2112 }
 0x640   : > { %5784 = vrcp.f32 %v2113_v35 }
 0x646   : > { %v5785_v36 = vpop.eup %5784 }
 0x647   : > { %5249 = vmatmul.msk.f32.vlgmr.msra.gmra.mxu0 %vm1965_vm14, %v2124_v34  ;;  %v2123_v39 = vmul.f32 %v5785_v36, %v5779_v24  ;;  %v2407_v24 = vld [vmem:[%s8115_s5 + $0x10] sm:$0xff] }
 0x654   : > { %v2175_v38 = vpop.f32.mrf.mxu3 }
 0x655   : > { %5245 = vmatmul.msk.f32.vlgmr.msra.gmra.mxu2 %vm1965_vm14, %v2175_v38 }
 0x656   : > { %2429 = vmatpush.msra.mxu2 %v2412_v19 }
 0x657   : > { %v2226_v40 = vpop.permute.xlu1 %2225 }
 0x658   : > { %2246 = vmatpush.msrb.mxu3 %v2226_v40  ;;  %2430 = vmatpush.msra.mxu2 %v2411_v20  ;;  %v5734_v40 = vld [vmem:[#allocation11] ss:$0 sm:$0xff] }
 0x659   : > { %5247 = vmatmul.msk.f32.vlgmr.msrb.gmra.mxu3 %vm1965_vm14, %v2123_v39 }
 0x65a   : > { %2388 = vmatpush.msra.mxu3 %v2368_v62  ;;  %2431 = vmatpush.msra.mxu2 %v2410_v21 }
 0x65c   : > { %2389 = vmatpush.msra.mxu3 %v2367_v63  ;;  %2432 = vmatpush.msra.mxu2 %v2409_v22 }
 0x65e   : > { %2390 = vmatpush.msra.mxu3 %v2366_v0  ;;  %2433 = vmatpush.msra.mxu2 %v2408_v23  ;;  %v5735_v0 = vld [vmem:[%s8116_s29] ss:$0 sm:$0xff]  ;;  %s8122_s29 = smov 88  }
 0x660   : > { %2391 = vmatpush.msra.mxu3 %v2365_v2  ;;  %2434 = vmatpush.msra.mxu2 %v2407_v24 }
 0x662   : > { %2435 = vmatpush.msra.mxu2 %v2406_v25 }
 0x664   : > { %2436 = vmatpush.msra.mxu2 %v2405_v26 }
 0x6bc   : > { %v2222_v42 = vpop.f32.mrf.mxu0 }
 0x6c4   : > { %v2299_v44 = vpop.f32.mrf.mxu0 }
 0x6c5   : > { %5250 = vmatmul.msk.f32.vlgmr.msrb.gmra.mxu1 %vm1965_vm14, %v2299_v44 }
 0x6d8   : > { %v2199_v46 = vpop.f32.mrf.mxu2 }
 0x6d9   : > { %v2223_v47 = vadd.f32 %v2222_v42, %v2199_v46 }
 0x6dc   : > { %v2248_v45 = vpop.f32.mrf.mxu3 }
 0x6dd   : > { %5248 = vmatmul.msk.f32.vlgmr.msrb.gmra.mxu2 %vm1965_vm14, %v2248_v45 }
 0x742   : > { %v2323_v52 = vpop.f32.mrf.mxu1 }
 0x760   : > { %v2272_v48 = vpop.f32.mrf.mxu2 }
 0x761   : > { %v2275_v50 = vadd.f32 %v2272_v48, %v2223_v47 }
 0x763   : > { %v2326_v53 = vadd.f32 %v2323_v52, %v2275_v50  ;;  %v5255_v52 = vld [vmem:[%s8106_s22 + $0x30] sm:$0xff] }
 0x765   : > { %v2331_v54 = vadd.f32 %v5730_v51, %v2326_v53  ;;  %v5256_v51 = vld [vmem:[%s8106_s22 + $0x38] sm:$0xff]  ;;  %v5254_v53 = vld [vmem:[%s8106_s22 + $0x28] sm:$0xff] }
 0x766   : > { %2499 = vmatpush.msrb.mxu0 %v5256_v51 }
 0x767   : > { %v2332_v55 = vadd.f32 %v2331_v54, %v7390_v37  ;;  %v5253_v54 = vld [vmem:[%s8106_s22 + $0x20] sm:$0xff]  ;;  %s8132_s22 = sld [smem:[#allocation67_spill]] }
 0x768   : > { %2500 = vmatpush.msrb.mxu0 %v5255_v52 }
 0x769   : > { %v2335_v56 = vsel %vm1893_vm11, %v2332_v55, 0.0 }
 0x76a   : > { %2336 = vadd.xlane.f32.xlu2 %v2335_v56  ;;  %2501 = vmatpush.msrb.mxu0 %v5254_v53 }
 0x76c   : > { %2502 = vmatpush.msrb.mxu0 %v5253_v54 }
 0x7dd   : > { %v2337_v57 = vpop.xlane.xlu2 %2336 }
 0x7de   : > { %v2338_v58 = vmul.f32 %v2337_v57, %v7380_v13 }
 0x7e0   : > { %v2339_v59 = vsub.f32 %v2332_v55, %v2338_v58 }
 0x7e2   : > { %v2340_v60 = vmul.f32 %v2339_v59, %v2339_v59 }
 0x7e4   : > { %v2341_v61 = vsel %vm1893_vm11, %v2340_v60, 0.0 }
 0x7e5   : > { %2342 = vadd.xlane.f32.xlu1 %v2341_v61 }
 0x858   : > { %v2343_v37 = vpop.xlane.xlu1 %2342 }
 0x859   : > { %v2344_v3 = vmul.f32 %v2343_v37, %v7380_v13 }
 0x85b   : > { %v2345_v4 = vadd.f32 1e-12, %v2344_v3  ;;  %v5736_v3 = vld [vmem:[%s8118_s21] ss:$0 sm:$0xff]  ;;  %s8123_s21 = smov 112  }
 0x85d   : > { %5786 = vrsqrt.f32 %v2345_v4  ;;  %vm2352_vm3 = vweird.f32 %v2345_v4 }
 0x863   : > { %v5787_v5 = vpop.eup %5786 }
 0x864   : > { %v2347_v6 = vmul.f32 %v5787_v5, %v2345_v4  ;;  %vm2353_vm15 = vweird.f32 %v5787_v5 }
 0x865   : > { %vm2354_vm1 = vmor %vm2352_vm3, %vm2353_vm15 }
 0x866   : > { %v2348_v8 = vmul.f32 %v5787_v5, %v2347_v6  ;;  %v5737_v6 = vld [vmem:[%s8108_s7 + $0x1] ss:$0 sm:$0xff]  ;;  %s8126_s7 = smov 104  }
 0x868   : > { %v2349_v9 = vmul.f32 0.5, %v2348_v8 }
 0x86a   : > { %v2350_v10 = vsub.f32 1.5, %v2349_v9 }
 0x86c   : > { %v2351_v11 = vmul.f32 %v5787_v5, %v2350_v10 }
 0x86e   : > { %v2355_v14 = vsel %vm2354_vm1, %v5787_v5, %v2351_v11 }
 0x86f   : > { %v2356_v15 = vmul.f32 %v2355_v14, %v2339_v59 }
 0x871   : > { %v2360_v17 = vmul.f32 %v5731_v12, %v2356_v15 }
 0x873   : > { %v2364_v18 = vadd.f32 %v5732_v16, %v2360_v17 }
 0x875   : > { %5251 = vmatmul.msk.f32.vlgmr.msra.gmra.mxu3 %vm1893_vm11, %v2364_v18 }
 0x8f8   : > { %v2393_v28 = vpop.f32.mrf.mxu3 }
 0x8f9   : > { %v2394_v29 = vadd.f32 %v5733_v27, %v2393_v28 }
 0x8fb   : > { %v2397_v30 = vmul.f32 0.044715, %v2394_v29  ;;  %v2396_v36 = vmul.f32 0.5, %v2394_v29 }
 0x8fd   : > { %v2398_v31 = vmul.f32 %v2397_v30, %v2394_v29 }
 0x8ff   : > { %v2399_v32 = vmul.f32 %v2398_v31, %v2394_v29 }
 0x901   : > { %v2400_v33 = vadd.f32 %v2399_v32, %v2394_v29 }
 0x903   : > { %v2401_v34 = vmul.f32 0.7978846, %v2400_v33 }
 0x905   : > { %5788 = vtanh.f32 %v2401_v34 }
 0x90b   : > { %v5789_v35 = vpop.eup %5788 }
 0x90c   : > { %v2403_v38 = vadd.f32 1.0, %v5789_v35 }
 0x90e   : > { %v2404_v39 = vmul.f32 %v2403_v38, %v2396_v36 }
 0x910   : > { %5252 = vmatmul.msk.f32.vlgmr.msra.gmra.mxu2 %vm2417_vm2, %v2404_v39 }
 0x993   : > { %v2438_v41 = vpop.f32.mrf.mxu2 }
 0x994   : > { %v2439_v42 = vadd.f32 %v5734_v40, %v2438_v41 }
 0x996   : > { %v2441_v43 = vadd.f32 %v2439_v42, %v2364_v18 }
 0x998   : > { %v2444_v44 = vsel %vm1893_vm11, %v2441_v43, 0.0 }
 0x999   : > { %2445 = vadd.xlane.f32.xlu0 %v2444_v44 }
 0xa0c   : > { %v2446_v45 = vpop.xlane.xlu0 %2445 }
 0xa0d   : > { %v2447_v46 = vmul.f32 %v2446_v45, %v7380_v13 }
 0xa0f   : > { %v2448_v47 = vsub.f32 %v2441_v43, %v2447_v46 }
 0xa11   : > { %v2449_v48 = vmul.f32 %v2448_v47, %v2448_v47 }
 0xa13   : > { %v2450_v50 = vsel %vm1893_vm11, %v2449_v48, 0.0 }
 0xa14   : > { %2451 = vadd.xlane.f32.xlu2 %v2450_v50 }
 0xa87   : > { %v2452_v55 = vpop.xlane.xlu2 %2451 }
 0xa88   : > { %v2453_v56 = vmul.f32 %v2452_v55, %v7380_v13 }
 0xa8a   : > { %v2454_v57 = vadd.f32 1e-12, %v2453_v56 }
 0xa8c   : > { %5790 = vrsqrt.f32 %v2454_v57  ;;  %vm2461_vm6 = vweird.f32 %v2454_v57 }
 0xa92   : > { %v5791_v58 = vpop.eup %5790 }
 0xa93   : > { %v2456_v59 = vmul.f32 %v5791_v58, %v2454_v57  ;;  %vm2462_vm4 = vweird.f32 %v5791_v58 }
 0xa94   : > { %vm2463_vm8 = vmor %vm2461_vm6, %vm2462_vm4 }
 0xa95   : > { %v2457_v60 = vmul.f32 %v5791_v58, %v2456_v59 }
 0xa97   : > { %v2458_v61 = vmul.f32 0.5, %v2457_v60 }
 0xa99   : > { %v2459_v62 = vsub.f32 1.5, %v2458_v61 }
 0xa9b   : > { %v2460_v63 = vmul.f32 %v5791_v58, %v2459_v62 }
 0xa9d   : > { %v2464_v2 = vsel %vm2463_vm8, %v5791_v58, %v2460_v63  ;;  %v5268_v63 = vld [vmem:[%s8110_s25 + $0x20] sm:$0xff] }
 0xa9e   : > { %v2465_v37 = vmul.f32 %v2464_v2, %v2448_v47  ;;  %v5274_v2 = vld [vmem:[%s8110_s25 + $0x30] sm:$0xff] }
 0xaa0   : > { %v2469_v4 = vmul.f32 %v5735_v0, %v2465_v37  ;;  %v5270_v0 = vld [vmem:[%s8110_s25 + $0x28] sm:$0xff] }
 0xaa2   : > { %v7495_v5 = vadd.f32 %v5736_v3, %v2469_v4 }
 0xaa4   : > { %5258 = vmatmul.msk.f32.vlgmr.msrb.gmra.mxu0 %vm1893_vm11, %v7495_v5 }
 0xb21   : > { %v2504_v8 = vpop.f32.mrf.mxu0 }
 0xb22   : > { %v7500_v9 = vadd.f32 %v5737_v6, %v2504_v8 }
 0xb24   : > { %2508 = vrot.lane.b32.xlu0 %v7500_v9, %s8120_s2  ;;  %2534 = vrot.lane.b32.xlu2 %v7500_v9, %s8121_s6 }
 0xb25   : > { %2536 = vrot.lane.b32.xlu1 %v7500_v9, %s8122_s29 }
 0xb2c   : > { %2562 = vrot.lane.b32.xlu0 %v7500_v9, %s8123_s21  ;;  %2592 = vrot.lane.b32.xlu2 %v7500_v9, %s8124_s8 }
 0xb2d   : > { %2564 = vrot.lane.b32.xlu1 %v7500_v9, %s8125_s9 }
 0xb35   : > { %2590 = vrot.lane.b32.xlu1 %v7500_v9, %s8126_s7 }
 0xb3d   : > { %2694 = vrot.lane.b32.xlu1 %v7500_v9, %s8127_s12 }
 0xb7e   : > { %v2535_v10 = vpop.permute.xlu2 %2534 }
 0xb86   : > { %v2593_v12 = vpop.permute.xlu2 %2592 }
 0xb96   : > { %v2509_v11 = vpop.permute.xlu0 %2508 }
 0xb97   : > { %v2537_v14 = vpop.permute.xlu1 %2536  ;;  %5259 = vmatpush.xpose.msk.msra.mxu1 %vm1965_vm14, %v2509_v11  ;;  %v5277_v11 = vld [vmem:[%s8110_s25 + $0x38] sm:$0xff]  ;;  %s8134_s25 = sld [smem:[#allocation69_spill]] }
 0xb98   : > { %5261 = vmatpush.xpose.msk.msrb.mxu3 %vm1965_vm14, %v2537_v14 }
 0xb9a   : > { %5260 = vmatmul.msk.f32.vlgmr.msra.gmra.mxu1 %vm1965_vm14, %v7500_v9 }
 0xb9b   : > { %5265 = vmatpush.xpose.msk.msrb.mxu1 %vm1965_vm14, %v2593_v12  ;;  %5262 = vmatmul.msk.f32.vlgmr.msrb.gmra.mxu3 %vm1965_vm14, %v2535_v10 }
 0xb9e   : > { %v2563_v16 = vpop.permute.xlu0 %2562 }
 0xb9f   : > { %v2565_v15 = vpop.permute.xlu1 %2564  ;;  %2762 = vmatpush.msra.mxu1 %v5268_v63  ;;  %v5291_v63 = vld [vmem:[%s8115_s5 + $0x60] sm:$0xff] }
 0xba0   : > { %5263 = vmatpush.xpose.msk.msra.mxu0 %vm1965_vm14, %v2565_v15 }
 0xba3   : > { %5264 = vmatmul.msk.f32.vlgmr.msra.gmra.mxu0 %vm1965_vm14, %v2563_v16 }
 0xba4   : > { %2739 = vmatpush.msrb.mxu0 %v5270_v0  ;;  %v5290_v0 = vld [vmem:[%s8115_s5 + $0x58] sm:$0xff] }
 0xba7   : > { %v2591_v17 = vpop.permute.xlu1 %2590 }
 0xba8   : > { %5266 = vmatmul.msk.f32.vlgmr.msrb.gmra.mxu1 %vm1965_vm14, %v2591_v17 }
 0xba9   : > { %2863 = vmatpush.msrb.mxu1 %v5277_v11 }
 0xbaf   : > { %v2695_v18 = vpop.permute.xlu1 %2694 }
 0xbb0   : > { %2715 = vmatpush.msrb.mxu2 %v2695_v18 }
 0xbb2   : > { %2812 = vmatpush.msra.mxu2 %v5274_v2  ;;  %v5289_v2 = vld [vmem:[%s8115_s5 + $0x50] sm:$0xff] }
 0xc17   : > { %v2531_v19 = vpop.f32.mrf.mxu1 }
 0xc18   : > { %v2618_v20 = vadd.f32 %v7431_v49, %v2531_v19  ;;  %v5738_v19 = vld [vmem:[%s8111_s15 + $0x1] ss:$0 sm:$0xff]  ;;  %s8133_s15 = sld [smem:[#allocation68_spill]] }
 0xc1a   : > { %v2622_v21 = vsel %vm1965_vm14, %v2618_v20, -inf }
 0xc1b   : > { %2623 = vmax.xlane.f32.xlu1 %v2622_v21 }
 0xc1e   : > { %v2559_v22 = vpop.f32.mrf.mxu3 }
 0xc1f   : > { %v2619_v23 = vadd.f32 %v7431_v49, %v2559_v22 }
 0xc20   : > { %v2587_v25 = vpop.f32.mrf.mxu0 }
 0xc21   : > { %v2625_v24 = vsel %vm1965_vm14, %v2619_v23, -inf  ;;  %v2620_v26 = vadd.f32 %v7431_v49, %v2587_v25  ;;  %v3026_v25 = vld [vmem:[%s8132_s22 + $0x8] sm:$0xff] }
 0xc22   : > { %2626 = vmax.xlane.f32.xlu0 %v2625_v24 }
 0xc23   : > { %v2628_v27 = vsel %vm1965_vm14, %v2620_v26, -inf }
 0xc25   : > { %v2615_v41 = vpop.f32.mrf.mxu1 }
 0xc26   : > { %v2621_v43 = vadd.f32 %v7431_v49, %v2615_v41  ;;  %v5743_v41 = vld [vmem:[%s8135_s27] ss:$0 sm:$0xff]  ;;  %s8137_s27 = sld [smem:[#allocation71_spill]] }
 0xc28   : > { %v2631_v45 = vsel %vm1965_vm14, %v2621_v43, -inf }
 0xc2a   : > { %2629 = vmax.xlane.f32.xlu0 %v2628_v27  ;;  %v3024_v27 = vld [vmem:[%s1705_s24] sm:$0xff]  ;;  %s8136_s24 = sld [smem:[#allocation73_spill]] }
 0xc34   : > { %2666 = vrot.lane.b32.xlu1 %v7500_v9, %s8128_s13 }
 0xc8e   : > { %v2624_v28 = vpop.xlane.xlu1 %2623 }
 0xc8f   : > { %v2634_v29 = vsub.f32 %v2618_v20, %v2624_v28 }
 0xc91   : > { %v2638_v30 = vmul.f32 1.442695, %v2634_v29 }
 0xc93   : > { %5792 = vpow2.f32 %v2638_v30 }
 0xc95   : > { %v2627_v31 = vpop.xlane.xlu0 %2626 }
 0xc96   : > { %v2635_v32 = vsub.f32 %v2619_v23, %v2627_v31 }
 0xc98   : > { %v2640_v33 = vmul.f32 1.442695, %v2635_v32  ;;  %v5285_v32 = vld [vmem:[%s8112_s10 + $0x38] sm:$0xff] }
 0xc99   : > { %v5793_v34 = vpop.eup %5792 }
 0xc9a   : > { %5794 = vpow2.f32 %v2640_v33  ;;  %v2646_v35 = vsel %vm1965_vm14, %v5793_v34, 0.0  ;;  %v5284_v33 = vld [vmem:[%s8112_s10 + $0x30] sm:$0xff] }
 0xc9b   : > { %2647 = vadd.xlane.f32.xlu0 %v2646_v35  ;;  %v5282_v35 = vld [vmem:[%s8112_s10 + $0x20] sm:$0xff] }
 0xc9d   : > { %v2630_v36 = vpop.xlane.xlu0 %2629 }
 0xc9e   : > { %v2636_v39 = vsub.f32 %v2620_v26, %v2630_v36  ;;  %v3025_v26 = vld [vmem:[%s8132_s22] sm:$0xff] }
 0xc9f   : > { %v5741_v36 = vld [vmem:[%s8133_s15] ss:$0 sm:$0xff] }
 0xca0   : > { %v5795_v38 = vpop.eup %5794  ;;  %v2642_v42 = vmul.f32 1.442695, %v2636_v39  ;;  %v5742_v39 = vld [vmem:[%s8134_s25] ss:$0 sm:$0xff]  ;;  %s8146_s25 = sld [smem:[#allocation92_spill]] }
 0xca1   : > { %v2649_v40 = vsel %vm1965_vm14, %v5795_v38, 0.0 }
 0xca2   : > { %2650 = vadd.xlane.f32.xlu2 %v2649_v40  ;;  %5796 = vpow2.f32 %v2642_v42 }
 0xca6   : > { %v2667_v44 = vpop.permute.xlu1 %2666 }
 0xca7   : > { %2687 = vmatpush.msra.mxu3 %v2667_v44 }
 0xca8   : > { %v5797_v46 = vpop.eup %5796 }
 0xca9   : > { %v2652_v47 = vsel %vm1965_vm14, %v5797_v46, 0.0 }
 0xcaa   : > { %2632 = vmax.xlane.f32.xlu2 %v2631_v45 }
 0xcaf   : > { %2767 = vrot.lane.b32.xlu0 %v7500_v9, %s8129_s14 }
 0xcb2   : > { %2653 = vadd.xlane.f32.xlu2 %v2652_v47 }
 0xd0e   : > { %v2648_v48 = vpop.xlane.xlu0 %2647 }
 0xd0f   : > { %5798 = vrcp.f32 %v2648_v48 }
 0xd15   : > { %v5799_v50 = vpop.eup %5798  ;;  %v2651_v51 = vpop.xlane.xlu2 %2650 }
 0xd16   : > { %v2662_v52 = vmul.f32 %v5799_v50, %v5793_v34  ;;  %5800 = vrcp.f32 %v2651_v51  ;;  %v5283_v34 = vld [vmem:[%s8112_s10 + $0x28] sm:$0xff] }
 0xd18   : > { %5267 = vmatmul.msk.f32.vlgmr.msra.gmra.mxu3 %vm1965_vm14, %v2662_v52 }
 0xd1c   : > { %v5801_v49 = vpop.eup %5800 }
 0xd1d   : > { %v2663_v53 = vmul.f32 %v5801_v49, %v5795_v38  ;;  %v2633_v54 = vpop.xlane.xlu2 %2632 }
 0xd1e   : > { %v2637_v55 = vsub.f32 %v2621_v43, %v2633_v54  ;;  %v5739_v54 = vld [vmem:[%s8113_s20 + $0x1] ss:$0 sm:$0xff] }
 0xd1f   : > { %5269 = vmatmul.msk.f32.vlgmr.msrb.gmra.mxu2 %vm1965_vm14, %v2663_v53 }
 0xd20   : > { %v2644_v56 = vmul.f32 1.442695, %v2637_v55 }
 0xd21   : > { %v2768_v57 = vpop.permute.xlu0 %2767 }
 0xd22   : > { %5802 = vpow2.f32 %v2644_v56  ;;  %2788 = vmatpush.msrb.mxu3 %v2768_v57  ;;  %v5740_v57 = vld [vmem:[%s8114_s3 + $0x1] ss:$0 sm:$0xff] }
 0xd24   : > { %2935 = vmatpush.msra.mxu3 %v5285_v32 }
 0xd25   : > { %v2654_v58 = vpop.xlane.xlu2 %2653 }
 0xd26   : > { %5804 = vrcp.f32 %v2654_v58  ;;  %2936 = vmatpush.msra.mxu3 %v5284_v33 }
 0xd28   : > { %v5803_v59 = vpop.eup %5802  ;;  %2937 = vmatpush.msra.mxu3 %v5283_v34 }
 0xd29   : > { %v2655_v60 = vsel %vm1965_vm14, %v5803_v59, 0.0 }
 0xd2a   : > { %2656 = vadd.xlane.f32.xlu2 %v2655_v60  ;;  %2938 = vmatpush.msra.mxu3 %v5282_v35  ;;  %v5294_v60 = vld [vmem:[%s8115_s5 + $0x78] sm:$0xff] }
 0xd2b   : > { %2977 = vmatpush.msrb.mxu2 %v5294_v60  ;;  %v3096_v35 = vld [vmem:[%s8136_s24 + $0x18] sm:$0xff] }
 0xd2c   : > { %v5805_v61 = vpop.eup %5804 }
 0xd2d   : > { %v2664_v62 = vmul.f32 %v5805_v61, %v5797_v46  ;;  %v5293_v61 = vld [vmem:[%s8115_s5 + $0x70] sm:$0xff] }
 0xd2e   : > { %2978 = vmatpush.msrb.mxu2 %v5293_v61 }
 0xd2f   : > { %5273 = vmatmul.msk.f32.vlgmr.msrb.gmra.mxu3 %vm1965_vm14, %v2664_v62  ;;  %v5292_v62 = vld [vmem:[%s8115_s5 + $0x68] sm:$0xff] }
 0xd30   : > { %2979 = vmatpush.msrb.mxu2 %v5292_v62 }
 0xd32   : > { %2980 = vmatpush.msrb.mxu2 %v5291_v63 }
 0xd34   : > { %2981 = vmatpush.msrb.mxu2 %v5290_v0  ;;  %v5748_v0 = vld [vmem:[%s8137_s27] ss:$0 sm:$0xff] }
 0xd36   : > { %2982 = vmatpush.msrb.mxu2 %v5289_v2 }
 0xd42   : > { %2818 = vrot.lane.b32.xlu2 %v7500_v9, %s8130_s16 }
 0xd9b   : > { %v2689_v37 = vpop.f32.mrf.mxu3 }
 0xd9c   : > { %5272 = vmatmul.msk.f32.vlgmr.msra.gmra.mxu1 %vm1965_vm14, %v2689_v37  ;;  %v5288_v37 = vld [vmem:[%s8115_s5 + $0x48] sm:$0xff] }
 0xd9d   : > { %v2657_v3 = vpop.xlane.xlu2 %2656  ;;  %2983 = vmatpush.msrb.mxu2 %v5288_v37  ;;  %3119 = vmatpush.msra.mxu1 %v3096_v35  ;;  %v5749_v37 = vld [vmem:[%s8138_s23] ss:$0 sm:$0xff] }
 0xd9e   : > { %5806 = vrcp.f32 %v2657_v3  ;;  %v5287_v3 = vld [vmem:[%s8115_s5 + $0x40] sm:$0xff] }
 0xd9f   : > { %2984 = vmatpush.msrb.mxu2 %v5287_v3 }
 0xda2   : > { %v2717_v4 = vpop.f32.mrf.mxu2 }
 0xda3   : > { %5271 = vmatmul.msk.f32.vlgmr.msrb.gmra.mxu0 %vm1965_vm14, %v2717_v4 }
 0xda4   : > { %v5807_v8 = vpop.eup %5806 }
 0xda5   : > { %v2819_v6 = vpop.permute.xlu2 %2818  ;;  %v2665_v9 = vmul.f32 %v5807_v8, %v5803_v59 }
 0xda6   : > { %2839 = vmatpush.msra.mxu0 %v2819_v6 }
 0xda8   : > { %3049 = vmatpush.msrb.mxu0 %v3026_v25 }
 0xdaa   : > { %3050 = vmatpush.msrb.mxu0 %v3025_v26 }
 0xdab   : > { %5276 = vmatmul.msk.f32.vlgmr.msra.gmra.mxu0 %vm1965_vm14, %v2665_v9  ;;  %v5744_v9 = vld [vmem:[#allocation9 + $0x1] ss:$0 sm:$0xff] }
 0xdb2   : > { %v2790_v10 = vpop.f32.mrf.mxu3 }
 0xdb3   : > { %5275 = vmatmul.msk.f32.vlgmr.msra.gmra.mxu2 %vm1965_vm14, %v2790_v10  ;;  %5298 = vmatmul.msk.f32.vlgmr.msrb.gmra.mxu0 %vm3031_vm10, %v3024_v27 }
 0xe19   : > { %v2764_v15 = vpop.f32.mrf.mxu1 }
 0xe20   : > { %v2741_v12 = vpop.f32.mrf.mxu0 }
 0xe21   : > { %v2765_v17 = vadd.f32 %v2764_v15, %v2741_v12 }
 0xe28   : > { %v2841_v14 = vpop.f32.mrf.mxu0 }
 0xe29   : > { %5278 = vmatmul.msk.f32.vlgmr.msrb.gmra.mxu1 %vm1965_vm14, %v2841_v14 }
 0xe30   : > { %v3052_v38 = vpop.f32.mrf.mxu0 }
 0xe31   : > { %v3053_v40 = vadd.f32 %v5741_v36, %v3052_v38  ;;  %v3095_v38 = vld [vmem:[%s8136_s24 + $0x10] sm:$0xff] }
 0xe32   : > { %3120 = vmatpush.msra.mxu1 %v3095_v38 }
 0xe33   : > { %v3057_v44 = vadd.f32 %v5742_v39, %v3053_v40  ;;  %v3094_v39 = vld [vmem:[%s8136_s24 + $0x8] sm:$0xff]  ;;  %v3093_v40 = vld [vmem:[%s8136_s24] sm:$0xff] }
 0xe34   : > { %3121 = vmatpush.msra.mxu1 %v3094_v39 }
 0xe35   : > { %v3060_v46 = vadd.f32 %v5743_v41, %v3057_v44 }
 0xe36   : > { %v2814_v16 = vpop.f32.mrf.mxu2  ;;  %3122 = vmatpush.msra.mxu1 %v3093_v40 }
 0xe37   : > { %v2817_v18 = vadd.f32 %v2814_v16, %v2765_v17  ;;  %v3063_v47 = vsel %vm1893_vm11, %v3060_v46, 0.0 }
 0xea6   : > { %v2865_v20 = vpop.f32.mrf.mxu1 }
 0xea7   : > { %v2868_v21 = vadd.f32 %v2865_v20, %v2817_v18 }
 0xea9   : > { %v2874_v22 = vadd.f32 %v5738_v19, %v2868_v21 }
 0xeab   : > { %v2875_v23 = vadd.f32 %v2874_v22, %v7495_v5 }
 0xead   : > { %v2880_v24 = vsel %vm1893_vm11, %v2875_v23, 0.0 }
 0xeae   : > { %2881 = vadd.xlane.f32.xlu0 %v2880_v24  ;;  %v5745_v24 = vld [vmem:[#allocation11 + $0x1] ss:$0 sm:$0xff] }
 0xeb6   : > { %3064 = vadd.xlane.f32.xlu0 %v3063_v47 }
 0xf21   : > { %v2882_v28 = vpop.xlane.xlu0 %2881 }
 0xf22   : > { %v2883_v5 = vmul.f32 %v2882_v28, %v7380_v13 }
 0xf24   : > { %v2884_v29 = vsub.f32 %v2875_v23, %v2883_v5 }
 0xf26   : > { %v2885_v30 = vmul.f32 %v2884_v29, %v2884_v29 }
 0xf28   : > { %v2886_v31 = vsel %vm1893_vm11, %v2885_v30, 0.0 }
 0xf29   : > { %2887 = vadd.xlane.f32.xlu1 %v2886_v31  ;;  %v3065_v4 = vpop.xlane.xlu0 %3064 }
 0xf2a   : > { %v3066_v6 = vmul.f32 %v3065_v4, %v7380_v13  ;;  %v5750_v4 = vld [vmem:[#allocation12] ss:$0 sm:$0xff] }
 0xf2c   : > { %v7588_v8 = vsub.f32 %v3060_v46, %v3066_v6 }
 0xf2e   : > { %v3068_v10 = vmul.f32 %v7588_v8, %v7588_v8 }
 0xf30   : > { %v3069_v11 = vsel %vm1893_vm11, %v3068_v10, 0.0 }
 0xf31   : > { %3070 = vadd.xlane.f32.xlu0 %v3069_v11 }
 0xf9c   : > { %v2888_v42 = vpop.xlane.xlu1 %2887 }
 0xf9d   : > { %v2889_v43 = vmul.f32 %v2888_v42, %v7380_v13 }
 0xf9f   : > { %v2890_v45 = vadd.f32 1e-12, %v2889_v43 }
 0xfa1   : > { %5808 = vrsqrt.f32 %v2890_v45  ;;  %vm2897_vm0 = vweird.f32 %v2890_v45 }
 0xfa4   : > { %v3071_v33 = vpop.xlane.xlu0 %3070 }
 0xfa5   : > { %v3072_v34 = vmul.f32 %v3071_v33, %v7380_v13 }
 0xfa7   : > { %v5809_v48 = vpop.eup %5808  ;;  %v3073_v36 = vadd.f32 1e-12, %v3072_v34 }
 0xfa8   : > { %v2892_v50 = vmul.f32 %v5809_v48, %v2890_v45  ;;  %vm2898_vm12 = vweird.f32 %v5809_v48 }
 0xfa9   : > { %vm2899_vm5 = vmor %vm2897_vm0, %vm2898_vm12  ;;  %vm3080_vm7 = vweird.f32 %v3073_v36 }
 0xfaa   : > { %v2893_v51 = vmul.f32 %v5809_v48, %v2892_v50 }
 0xfac   : > { %v2894_v52 = vmul.f32 0.5, %v2893_v51 }
 0xfae   : > { %v2895_v49 = vsub.f32 1.5, %v2894_v52 }
 0xfb0   : > { %v2896_v53 = vmul.f32 %v5809_v48, %v2895_v49 }
 0xfb2   : > { %v2900_v55 = vsel %vm2899_vm5, %v5809_v48, %v2896_v53 }
 0xfb3   : > { %v2901_v56 = vmul.f32 %v2900_v55, %v2884_v29 }
 0xfb5   : > { %v2905_v58 = vmul.f32 %v5739_v54, %v2901_v56  ;;  %v5746_v56 = vld [vmem:[%s8117_s0 + $0x1] ss:$0 sm:$0xff] }
 0xfb7   : > { %v2909_v59 = vadd.f32 %v5740_v57, %v2905_v58 }
 0xfb9   : > { %5286 = vmatmul.msk.f32.vlgmr.msra.gmra.mxu3 %vm1893_vm11, %v2909_v59 }
0x103c   : > { %v2940_v12 = vpop.f32.mrf.mxu3 }
0x103d   : > { %v2941_v14 = vadd.f32 %v5744_v9, %v2940_v12 }
0x103f   : > { %v2944_v15 = vmul.f32 0.044715, %v2941_v14  ;;  %v2943_v21 = vmul.f32 0.5, %v2941_v14 }
0x1041   : > { %v2945_v16 = vmul.f32 %v2944_v15, %v2941_v14 }
0x1043   : > { %v2946_v17 = vmul.f32 %v2945_v16, %v2941_v14 }
0x1045   : > { %v2947_v18 = vadd.f32 %v2946_v17, %v2941_v14 }
0x1047   : > { %v2948_v19 = vmul.f32 0.7978846, %v2947_v18 }
0x1049   : > { %5810 = vtanh.f32 %v2948_v19 }
0x104a   : > { %5812 = vrsqrt.f32 %v3073_v36 }
0x104f   : > { %v5811_v20 = vpop.eup %5810 }
0x1050   : > { %v2950_v22 = vadd.f32 1.0, %v5811_v20  ;;  %v5813_v42 = vpop.eup %5812 }
0x1051   : > { %v3075_v45 = vmul.f32 %v5813_v42, %v3073_v36  ;;  %vm3081_vm9 = vweird.f32 %v5813_v42 }
0x1052   : > { %v2951_v23 = vmul.f32 %v2950_v22, %v2943_v21  ;;  %vm3082_vm15 = vmor %vm3080_vm7, %vm3081_vm9 }
0x1053   : > { %v3076_v46 = vmul.f32 %v5813_v42, %v3075_v45 }
0x1054   : > { %5295 = vmatmul.msk.f32.vlgmr.msrb.gmra.mxu2 %vm2417_vm2, %v2951_v23 }
0x1055   : > { %v3077_v48 = vmul.f32 0.5, %v3076_v46 }
0x1057   : > { %v3078_v52 = vsub.f32 1.5, %v3077_v48 }
0x1059   : > { %v3079_v54 = vmul.f32 %v5813_v42, %v3078_v52 }
0x105b   : > { %v3083_v60 = vsel %vm3082_vm15, %v5813_v42, %v3079_v54 }
0x105c   : > { %v3084_v63 = vmul.f32 %v3083_v60, %v7588_v8 }
0x105e   : > { %v3088_v2 = vmul.f32 %v5748_v0, %v3084_v63 }
0x1060   : > { %v7612_v3 = vadd.f32 %v5749_v37, %v3088_v2  ;;  %v3451_v37 = vld [vmem:[%s8139_s19 + $0x8] sm:$0xff] }
0x10d7   : > { %v2986_v25 = vpop.f32.mrf.mxu2 }
0x10d8   : > { %v2987_v26 = vadd.f32 %v5745_v24, %v2986_v25 }
0x10da   : > { %v2989_v27 = vadd.f32 %v2987_v26, %v2909_v59  ;;  %v5747_v59 = vld [vmem:[%s8119_s26 + $0x1] ss:$0 sm:$0xff] }
0x10dc   : > { %v2994_v28 = vsel %vm1893_vm11, %v2989_v27, 0.0 }
0x10dd   : > { %2995 = vadd.xlane.f32.xlu2 %v2994_v28 }
0x1150   : > { %v2996_v5 = vpop.xlane.xlu2 %2995 }
0x1151   : > { %v2997_v29 = vmul.f32 %v2996_v5, %v7380_v13 }
0x1153   : > { %v2998_v30 = vsub.f32 %v2989_v27, %v2997_v29  ;;  %v7647_v27 = vld [vmem:[%s7415_s17] ss:$0 sm:$0xff]  ;;  %s8141_s17 = sld [smem:[#allocation80_spill]] }
0x1155   : > { %v2999_v31 = vmul.f32 %v2998_v30, %v2998_v30 }
0x1157   : > { %v3000_v32 = vsel %vm1893_vm11, %v2999_v31, 0.0 }
0x1158   : > { %3001 = vadd.xlane.f32.xlu1 %v3000_v32 }
0x11cb   : > { %v3002_v41 = vpop.xlane.xlu1 %3001 }
0x11cc   : > { %v3003_v43 = vmul.f32 %v3002_v41, %v7380_v13 }
0x11ce   : > { %v3004_v44 = vadd.f32 1e-12, %v3003_v43 }
0x11d0   : > { %5814 = vrsqrt.f32 %v3004_v44  ;;  %vm3011_vm3 = vweird.f32 %v3004_v44 }
0x11d6   : > { %v5815_v47 = vpop.eup %5814 }
0x11d7   : > { %v3006_v50 = vmul.f32 %v5815_v47, %v3004_v44  ;;  %vm3012_vm13 = vweird.f32 %v5815_v47 }
0x11d8   : > { %vm3013_vm1 = vmor %vm3011_vm3, %vm3012_vm13 }
0x11d9   : > { %v3007_v51 = vmul.f32 %v5815_v47, %v3006_v50 }
0x11db   : > { %v3008_v49 = vmul.f32 0.5, %v3007_v51 }
0x11dd   : > { %v3009_v53 = vsub.f32 1.5, %v3008_v49 }
0x11df   : > { %v3010_v55 = vmul.f32 %v5815_v47, %v3009_v53 }
0x11e1   : > { %v3014_v57 = vsel %vm3013_vm1, %v5815_v47, %v3010_v55 }
0x11e2   : > { %v3015_v58 = vmul.f32 %v3014_v57, %v2998_v30 }
0x11e4   : > { %v3019_v61 = vmul.f32 %v5746_v56, %v3015_v58 }
0x11e6   : > { %v7605_v62 = vadd.f32 %v5747_v59, %v3019_v61 }
0x11e8   : > { %5299 = vmatmul.msk.f32.vlgmr.msra.gmra.mxu1 %vm1893_vm11, %v7605_v62 }
0x11f0   : > { %5300 = vmatmul.msk.f32.gmra.mxu1 %vm1893_vm11, %v7612_v3 }
0x1265   : > { %v3124_v6 = vpop.f32.mrf.mxu1 }
0x1266   : > { %v3125_v9 = vadd.f32 %v5750_v4, %v3124_v6 }
0x1268   : > { %3171 = vrot.lane.b32.xlu2 %v3125_v9, %s8122_s29  ;;  %3167 = vrot.lane.b32.xlu0 %v3125_v9, %s8121_s6 }
0x126d   : > { %v3127_v10 = vpop.f32.mrf.mxu1 }
0x126e   : > { %v3128_v8 = vadd.f32 %v5750_v4, %v3127_v10 }
0x1270   : > { %3132 = vrot.lane.b32.xlu2 %v3125_v9, %s8120_s2  ;;  %3169 = vrot.lane.b32.xlu0 %v3128_v8, %s8121_s6  ;;  %v5686_v32 = vpack.i.bf16 %v3125_v9, %v3128_v8 }
0x1271   : > { %3173 = vrot.lane.b32.xlu1 %v3128_v8, %s8122_s29 }
0x1278   : > { %3206 = vrot.lane.b32.xlu2 %v3125_v9, %s8123_s21  ;;  %3212 = vrot.lane.b32.xlu0 %v3128_v8, %s8125_s9 }
0x1279   : > { %3134 = vrot.lane.b32.xlu1 %v3128_v8, %s8120_s2 }
0x1280   : > { %3208 = vrot.lane.b32.xlu2 %v3128_v8, %s8123_s21  ;;  %3251 = vrot.lane.b32.xlu0 %v3128_v8, %s8124_s8 }
0x1281   : > { %3210 = vrot.lane.b32.xlu1 %v3125_v9, %s8125_s9 }
0x1288   : > { %3245 = vrot.lane.b32.xlu0 %v3125_v9, %s8126_s7 }
0x1289   : > { %3249 = vrot.lane.b32.xlu1 %v3125_v9, %s8124_s8 }
0x1291   : > { %3247 = vrot.lane.b32.xlu1 %v3128_v8, %s8126_s7 }
0x12c2   : > { %v3172_v12 = vpop.permute.xlu2 %3171 }
0x12ca   : > { %v3133_v16 = vpop.permute.xlu2 %3132 }
0x12d2   : > { %v3207_v21 = vpop.permute.xlu2 %3206 }
0x12da   : > { %v3168_v11 = vpop.permute.xlu0 %3167  ;;  %v3209_v23 = vpop.permute.xlu2 %3208 }
0x12e2   : > { %v3170_v14 = vpop.permute.xlu0 %3169 }
0x12e3   : > { %v3174_v15 = vpop.permute.xlu1 %3173 }
0x12e4   : > { %5305 = vmatpush.xpose.msk.msra.mxu0 %vm1965_vm14, %v3174_v15 }
0x12e8   : > { %5306 = vmatpush.xpose.msk.msra.mxu0 %vm1965_vm14, %v3172_v12 }
0x12ea   : > { %v3213_v17 = vpop.permute.xlu0 %3212 }
0x12eb   : > { %v3135_v18 = vpop.permute.xlu1 %3134  ;;  %5307 = vmatmul.msk.f32.vlgmr.msra.gmra.mxu0 %vm1965_vm14, %v3168_v11  ;;  %5309 = vmatpush.xpose.msk.msra.mxu2 %vm1965_vm14, %v3213_v17 }
0x12ec   : > { %5301 = vmatpush.xpose.msk.msrb.mxu3 %vm1965_vm14, %v3135_v18 }
0x12f0   : > { %5302 = vmatpush.xpose.msk.msrb.mxu3 %vm1965_vm14, %v3133_v16 }
0x12f2   : > { %v3252_v19 = vpop.permute.xlu0 %3251 }
0x12f3   : > { %5303 = vmatmul.msk.f32.vlgmr.msrb.gmra.mxu3 %vm1965_vm14, %v3125_v9  ;;  %v3211_v20 = vpop.permute.xlu1 %3210  ;;  %5308 = vmatmul.msk.f32.gmra.mxu0 %vm1965_vm14, %v3170_v14 }
0x12f4   : > { %5310 = vmatpush.xpose.msk.msra.mxu2 %vm1965_vm14, %v3211_v20  ;;  %5313 = vmatpush.xpose.msk.msrb.mxu1 %vm1965_vm14, %v3252_v19 }
0x12f7   : > { %5311 = vmatmul.msk.f32.vlgmr.msra.gmra.mxu2 %vm1965_vm14, %v3207_v21 }
0x12f8   : > { %3473 = vmatpush.msrb.mxu2 %v3451_v37 }
0x12fa   : > { %v3246_v24 = vpop.permute.xlu0 %3245 }
0x12fb   : > { %5304 = vmatmul.msk.f32.gmra.mxu3 %vm1965_vm14, %v3128_v8  ;;  %v3250_v22 = vpop.permute.xlu1 %3249 }
0x12fc   : > { %5314 = vmatpush.xpose.msk.msrb.mxu1 %vm1965_vm14, %v3250_v22 }
0x12ff   : > { %5312 = vmatmul.msk.f32.gmra.mxu2 %vm1965_vm14, %v3209_v23  ;;  %5315 = vmatmul.msk.f32.vlgmr.msrb.gmra.mxu1 %vm1965_vm14, %v3246_v24 }
0x1303   : > { %v3248_v25 = vpop.permute.xlu1 %3247 }
0x1307   : > { %5316 = vmatmul.msk.f32.gmra.mxu1 %vm1965_vm14, %v3248_v25 }
0x1368   : > { %v3200_v26 = vpop.f32.mrf.mxu0 }
0x1369   : > { %v3286_v28 = vadd.f32 %v7647_v27, %v3200_v26 }
0x136b   : > { %v3298_v5 = vsel %vm3031_vm10, %v3286_v28, -inf }
0x136c   : > { %3299 = vmax.xlane.f32.xlu2 %v3298_v5 }
0x1370   : > { %v3203_v29 = vpop.f32.mrf.mxu0 }
0x1371   : > { %v3287_v30 = vadd.f32 %v7647_v27, %v3203_v29 }
0x1373   : > { %v3301_v31 = vsel %vm3031_vm10, %v3287_v30, -inf }
0x1374   : > { %3302 = vmax.xlane.f32.xlu0 %v3301_v31 }
0x1376   : > { %v3161_v45 = vpop.f32.mrf.mxu3 }
0x1377   : > { %v3284_v50 = vadd.f32 %v7647_v27, %v3161_v45 }
0x1379   : > { %v3292_v49 = vsel %vm3031_vm10, %v3284_v50, -inf }
0x137a   : > { %v3239_v52 = vpop.f32.mrf.mxu2 }
0x137b   : > { %v3288_v55 = vadd.f32 %v7647_v27, %v3239_v52 }
0x137c   : > { %v3278_v33 = vpop.f32.mrf.mxu1 }
0x137d   : > { %v7655_v34 = vadd.f32 %v7647_v27, %v3278_v33  ;;  %v3304_v57 = vsel %vm3031_vm10, %v3288_v55, -inf }
0x137e   : > { %v3164_v54 = vpop.f32.mrf.mxu3 }
0x137f   : > { %v3310_v35 = vsel %vm3031_vm10, %v7655_v34, -inf  ;;  %v3285_v56 = vadd.f32 %v7647_v27, %v3164_v54 }
0x1381   : > { %v3295_v58 = vsel %vm3031_vm10, %v3285_v56, -inf }
0x1382   : > { %v3242_v59 = vpop.f32.mrf.mxu2 }
0x1383   : > { %v3289_v61 = vadd.f32 %v7647_v27, %v3242_v59 }
0x1384   : > { %5687 = vrot.lane.b32.xlu2 %v5686_v32, %s8127_s12  ;;  %v3281_v60 = vpop.f32.mrf.mxu1 }
0x1385   : > { %v3291_v63 = vadd.f32 %v7647_v27, %v3281_v60  ;;  %v3307_v2 = vsel %vm3031_vm10, %v3289_v61, -inf }
0x1387   : > { %v3313_v0 = vsel %vm3031_vm10, %v3291_v63, -inf }
0x13ad   : > { %3311 = vmax.xlane.f32.xlu2 %v3310_v35 }
0x13c5   : > { %5702 = vrot.lane.b32.xlu2 %v5686_v32, %s8130_s16 }
0x13df   : > { %v3300_v36 = vpop.xlane.xlu2 %3299 }
0x13e0   : > { %v3318_v38 = vsub.f32 %v3286_v28, %v3300_v36 }
0x13e2   : > { %v3328_v39 = vmul.f32 1.442695, %v3318_v38 }
0x13e4   : > { %5816 = vpow2.f32 %v3328_v39 }
0x13e7   : > { %v5688_v40 = vpop.permute.xlu2 %5687  ;;  %v3303_v41 = vpop.xlane.xlu0 %3302 }
0x13e8   : > { %v5689_v42 = vunpack.i.l.bf16 %v5688_v40  ;;  %v3319_v43 = vsub.f32 %v3287_v30, %v3303_v41  ;;  %v5690_v46 = vunpack.i.h.bf16 %v5688_v40 }
0x13ea   : > { %v5817_v44 = vpop.eup %5816  ;;  %v3330_v47 = vmul.f32 1.442695, %v3319_v43  ;;  %3442 = vmatpush.msrb.mxu0 %v5689_v42 }
0x13eb   : > { %v3346_v48 = vsel %vm3031_vm10, %v5817_v44, 0.0 }
0x13ec   : > { %5818 = vpow2.f32 %v3330_v47  ;;  %3347 = vadd.xlane.f32.xlu1 %v3346_v48  ;;  %3443 = vmatpush.msrb.mxu0 %v5690_v46 }
0x13f2   : > { %v5819_v51 = vpop.eup %5818 }
0x13f3   : > { %v3349_v53 = vsel %vm3031_vm10, %v5819_v51, 0.0 }
0x13f4   : > { %3293 = vmax.xlane.f32.xlu1 %v3292_v49  ;;  %3350 = vadd.xlane.f32.xlu0 %v3349_v53 }
0x13fc   : > { %3305 = vmax.xlane.f32.xlu1 %v3304_v57  ;;  %3296 = vmax.xlane.f32.xlu0 %v3295_v58 }
0x1404   : > { %3314 = vmax.xlane.f32.xlu1 %v3313_v0  ;;  %3308 = vmax.xlane.f32.xlu0 %v3307_v2 }
0x141d   : > { %5692 = vrot.lane.b32.xlu1 %v5686_v32, %s8128_s13 }
0x1420   : > { %v3312_v4 = vpop.xlane.xlu2 %3311 }
0x1421   : > { %v3322_v31 = vsub.f32 %v7655_v34, %v3312_v4 }
0x1423   : > { %v3336_v35 = vmul.f32 1.442695, %v3322_v31  ;;  %v5751_v31 = vld [vmem:[#allocation14] ss:$0 sm:$0xff] }
0x1425   : > { %5697 = vrot.lane.b32.xlu1 %v5686_v32, %s8129_s14 }
0x1428   : > { %v5703_v6 = vpop.permute.xlu2 %5702 }
0x1429   : > { %v5704_v9 = vunpack.i.l.bf16 %v5703_v6  ;;  %v5705_v10 = vunpack.i.h.bf16 %v5703_v6 }
0x142b   : > { %3603 = vmatpush.msra.mxu2 %v5704_v9 }
0x142d   : > { %3604 = vmatpush.msra.mxu2 %v5705_v10 }
0x145f   : > { %v3348_v8 = vpop.xlane.xlu1 %3347 }
0x1460   : > { %5820 = vrcp.f32 %v3348_v8 }
0x1466   : > { %v5821_v11 = vpop.eup %5820 }
0x1467   : > { %v3374_v12 = vmul.f32 %v5821_v11, %v5817_v44  ;;  %v3294_v14 = vpop.xlane.xlu1 %3293  ;;  %v3351_v15 = vpop.xlane.xlu0 %3350 }
0x1468   : > { %v3316_v16 = vsub.f32 %v3284_v50, %v3294_v14  ;;  %5822 = vrcp.f32 %v3351_v15  ;;  %v3415_v14 = vld [vmem:[%s8139_s19] sm:$0xff]  ;;  %v3545_v15 = vld [vmem:[%s8139_s19 + $0x10] sm:$0xff] }
0x1469   : > { %5319 = vmatmul.msk.f32.vlgmr.msrb.gmra.mxu0 %vm3031_vm10, %v3374_v12  ;;  %3502 = vmatpush.msra.mxu1 %v3415_v14 }
0x146a   : > { %v3324_v17 = vmul.f32 1.442695, %v3316_v16  ;;  %3567 = vmatpush.msra.mxu0 %v3545_v15  ;;  %v3612_v16 = vld [vmem:[%s8139_s19 + $0x18] sm:$0xff] }
0x146b   : > { %3634 = vmatpush.msrb.mxu1 %v3612_v16  ;;  %v5753_v16 = vld [vmem:[#allocation17] ss:$0 sm:$0xff] }
0x146c   : > { %5824 = vpow2.f32 %v3324_v17 }
0x146e   : > { %v5823_v18 = vpop.eup %5822 }
0x146f   : > { %v3306_v19 = vpop.xlane.xlu1 %3305  ;;  %v3297_v20 = vpop.xlane.xlu0 %3296  ;;  %v3375_v21 = vmul.f32 %v5823_v18, %v5819_v51 }
0x1470   : > { %v3320_v22 = vsub.f32 %v3288_v55, %v3306_v19  ;;  %v3317_v25 = vsub.f32 %v3285_v56, %v3297_v20 }
0x1471   : > { %5320 = vmatmul.msk.f32.gmra.mxu0 %vm3031_vm10, %v3375_v21 }
0x1472   : > { %v5825_v23 = vpop.eup %5824  ;;  %v3332_v24 = vmul.f32 1.442695, %v3320_v22  ;;  %v3326_v28 = vmul.f32 1.442695, %v3317_v25 }
0x1473   : > { %v3340_v26 = vsel %vm3031_vm10, %v5825_v23, 0.0 }
0x1474   : > { %5826 = vpow2.f32 %v3332_v24  ;;  %3341 = vadd.xlane.f32.xlu0 %v3340_v26 }
0x1475   : > { %5828 = vpow2.f32 %v3326_v28 }
0x1477   : > { %v3315_v5 = vpop.xlane.xlu1 %3314  ;;  %v3309_v36 = vpop.xlane.xlu0 %3308 }
0x1478   : > { %v3323_v29 = vsub.f32 %v3291_v63, %v3315_v5  ;;  %v3321_v40 = vsub.f32 %v3289_v61, %v3309_v36 }
0x147a   : > { %v5827_v30 = vpop.eup %5826  ;;  %v3338_v32 = vmul.f32 1.442695, %v3323_v29  ;;  %v3334_v43 = vmul.f32 1.442695, %v3321_v40 }
0x147b   : > { %v3352_v33 = vsel %vm3031_vm10, %v5827_v30, 0.0  ;;  %v5829_v38 = vpop.eup %5828 }
0x147c   : > { %5830 = vpow2.f32 %v3338_v32  ;;  %3353 = vadd.xlane.f32.xlu0 %v3352_v33  ;;  %v3343_v42 = vsel %vm3031_vm10, %v5829_v38, 0.0 }
0x147d   : > { %5832 = vpow2.f32 %v3336_v35 }
0x147e   : > { %5834 = vpow2.f32 %v3334_v43 }
0x1482   : > { %v5831_v39 = vpop.eup %5830 }
0x1483   : > { %v3361_v41 = vsel %vm3031_vm10, %v5831_v39, 0.0  ;;  %v5833_v34 = vpop.eup %5832 }
0x1484   : > { %3362 = vadd.xlane.f32.xlu1 %v3361_v41  ;;  %3344 = vadd.xlane.f32.xlu0 %v3343_v42  ;;  %v3358_v44 = vsel %vm3031_vm10, %v5833_v34, 0.0  ;;  %v5835_v46 = vpop.eup %5834 }
0x1485   : > { %v3355_v50 = vsel %vm3031_vm10, %v5835_v46, 0.0 }
0x148c   : > { %3359 = vadd.xlane.f32.xlu0 %v3358_v44 }
0x148f   : > { %v5693_v45 = vpop.permute.xlu1 %5692 }
0x1490   : > { %v5694_v47 = vunpack.i.l.bf16 %v5693_v45  ;;  %v5695_v48 = vunpack.i.h.bf16 %v5693_v45 }
0x1492   : > { %3406 = vmatpush.msra.mxu3 %v5694_v47 }
0x1494   : > { %3407 = vmatpush.msra.mxu3 %v5695_v48  ;;  %3356 = vadd.xlane.f32.xlu0 %v3355_v50 }
0x1497   : > { %v5698_v51 = vpop.permute.xlu1 %5697 }
0x1498   : > { %v5699_v52 = vunpack.i.l.bf16 %v5698_v51  ;;  %v5700_v49 = vunpack.i.h.bf16 %v5698_v51 }
0x149a   : > { %3536 = vmatpush.msrb.mxu3 %v5699_v52 }
0x149c   : > { %3537 = vmatpush.msrb.mxu3 %v5700_v49 }
0x14e6   : > { %v3445_v53 = vpop.f32.mrf.mxu0 }
0x14e7   : > { %5321 = vmatmul.msk.f32.vlgmr.msrb.gmra.mxu2 %vm1965_vm14, %v3445_v53  ;;  %v3342_v54 = vpop.xlane.xlu0 %3341  ;;  %v3711_v53 = vld [vmem:[%s8140_s4 + $0x18] sm:$0xff] }
0x14e8   : > { %5836 = vrcp.f32 %v3342_v54  ;;  %v3710_v54 = vld [vmem:[%s8140_s4 + $0x10] sm:$0xff] }
0x14ee   : > { %v5837_v55 = vpop.eup %5836  ;;  %v3448_v56 = vpop.f32.mrf.mxu0 }
0x14ef   : > { %v3372_v57 = vmul.f32 %v5837_v55, %v5825_v23  ;;  %5322 = vmatmul.msk.f32.gmra.mxu2 %vm1965_vm14, %v3448_v56  ;;  %v3354_v58 = vpop.xlane.xlu0 %3353  ;;  %v3709_v55 = vld [vmem:[%s8140_s4 + $0x8] sm:$0xff]  ;;  %v3708_v56 = vld [vmem:[%s8140_s4] sm:$0xff] }
0x14f1   : > { %5317 = vmatmul.msk.f32.vlgmr.msra.gmra.mxu3 %vm3031_vm10, %v3372_v57 }
0x14f2   : > { %3734 = vmatpush.msra.mxu3 %v3711_v53 }
0x14f4   : > { %3735 = vmatpush.msra.mxu3 %v3710_v54 }
0x14f6   : > { %3736 = vmatpush.msra.mxu3 %v3709_v55 }
0x14f7   : > { %v3345_v59 = vpop.xlane.xlu0 %3344  ;;  %v3363_v0 = vpop.xlane.xlu1 %3362 }
0x14f8   : > { %5838 = vrcp.f32 %v3345_v59  ;;  %3737 = vmatpush.msra.mxu3 %v3708_v56  ;;  %v5755_v56 = vld [vmem:[#allocation20] ss:$0 sm:$0xff] }
0x14f9   : > { %5840 = vrcp.f32 %v3354_v58 }
0x14fe   : > { %v5839_v60 = vpop.eup %5838 }
0x14ff   : > { %v3360_v61 = vpop.xlane.xlu0 %3359  ;;  %v3373_v63 = vmul.f32 %v5839_v60, %v5829_v38  ;;  %v5841_v2 = vpop.eup %5840 }
0x1500   : > { %5842 = vrcp.f32 %v3360_v61  ;;  %v3376_v9 = vmul.f32 %v5841_v2, %v5827_v30 }
0x1501   : > { %5318 = vmatmul.msk.f32.gmra.mxu3 %vm3031_vm10, %v3373_v63  ;;  %5844 = vrcp.f32 %v3363_v0 }
0x1506   : > { %v5843_v37 = vpop.eup %5842 }
0x1507   : > { %v3378_v4 = vmul.f32 %v5843_v37, %v5833_v34  ;;  %v3357_v6 = vpop.xlane.xlu0 %3356  ;;  %v5845_v10 = vpop.eup %5844 }
0x1508   : > { %5846 = vrcp.f32 %v3357_v6  ;;  %v3379_v12 = vmul.f32 %v5845_v10, %v5831_v39 }
0x1509   : > { %5329 = vmatmul.msk.f32.vlgmr.msra.gmra.mxu2 %vm3031_vm10, %v3378_v4  ;;  %5325 = vmatmul.msk.f32.vlgmr.msrb.gmra.mxu3 %vm3031_vm10, %v3376_v9 }
0x150e   : > { %v5847_v8 = vpop.eup %5846 }
0x150f   : > { %v3377_v11 = vmul.f32 %v5847_v8, %v5835_v46 }
0x1511   : > { %5330 = vmatmul.msk.f32.gmra.mxu2 %vm3031_vm10, %v3379_v12  ;;  %5326 = vmatmul.msk.f32.gmra.mxu3 %vm3031_vm10, %v3377_v11  ;;  %v5752_v11 = vld [vmem:[#allocation15] ss:$0 sm:$0xff] }
0x156a   : > { %v3475_v18 = vpop.f32.mrf.mxu2 }
0x1572   : > { %v3478_v19 = vpop.f32.mrf.mxu2 }
0x1574   : > { %v3409_v17 = vpop.f32.mrf.mxu3 }
0x1575   : > { %5323 = vmatmul.msk.f32.vlgmr.msra.gmra.mxu1 %vm1965_vm14, %v3409_v17 }
0x1584   : > { %v3412_v20 = vpop.f32.mrf.mxu3 }
0x1585   : > { %5324 = vmatmul.msk.f32.gmra.mxu1 %vm1965_vm14, %v3412_v20 }
0x158c   : > { %v3606_v21 = vpop.f32.mrf.mxu2  ;;  %v3539_v22 = vpop.f32.mrf.mxu3 }
0x158d   : > { %5327 = vmatmul.msk.f32.vlgmr.msra.gmra.mxu0 %vm1965_vm14, %v3539_v22  ;;  %5331 = vmatmul.msk.f32.vlgmr.msrb.gmra.mxu1 %vm1965_vm14, %v3606_v21 }
0x1594   : > { %v3609_v23 = vpop.f32.mrf.mxu2  ;;  %v3542_v24 = vpop.f32.mrf.mxu3 }
0x1595   : > { %5328 = vmatmul.msk.f32.gmra.mxu0 %vm1965_vm14, %v3542_v24  ;;  %5332 = vmatmul.msk.f32.gmra.mxu1 %vm1965_vm14, %v3609_v23 }
0x15f2   : > { %v3504_v25 = vpop.f32.mrf.mxu1 }
0x15f3   : > { %v3505_v28 = vadd.f32 %v3504_v25, %v3475_v18 }
0x1602   : > { %v3507_v26 = vpop.f32.mrf.mxu1 }
0x1603   : > { %v3508_v35 = vadd.f32 %v3507_v26, %v3478_v19  ;;  %v3770_v26 = vld [vmem:[%s8141_s17 + $0x38] sm:$0xff] }
0x1604   : > { %3789 = vmatpush.msrb.mxu0 %v3770_v26 }
0x160a   : > { %v3569_v5 = vpop.f32.mrf.mxu0  ;;  %v3636_v29 = vpop.f32.mrf.mxu1 }
0x160b   : > { %v3575_v30 = vadd.f32 %v3569_v5, %v3505_v28  ;;  %v3769_v28 = vld [vmem:[%s8141_s17 + $0x30] sm:$0xff]  ;;  %v3768_v5 = vld [vmem:[%s8141_s17 + $0x28] sm:$0xff] }
0x160c   : > { %3790 = vmatpush.msrb.mxu0 %v3769_v28 }
0x160d   : > { %v3642_v32 = vadd.f32 %v3636_v29, %v3575_v30  ;;  %v3767_v29 = vld [vmem:[%s8141_s17 + $0x20] sm:$0xff]  ;;  %v3766_v30 = vld [vmem:[%s8141_s17 + $0x18] sm:$0xff] }
0x160e   : > { %3791 = vmatpush.msrb.mxu0 %v3768_v5 }
0x160f   : > { %v3648_v33 = vadd.f32 %v5751_v31, %v3642_v32  ;;  %v3764_v32 = vld [vmem:[%s8141_s17 + $0x8] sm:$0xff] }
0x1610   : > { %3792 = vmatpush.msrb.mxu0 %v3767_v29 }
0x1611   : > { %v3650_v36 = vadd.f32 %v3648_v33, %v7605_v62  ;;  %v3763_v33 = vld [vmem:[%s8141_s17] sm:$0xff] }
0x1612   : > { %v3572_v38 = vpop.f32.mrf.mxu0  ;;  %v3639_v41 = vpop.f32.mrf.mxu1  ;;  %3793 = vmatpush.msrb.mxu0 %v3766_v30 }
0x1613   : > { %v3576_v39 = vadd.f32 %v3572_v38, %v3508_v35  ;;  %v3654_v40 = vsel %vm1893_vm11, %v3650_v36, 0.0  ;;  %v5754_v35 = vld [vmem:[#allocation18] ss:$0 sm:$0xff] }
0x1614   : > { %3655 = vadd.xlane.f32.xlu0 %v3654_v40 }
0x1615   : > { %v3643_v42 = vadd.f32 %v3639_v41, %v3576_v39 }
0x1617   : > { %v3649_v43 = vadd.f32 %v5751_v31, %v3643_v42  ;;  %v3765_v31 = vld [vmem:[%s8141_s17 + $0x10] sm:$0xff] }
0x1618   : > { %3794 = vmatpush.msrb.mxu0 %v3765_v31 }
0x1619   : > { %v3651_v34 = vadd.f32 %v3649_v43, %v7612_v3 }
0x161a   : > { %3795 = vmatpush.msrb.mxu0 %v3764_v32 }
0x161b   : > { %v3657_v44 = vsel %vm1893_vm11, %v3651_v34, 0.0 }
0x161c   : > { %3658 = vadd.xlane.f32.xlu0 %v3657_v44  ;;  %3796 = vmatpush.msrb.mxu0 %v3763_v33 }
0x1687   : > { %v3656_v45 = vpop.xlane.xlu0 %3655 }
0x1688   : > { %v3660_v46 = vmul.f32 %v3656_v45, %v7380_v13 }
0x168a   : > { %v3662_v62 = vsub.f32 %v3650_v36, %v3660_v46 }
0x168c   : > { %v3664_v47 = vmul.f32 %v3662_v62, %v3662_v62 }
0x168e   : > { %v3666_v48 = vsel %vm1893_vm11, %v3664_v47, 0.0 }
0x168f   : > { %3667 = vadd.xlane.f32.xlu0 %v3666_v48  ;;  %v3659_v50 = vpop.xlane.xlu0 %3658 }
0x1690   : > { %v3661_v51 = vmul.f32 %v3659_v50, %v7380_v13 }
0x1692   : > { %v3663_v52 = vsub.f32 %v3651_v34, %v3661_v51 }
0x1694   : > { %v3665_v49 = vmul.f32 %v3663_v52, %v3663_v52 }
0x1696   : > { %v3669_v3 = vsel %vm1893_vm11, %v3665_v49, 0.0 }
0x1697   : > { %3670 = vadd.xlane.f32.xlu2 %v3669_v3 }
0x1702   : > { %v3668_v57 = vpop.xlane.xlu0 %3667 }
0x1703   : > { %v3672_v58 = vmul.f32 %v3668_v57, %v7380_v13 }
0x1705   : > { %v3674_v59 = vadd.f32 1e-12, %v3672_v58 }
0x1707   : > { %5848 = vrsqrt.f32 %v3674_v59  ;;  %vm3682_vm6 = vweird.f32 %v3674_v59 }
0x170a   : > { %v3671_v60 = vpop.xlane.xlu2 %3670 }
0x170b   : > { %v3673_v61 = vmul.f32 %v3671_v60, %v7380_v13 }
0x170d   : > { %v5849_v63 = vpop.eup %5848  ;;  %v3675_v0 = vadd.f32 1e-12, %v3673_v61 }
0x170e   : > { %v3677_v2 = vmul.f32 %v5849_v63, %v3674_v59  ;;  %vm3683_vm4 = vweird.f32 %v5849_v63 }
0x170f   : > { %5850 = vrsqrt.f32 %v3675_v0  ;;  %vm3684_vm8 = vmor %vm3682_vm6, %vm3683_vm4  ;;  %vm3692_vm0 = vweird.f32 %v3675_v0 }
0x1710   : > { %v3678_v37 = vmul.f32 %v5849_v63, %v3677_v2 }
0x1712   : > { %v3679_v4 = vmul.f32 0.5, %v3678_v37 }
0x1714   : > { %v3680_v6 = vsub.f32 1.5, %v3679_v4 }
0x1715   : > { %v5851_v9 = vpop.eup %5850 }
0x1716   : > { %v3681_v10 = vmul.f32 %v5849_v63, %v3680_v6  ;;  %v3687_v8 = vmul.f32 %v5851_v9, %v3675_v0  ;;  %vm3693_vm12 = vweird.f32 %v5851_v9 }
0x1717   : > { %vm3694_vm5 = vmor %vm3692_vm0, %vm3693_vm12 }
0x1718   : > { %v3685_v12 = vsel %vm3684_vm8, %v5849_v63, %v3681_v10  ;;  %v3688_v14 = vmul.f32 %v5851_v9, %v3687_v8 }
0x1719   : > { %v3696_v15 = vmul.f32 %v3685_v12, %v3662_v62 }
0x171a   : > { %v3689_v17 = vmul.f32 0.5, %v3688_v14 }
0x171b   : > { %v3701_v18 = vmul.f32 %v5752_v11, %v3696_v15 }
0x171c   : > { %v3690_v19 = vsub.f32 1.5, %v3689_v17  ;;  %v5339_v17 = vld [vmem:[%s8136_s24 + $0x30] sm:$0xff] }
0x171d   : > { %v3706_v20 = vadd.f32 %v5753_v16, %v3701_v18  ;;  %v5338_v18 = vld [vmem:[%s8136_s24 + $0x28] sm:$0xff] }
0x171e   : > { %v3691_v21 = vmul.f32 %v5851_v9, %v3690_v19  ;;  %v5337_v19 = vld [vmem:[%s8136_s24 + $0x20] sm:$0xff] }
0x171f   : > { %5333 = vmatmul.msk.f32.vlgmr.msra.gmra.mxu3 %vm1893_vm11, %v3706_v20 }
0x1720   : > { %v3695_v22 = vsel %vm3694_vm5, %v5851_v9, %v3691_v21 }
0x1721   : > { %v3697_v23 = vmul.f32 %v3695_v22, %v3663_v52 }
0x1723   : > { %v3702_v24 = vmul.f32 %v5752_v11, %v3697_v23 }
0x1725   : > { %v3707_v25 = vadd.f32 %v5753_v16, %v3702_v24  ;;  %v5340_v16 = vld [vmem:[%s8136_s24 + $0x38] sm:$0xff] }
0x1726   : > { %3890 = vmatpush.msrb.mxu2 %v5340_v16 }
0x1727   : > { %5334 = vmatmul.msk.f32.gmra.mxu3 %vm1893_vm11, %v3707_v25 }
0x1728   : > { %3891 = vmatpush.msrb.mxu2 %v5339_v17 }
0x172a   : > { %3892 = vmatpush.msrb.mxu2 %v5338_v18 }
0x172c   : > { %3893 = vmatpush.msrb.mxu2 %v5337_v19 }
0x17a2   : > { %v3739_v36 = vpop.f32.mrf.mxu3 }
0x17a3   : > { %v3740_v38 = vadd.f32 %v5754_v35, %v3739_v36 }
0x17a5   : > { %v3747_v39 = vmul.f32 0.044715, %v3740_v38  ;;  %v3745_v51 = vmul.f32 0.5, %v3740_v38 }
0x17a7   : > { %v3749_v40 = vmul.f32 %v3747_v39, %v3740_v38 }
0x17a9   : > { %v3751_v41 = vmul.f32 %v3749_v40, %v3740_v38  ;;  %v5757_v40 = vld [vmem:[#allocation23] ss:$0 sm:$0xff] }
0x17aa   : > { %v3742_v42 = vpop.f32.mrf.mxu3 }
0x17ab   : > { %v3753_v43 = vadd.f32 %v3751_v41, %v3740_v38  ;;  %v3743_v34 = vadd.f32 %v5754_v35, %v3742_v42  ;;  %v5756_v35 = vld [vmem:[#allocation21] ss:$0 sm:$0xff] }
0x17ad   : > { %v3755_v44 = vmul.f32 0.7978846, %v3753_v43  ;;  %v3748_v45 = vmul.f32 0.044715, %v3743_v34  ;;  %v3746_v53 = vmul.f32 0.5, %v3743_v34 }
0x17af   : > { %5852 = vtanh.f32 %v3755_v44  ;;  %v3750_v46 = vmul.f32 %v3748_v45, %v3743_v34 }
0x17b1   : > { %v3752_v62 = vmul.f32 %v3750_v46, %v3743_v34 }
0x17b3   : > { %v3754_v47 = vadd.f32 %v3752_v62, %v3743_v34 }
0x17b5   : > { %v5853_v48 = vpop.eup %5852  ;;  %v3756_v50 = vmul.f32 0.7978846, %v3754_v47 }
0x17b6   : > { %v3759_v52 = vadd.f32 1.0, %v5853_v48  ;;  %v5758_v48 = vld [vmem:[#allocation12 + $0x1] ss:$0 sm:$0xff] }
0x17b7   : > { %5854 = vtanh.f32 %v3756_v50 }
0x17b8   : > { %v3761_v49 = vmul.f32 %v3759_v52, %v3745_v51 }
0x17ba   : > { %5335 = vmatmul.msk.f32.vlgmr.msrb.gmra.mxu0 %vm2417_vm2, %v3761_v49 }
0x17bd   : > { %v5855_v3 = vpop.eup %5854 }
0x17be   : > { %v3760_v54 = vadd.f32 1.0, %v5855_v3 }
0x17c0   : > { %v3762_v55 = vmul.f32 %v3760_v54, %v3746_v53 }
0x17c2   : > { %5336 = vmatmul.msk.f32.gmra.mxu0 %vm2417_vm2, %v3762_v55 }
0x1837   : > { %v3798_v57 = vpop.f32.mrf.mxu0 }
0x1838   : > { %v3799_v58 = vadd.f32 %v5755_v56, %v3798_v57 }
0x183a   : > { %v3804_v59 = vadd.f32 %v3799_v58, %v3706_v20 }
0x183c   : > { %v3808_v60 = vsel %vm1893_vm11, %v3804_v59, 0.0 }
0x183d   : > { %3809 = vadd.xlane.f32.xlu0 %v3808_v60 }
0x183f   : > { %v3801_v61 = vpop.f32.mrf.mxu0 }
0x1840   : > { %v3802_v63 = vadd.f32 %v5755_v56, %v3801_v61 }
0x1842   : > { %v3805_v0 = vadd.f32 %v3802_v63, %v3707_v25 }
0x1844   : > { %v3811_v2 = vsel %vm1893_vm11, %v3805_v0, 0.0 }
0x1845   : > { %3812 = vadd.xlane.f32.xlu0 %v3811_v2 }
0x18b0   : > { %v3810_v37 = vpop.xlane.xlu0 %3809 }
0x18b1   : > { %v3814_v4 = vmul.f32 %v3810_v37, %v7380_v13 }
0x18b3   : > { %v3816_v6 = vsub.f32 %v3804_v59, %v3814_v4 }
0x18b5   : > { %v3818_v9 = vmul.f32 %v3816_v6, %v3816_v6 }
0x18b7   : > { %v3820_v10 = vsel %vm1893_vm11, %v3818_v9, 0.0 }
0x18b8   : > { %3821 = vadd.xlane.f32.xlu1 %v3820_v10  ;;  %v3813_v8 = vpop.xlane.xlu0 %3812 }
0x18b9   : > { %v3815_v11 = vmul.f32 %v3813_v8, %v7380_v13 }
0x18bb   : > { %v3817_v12 = vsub.f32 %v3805_v0, %v3815_v11 }
0x18bd   : > { %v3819_v14 = vmul.f32 %v3817_v12, %v3817_v12 }
0x18bf   : > { %v3823_v15 = vsel %vm1893_vm11, %v3819_v14, 0.0 }
0x18c0   : > { %3824 = vadd.xlane.f32.xlu0 %v3823_v15 }
0x192b   : > { %v3822_v20 = vpop.xlane.xlu1 %3821 }
0x192c   : > { %v3826_v21 = vmul.f32 %v3822_v20, %v7380_v13 }
0x192e   : > { %v3828_v22 = vadd.f32 1e-12, %v3826_v21 }
0x1930   : > { %5856 = vrsqrt.f32 %v3828_v22  ;;  %vm3836_vm9 = vweird.f32 %v3828_v22 }
0x1933   : > { %v3825_v23 = vpop.xlane.xlu0 %3824 }
0x1934   : > { %v3827_v24 = vmul.f32 %v3825_v23, %v7380_v13 }
0x1936   : > { %v5857_v25 = vpop.eup %5856  ;;  %v3829_v26 = vadd.f32 1e-12, %v3827_v24 }
0x1937   : > { %v3831_v28 = vmul.f32 %v5857_v25, %v3828_v22  ;;  %vm3837_vm7 = vweird.f32 %v5857_v25 }
0x1938   : > { %5858 = vrsqrt.f32 %v3829_v26  ;;  %vm3838_vm13 = vmor %vm3836_vm9, %vm3837_vm7  ;;  %vm3846_vm3 = vweird.f32 %v3829_v26 }
0x1939   : > { %v3832_v5 = vmul.f32 %v5857_v25, %v3831_v28 }
0x193b   : > { %v3833_v29 = vmul.f32 0.5, %v3832_v5 }
0x193d   : > { %v3834_v30 = vsub.f32 1.5, %v3833_v29 }
0x193e   : > { %v5859_v31 = vpop.eup %5858 }
0x193f   : > { %v3835_v32 = vmul.f32 %v5857_v25, %v3834_v30  ;;  %v3841_v33 = vmul.f32 %v5859_v31, %v3829_v26  ;;  %vm3847_vm15 = vweird.f32 %v5859_v31 }
0x1940   : > { %vm3848_vm1 = vmor %vm3846_vm3, %vm3847_vm15 }
0x1941   : > { %v3839_v36 = vsel %vm3838_vm13, %v5857_v25, %v3835_v32  ;;  %v3842_v38 = vmul.f32 %v5859_v31, %v3841_v33 }
0x1942   : > { %v3850_v39 = vmul.f32 %v3839_v36, %v3816_v6 }
0x1943   : > { %v3843_v41 = vmul.f32 0.5, %v3842_v38 }
0x1944   : > { %v3855_v42 = vmul.f32 %v5756_v35, %v3850_v39 }
0x1945   : > { %v3844_v43 = vsub.f32 1.5, %v3843_v41 }
0x1946   : > { %v7739_v34 = vadd.f32 %v5757_v40, %v3855_v42 }
0x1947   : > { %v3845_v44 = vmul.f32 %v5859_v31, %v3844_v43 }
0x1948   : > { %5341 = vmatmul.msk.f32.vlgmr.msrb.gmra.mxu2 %vm1893_vm11, %v7739_v34 }
0x1949   : > { %v3849_v45 = vsel %vm3848_vm1, %v5859_v31, %v3845_v44  ;;  %vm4674_vm1 = vcmask 253952  }
0x194a   : > { %v3851_v46 = vmul.f32 %v3849_v45, %v3817_v12 }
0x194c   : > { %v3856_v62 = vmul.f32 %v5756_v35, %v3851_v46 }
0x194e   : > { %v7743_v47 = vadd.f32 %v5757_v40, %v3856_v62 }
0x1950   : > { %5342 = vmatmul.msk.f32.gmra.mxu2 %vm1893_vm11, %v7743_v47 }
0x19cb   : > { %v3895_v50 = vpop.f32.mrf.mxu2 }
0x19cc   : > { %v3896_v51 = vadd.f32 %v5758_v48, %v3895_v50 }
0x19ce   : > { %3938 = vrot.lane.b32.xlu2 %v3896_v51, %s8121_s6  ;;  %3942 = vrot.lane.b32.xlu0 %v3896_v51, %s8122_s29 }
0x19d3   : > { %v3898_v52 = vpop.f32.mrf.mxu2 }
0x19d4   : > { %v3899_v49 = vadd.f32 %v5758_v48, %v3898_v52 }
0x19d6   : > { %3983 = vrot.lane.b32.xlu2 %v3899_v49, %s8125_s9  ;;  %3940 = vrot.lane.b32.xlu0 %v3899_v49, %s8121_s6  ;;  %v5706_v12 = vpack.i.bf16 %v3896_v51, %v3899_v49  ;;  %s8144_s6 = sld [smem:[#allocation90_spill]] }
0x19d7   : > { %3944 = vrot.lane.b32.xlu1 %v3899_v49, %s8122_s29  ;;  %s5405_s29 = sshll.u32 %s6955_s18, 4 }
0x19de   : > { %3981 = vrot.lane.b32.xlu2 %v3896_v51, %s8125_s9  ;;  %3903 = vrot.lane.b32.xlu0 %v3896_v51, %s8120_s2  ;;  %s8142_s9 = sld [smem:[#allocation84_spill]] }
0x19df   : > { %3905 = vrot.lane.b32.xlu1 %v3899_v49, %s8120_s2  ;;  %s8143_s2 = sld [smem:[#allocation86_spill]] }
0x19e6   : > { %3979 = vrot.lane.b32.xlu2 %v3899_v49, %s8123_s21  ;;  %4020 = vrot.lane.b32.xlu0 %v3896_v51, %s8124_s8 }
0x19e7   : > { %4022 = vrot.lane.b32.xlu1 %v3899_v49, %s8124_s8 }
0x19ee   : > { %3977 = vrot.lane.b32.xlu0 %v3896_v51, %s8123_s21  ;;  %s4801_s21 = sand.u32 1, %s6955_s18  }
0x19ef   : > { %4016 = vrot.lane.b32.xlu1 %v3896_v51, %s8126_s7  ;;  %s7908_s0 = scalar_lea.sflag [#allocation34], %s4801_s21 }
0x19f7   : > { %4018 = vrot.lane.b32.xlu1 %v3899_v49, %s8126_s7  ;;  %s8145_s7 = sld [smem:[#allocation93_spill]] }
0x19fd   : > { %s4831_s15 = scalar_lea.hbm %s8145_s7, %s6955_s18 }
0x19fe   : > { %s4835_s23 = sshll.u32 %s4831_s15, 4  ;;  %s4836_s23 = int_to_ptr.hbm [resolvable:$true] %s4835_s23 }
0x1a28   : > { %v3939_v3 = vpop.permute.xlu2 %3938 }
0x1a30   : > { %v3984_v53 = vpop.permute.xlu2 %3983 }
0x1a31   : > { %5351 = vmatpush.xpose.msk.msra.mxu0 %vm1965_vm14, %v3984_v53 }
0x1a38   : > { %v3982_v54 = vpop.permute.xlu2 %3981 }
0x1a39   : > { %5352 = vmatpush.xpose.msk.msra.mxu0 %vm1965_vm14, %v3982_v54 }
0x1a40   : > { %v3943_v55 = vpop.permute.xlu0 %3942  ;;  %v3980_v2 = vpop.permute.xlu2 %3979 }
0x1a48   : > { %v3941_v56 = vpop.permute.xlu0 %3940 }
0x1a49   : > { %v3945_v57 = vpop.permute.xlu1 %3944 }
0x1a4a   : > { %5347 = vmatpush.xpose.msk.msrb.mxu3 %vm1965_vm14, %v3945_v57  ;;  %v5364_v57 = vld [vmem:[%s8139_s19 + $0x28] sm:$0xff] }
0x1a4b   : > { %4245 = vmatpush.msrb.mxu0 %v5364_v57 }
0x1a4e   : > { %5348 = vmatpush.xpose.msk.msrb.mxu3 %vm1965_vm14, %v3943_v55 }
0x1a50   : > { %v3904_v58 = vpop.permute.xlu0 %3903 }
0x1a51   : > { %v3906_v59 = vpop.permute.xlu1 %3905  ;;  %5349 = vmatmul.msk.f32.vlgmr.msrb.gmra.mxu3 %vm1965_vm14, %v3939_v3 }
0x1a52   : > { %5343 = vmatpush.xpose.msk.msra.mxu1 %vm1965_vm14, %v3906_v59 }
0x1a56   : > { %5344 = vmatpush.xpose.msk.msra.mxu1 %vm1965_vm14, %v3904_v58 }
0x1a58   : > { %v4021_v60 = vpop.permute.xlu0 %4020 }
0x1a59   : > { %v4023_v61 = vpop.permute.xlu1 %4022  ;;  %5345 = vmatmul.msk.f32.vlgmr.msra.gmra.mxu1 %vm1965_vm14, %v3896_v51  ;;  %5350 = vmatmul.msk.f32.gmra.mxu3 %vm1965_vm14, %v3941_v56 }
0x1a5a   : > { %5355 = vmatpush.xpose.msk.msra.mxu2 %vm1965_vm14, %v4023_v61 }
0x1a5e   : > { %5356 = vmatpush.xpose.msk.msra.mxu2 %vm1965_vm14, %v4021_v60 }
0x1a60   : > { %v3978_v63 = vpop.permute.xlu0 %3977 }
0x1a61   : > { %v4017_v0 = vpop.permute.xlu1 %4016  ;;  %5346 = vmatmul.msk.f32.gmra.mxu1 %vm1965_vm14, %v3899_v49  ;;  %5353 = vmatmul.msk.f32.vlgmr.msra.gmra.mxu0 %vm1965_vm14, %v3978_v63 }
0x1a62   : > { %5357 = vmatmul.msk.f32.vlgmr.msra.gmra.mxu2 %vm1965_vm14, %v4017_v0 }
0x1a69   : > { %v4019_v37 = vpop.permute.xlu1 %4018  ;;  %5354 = vmatmul.msk.f32.gmra.mxu0 %vm1965_vm14, %v3980_v2 }
0x1a6a   : > { %5358 = vmatmul.msk.f32.gmra.mxu2 %vm1965_vm14, %v4019_v37 }
0x1ad4   : > { %v3971_v4 = vpop.f32.mrf.mxu3 }
0x1ad5   : > { %v4057_v6 = vadd.f32 %v7647_v27, %v3971_v4 }
0x1ad6   : > { %v3932_v24 = vpop.f32.mrf.mxu1 }
0x1ad7   : > { %v4069_v9 = vsel %vm3031_vm10, %v4057_v6, -inf  ;;  %v4055_v28 = vadd.f32 %v7647_v27, %v3932_v24 }
0x1ad8   : > { %4070 = vmax.xlane.f32.xlu0 %v4069_v9 }
0x1ad9   : > { %v4063_v33 = vsel %vm3031_vm10, %v4055_v28, -inf }
0x1adc   : > { %v3974_v10 = vpop.f32.mrf.mxu3 }
0x1add   : > { %v4058_v8 = vadd.f32 %v7647_v27, %v3974_v10 }
0x1ade   : > { %v4010_v14 = vpop.f32.mrf.mxu0  ;;  %v3935_v35 = vpop.f32.mrf.mxu1 }
0x1adf   : > { %v4072_v11 = vsel %vm3031_vm10, %v4058_v8, -inf  ;;  %v4056_v38 = vadd.f32 %v7647_v27, %v3935_v35  ;;  %v4059_v39 = vadd.f32 %v7647_v27, %v4010_v14 }
0x1ae0   : > { %4073 = vmax.xlane.f32.xlu1 %v4072_v11 }
0x1ae1   : > { %v4066_v40 = vsel %vm3031_vm10, %v4056_v38, -inf  ;;  %v4075_v41 = vsel %vm3031_vm10, %v4059_v39, -inf }
0x1ae5   : > { %v4049_v29 = vpop.f32.mrf.mxu2 }
0x1ae6   : > { %v4013_v15 = vpop.f32.mrf.mxu0  ;;  %v4061_v43 = vadd.f32 %v7647_v27, %v4049_v29 }
0x1ae7   : > { %v7783_v16 = vadd.f32 %v7647_v27, %v4013_v15 }
0x1ae8   : > { %v4081_v45 = vsel %vm3031_vm10, %v4061_v43, -inf }
0x1ae9   : > { %v4078_v17 = vsel %vm3031_vm10, %v7783_v16, -inf }
0x1aec   : > { %5707 = vrot.lane.b32.xlu0 %v5706_v12, %s8127_s12  ;;  %s4676_s12 = sld [smem:[#allocation5 + %s6955_s18]] }
0x1aed   : > { %v4052_v42 = vpop.f32.mrf.mxu2 }
0x1aee   : > { %v4062_v44 = vadd.f32 %v7647_v27, %v4052_v42 }
0x1af0   : > { %v4084_v46 = vsel %vm3031_vm10, %v4062_v44, -inf }
0x1b16   : > { %4079 = vmax.xlane.f32.xlu0 %v4078_v17 }
0x1b4b   : > { %v4071_v18 = vpop.xlane.xlu0 %4070 }
0x1b4c   : > { %v4089_v19 = vsub.f32 %v4057_v6, %v4071_v18 }
0x1b4e   : > { %v4099_v20 = vmul.f32 1.442695, %v4089_v19 }
0x1b50   : > { %5860 = vpow2.f32 %v4099_v20 }
0x1b53   : > { %v4074_v21 = vpop.xlane.xlu1 %4073 }
0x1b54   : > { %v4090_v22 = vsub.f32 %v4058_v8, %v4074_v21 }
0x1b56   : > { %v5861_v23 = vpop.eup %5860  ;;  %v4101_v25 = vmul.f32 1.442695, %v4090_v22 }
0x1b57   : > { %v4117_v26 = vsel %vm3031_vm10, %v5861_v23, 0.0 }
0x1b58   : > { %5862 = vpow2.f32 %v4101_v25  ;;  %4118 = vadd.xlane.f32.xlu2 %v4117_v26 }
0x1b5e   : > { %v5863_v5 = vpop.eup %5862  ;;  %v5708_v30 = vpop.permute.xlu0 %5707 }
0x1b5f   : > { %v5709_v31 = vunpack.i.l.bf16 %v5708_v30  ;;  %v4120_v32 = vsel %vm3031_vm10, %v5863_v5, 0.0  ;;  %v5710_v36 = vunpack.i.h.bf16 %v5708_v30 }
0x1b60   : > { %4121 = vadd.xlane.f32.xlu1 %v4120_v32  ;;  %4064 = vmax.xlane.f32.xlu2 %v4063_v33 }
0x1b61   : > { %4214 = vmatpush.msra.mxu3 %v5709_v31 }
0x1b63   : > { %4215 = vmatpush.msra.mxu3 %v5710_v36 }
0x1b68   : > { %4067 = vmax.xlane.f32.xlu1 %v4066_v40  ;;  %4076 = vmax.xlane.f32.xlu2 %v4075_v41 }
0x1b70   : > { %4082 = vmax.xlane.f32.xlu1 %v4081_v45  ;;  %4085 = vmax.xlane.f32.xlu2 %v4084_v46 }
0x1b88   : > { %5712 = vrot.lane.b32.xlu2 %v5706_v12, %s8128_s13  ;;  %s7868_s13 = sand.u32 1, %s6579_s1  }
0x1b89   : > { %v4080_v11 = vpop.xlane.xlu0 %4079  ;;  %s1695_s8 = scalar_lea.vmem [#allocation33], %s7868_s13 }
0x1b8a   : > { %v4092_v17 = vsub.f32 %v7783_v16, %v4080_v11  ;;  %s4833_s27 = sshll.u32 %s1695_s8, 4  ;;  %s4834_s27 = int_to_ptr.vmem [resolvable:$true] %s4833_s27 }
0x1b8c   : > { %v4105_v22 = vmul.f32 1.442695, %v4092_v17 }
0x1b90   : > { %5717 = vrot.lane.b32.xlu2 %v5706_v12, %s8129_s14  ;;  %s5211_s14 = sshll.u32 %s7868_s13, 4 }
0x1b98   : > { %5722 = vrot.lane.b32.xlu2 %v5706_v12, %s8130_s16  ;;  %s7873_s16 = scalar_lea.vmem [#allocation32], %s5211_s14  ;;  %s4816_s14 = scalar_lea.hbm %s8146_s25, %s5405_s29 }
0x1bcb   : > { %v4119_v62 = vpop.xlane.xlu2 %4118 }
0x1bcc   : > { %5864 = vrcp.f32 %v4119_v62 }
0x1bd2   : > { %v5865_v48 = vpop.eup %5864 }
0x1bd3   : > { %v4145_v50 = vmul.f32 %v5865_v48, %v5861_v23  ;;  %v4122_v51 = vpop.xlane.xlu1 %4121  ;;  %v4065_v52 = vpop.xlane.xlu2 %4064 }
0x1bd4   : > { %5866 = vrcp.f32 %v4122_v51  ;;  %v4087_v27 = vsub.f32 %v4055_v28, %v4065_v52 }
0x1bd5   : > { %5362 = vmatmul.msk.f32.vlgmr.msra.gmra.mxu3 %vm3031_vm10, %v4145_v50 }
0x1bd6   : > { %v4095_v49 = vmul.f32 1.442695, %v4087_v27 }
0x1bd8   : > { %5868 = vpow2.f32 %v4095_v49 }
0x1bda   : > { %v5867_v3 = vpop.eup %5866 }
0x1bdb   : > { %v4068_v53 = vpop.xlane.xlu1 %4067  ;;  %v4077_v54 = vpop.xlane.xlu2 %4076  ;;  %v4146_v55 = vmul.f32 %v5867_v3, %v5863_v5  ;;  %v5361_v3 = vld [vmem:[%s8139_s19 + $0x20] sm:$0xff] }
0x1bdc   : > { %v4088_v56 = vsub.f32 %v4056_v38, %v4068_v53  ;;  %v4091_v60 = vsub.f32 %v4059_v39, %v4077_v54  ;;  %4274 = vmatpush.msrb.mxu2 %v5361_v3  ;;  %v5371_v53 = vld [vmem:[%s8139_s19 + $0x30] sm:$0xff]  ;;  %v5376_v54 = vld [vmem:[%s8139_s19 + $0x38] sm:$0xff]  ;;  %v5761_v3 = vld [vmem:[#allocation17 + $0x1] ss:$0 sm:$0xff] }
0x1bdd   : > { %5363 = vmatmul.msk.f32.gmra.mxu3 %vm3031_vm10, %v4146_v55 }
0x1bde   : > { %v5869_v58 = vpop.eup %5868  ;;  %v4097_v59 = vmul.f32 1.442695, %v4088_v56  ;;  %v4103_v63 = vmul.f32 1.442695, %v4091_v60  ;;  %4339 = vmatpush.msrb.mxu3 %v5371_v53  ;;  %4406 = vmatpush.msra.mxu2 %v5376_v54 }
0x1bdf   : > { %v4111_v61 = vsel %vm3031_vm10, %v5869_v58, 0.0 }
0x1be0   : > { %5870 = vpow2.f32 %v4097_v59  ;;  %4112 = vadd.xlane.f32.xlu1 %v4111_v61 }
0x1be1   : > { %5872 = vpow2.f32 %v4103_v63 }
0x1be3   : > { %v4083_v0 = vpop.xlane.xlu1 %4082  ;;  %v4086_v2 = vpop.xlane.xlu2 %4085 }
0x1be4   : > { %v4094_v37 = vsub.f32 %v4062_v44, %v4086_v2  ;;  %v4093_v6 = vsub.f32 %v4061_v43, %v4083_v0 }
0x1be6   : > { %v5871_v4 = vpop.eup %5870  ;;  %v4109_v9 = vmul.f32 1.442695, %v4094_v37  ;;  %v4107_v8 = vmul.f32 1.442695, %v4093_v6 }
0x1be7   : > { %v4114_v10 = vsel %vm3031_vm10, %v5871_v4, 0.0  ;;  %v5873_v14 = vpop.eup %5872 }
0x1be8   : > { %4115 = vadd.xlane.f32.xlu1 %v4114_v10  ;;  %5874 = vpow2.f32 %v4109_v9  ;;  %v4123_v20 = vsel %vm3031_vm10, %v5873_v14, 0.0  ;;  %v5759_v9 = vld [vmem:[#allocation14 + $0x1] ss:$0 sm:$0xff] }
0x1be9   : > { %5876 = vpow2.f32 %v4107_v8 }
0x1bea   : > { %5878 = vpow2.f32 %v4105_v22 }
0x1beb   : > { %v5713_v12 = vpop.permute.xlu2 %5712 }
0x1bec   : > { %v5714_v15 = vunpack.i.l.bf16 %v5713_v12  ;;  %v5715_v18 = vunpack.i.h.bf16 %v5713_v12 }
0x1bee   : > { %4177 = vmatpush.msrb.mxu1 %v5714_v15  ;;  %v5875_v19 = vpop.eup %5874 }
0x1bef   : > { %v4132_v21 = vsel %vm3031_vm10, %v5875_v19, 0.0  ;;  %v5877_v24 = vpop.eup %5876 }
0x1bf0   : > { %4124 = vadd.xlane.f32.xlu1 %v4123_v20  ;;  %4178 = vmatpush.msrb.mxu1 %v5715_v18  ;;  %v4129_v16 = vsel %vm3031_vm10, %v5877_v24, 0.0  ;;  %v5879_v5 = vpop.eup %5878 }
0x1bf1   : > { %4133 = vadd.xlane.f32.xlu0 %v4132_v21  ;;  %v4126_v31 = vsel %vm3031_vm10, %v5879_v5, 0.0 }
0x1bf3   : > { %v5718_v23 = vpop.permute.xlu2 %5717 }
0x1bf4   : > { %v5719_v25 = vunpack.i.l.bf16 %v5718_v23  ;;  %v5720_v26 = vunpack.i.h.bf16 %v5718_v23 }
0x1bf6   : > { %4308 = vmatpush.msra.mxu1 %v5719_v25 }
0x1bf8   : > { %4130 = vadd.xlane.f32.xlu1 %v4129_v16  ;;  %4309 = vmatpush.msra.mxu1 %v5720_v26 }
0x1bfb   : > { %v5723_v28 = vpop.permute.xlu2 %5722 }
0x1bfc   : > { %v5724_v29 = vunpack.i.l.bf16 %v5723_v28  ;;  %v5725_v30 = vunpack.i.h.bf16 %v5723_v28 }
0x1bfe   : > { %4375 = vmatpush.msra.mxu0 %v5724_v29 }
0x1c00   : > { %4376 = vmatpush.msra.mxu0 %v5725_v30  ;;  %4127 = vadd.xlane.f32.xlu1 %v4126_v31  ;;  %v5382_v31 = vld [vmem:[%s8140_s4 + $0x38] sm:$0xff] }
0x1c53   : > { %v4113_v32 = vpop.xlane.xlu1 %4112 }
0x1c54   : > { %5880 = vrcp.f32 %v4113_v32  ;;  %v5381_v32 = vld [vmem:[%s8140_s4 + $0x30] sm:$0xff] }
0x1c58   : > { %v4217_v33 = vpop.f32.mrf.mxu3 }
0x1c59   : > { %5365 = vmatmul.msk.f32.vlgmr.msrb.gmra.mxu0 %vm1965_vm14, %v4217_v33  ;;  %v5380_v33 = vld [vmem:[%s8140_s4 + $0x28] sm:$0xff] }
0x1c5a   : > { %v5881_v35 = vpop.eup %5880 }
0x1c5b   : > { %v4143_v36 = vmul.f32 %v5881_v35, %v5869_v58  ;;  %v4116_v38 = vpop.xlane.xlu1 %4115  ;;  %v5379_v35 = vld [vmem:[%s8140_s4 + $0x20] sm:$0xff]  ;;  %s6447_s4 = scalar_lea.hbm %s8145_s7, 2 }
0x1c5c   : > { %5882 = vrcp.f32 %v4116_v38 }
0x1c5d   : > { %5359 = vmatmul.msk.f32.vlgmr.msrb.gmra.mxu1 %vm3031_vm10, %v4143_v36 }
0x1c5e   : > { %4511 = vmatpush.msrb.mxu1 %v5382_v31 }
0x1c60   : > { %v4220_v39 = vpop.f32.mrf.mxu3  ;;  %4512 = vmatpush.msrb.mxu1 %v5381_v32 }
0x1c61   : > { %5366 = vmatmul.msk.f32.gmra.mxu0 %vm1965_vm14, %v4220_v39 }
0x1c62   : > { %v5883_v40 = vpop.eup %5882  ;;  %4513 = vmatpush.msrb.mxu1 %v5380_v33  ;;  %v5763_v33 = vld [vmem:[#allocation20 + $0x1] ss:$0 sm:$0xff] }
0x1c63   : > { %v4125_v41 = vpop.xlane.xlu1 %4124  ;;  %v4144_v42 = vmul.f32 %v5883_v40, %v5871_v4 }
0x1c64   : > { %5884 = vrcp.f32 %v4125_v41  ;;  %v4134_v46 = vpop.xlane.xlu0 %4133  ;;  %4514 = vmatpush.msrb.mxu1 %v5379_v35 }
0x1c65   : > { %5360 = vmatmul.msk.f32.gmra.mxu1 %vm3031_vm10, %v4144_v42 }
0x1c6a   : > { %v5885_v43 = vpop.eup %5884 }
0x1c6b   : > { %v4147_v44 = vmul.f32 %v5885_v43, %v5873_v14  ;;  %v4131_v45 = vpop.xlane.xlu1 %4130 }
0x1c6c   : > { %5886 = vrcp.f32 %v4131_v45 }
0x1c6d   : > { %5369 = vmatmul.msk.f32.vlgmr.msra.gmra.mxu1 %vm3031_vm10, %v4147_v44  ;;  %5888 = vrcp.f32 %v4134_v46 }
0x1c72   : > { %v5887_v62 = vpop.eup %5886 }
0x1c73   : > { %v4149_v48 = vmul.f32 %v5887_v62, %v5877_v24  ;;  %v4128_v50 = vpop.xlane.xlu1 %4127  ;;  %v5889_v51 = vpop.eup %5888 }
0x1c74   : > { %5890 = vrcp.f32 %v4128_v50  ;;  %v4150_v49 = vmul.f32 %v5889_v51, %v5875_v19  ;;  %v5760_v51 = vld [vmem:[#allocation15 + $0x1] ss:$0 sm:$0xff] }
0x1c75   : > { %5374 = vmatmul.msk.f32.vlgmr.msra.gmra.mxu0 %vm3031_vm10, %v4149_v48 }
0x1c7a   : > { %v5891_v52 = vpop.eup %5890 }
0x1c7b   : > { %v4148_v27 = vmul.f32 %v5891_v52, %v5879_v5 }
0x1c7d   : > { %5370 = vmatmul.msk.f32.gmra.mxu1 %vm3031_vm10, %v4148_v27  ;;  %5375 = vmatmul.msk.f32.gmra.mxu0 %vm3031_vm10, %v4150_v49 }
0x1cd6   : > { %v4247_v56 = vpop.f32.mrf.mxu0 }
0x1cda   : > { %v4180_v55 = vpop.f32.mrf.mxu1 }
0x1cdb   : > { %5367 = vmatmul.msk.f32.vlgmr.msrb.gmra.mxu2 %vm1965_vm14, %v4180_v55 }
0x1cde   : > { %v4250_v58 = vpop.f32.mrf.mxu0 }
0x1ce2   : > { %v4183_v57 = vpop.f32.mrf.mxu1 }
0x1ce3   : > { %5368 = vmatmul.msk.f32.gmra.mxu2 %vm1965_vm14, %v4183_v57 }
0x1cea   : > { %v4311_v59 = vpop.f32.mrf.mxu1 }
0x1ceb   : > { %5372 = vmatmul.msk.f32.vlgmr.msrb.gmra.mxu3 %vm1965_vm14, %v4311_v59 }
0x1cf2   : > { %v4378_v60 = vpop.f32.mrf.mxu0 }
0x1cf3   : > { %5377 = vmatmul.msk.f32.vlgmr.msra.gmra.mxu2 %vm1965_vm14, %v4378_v60 }
0x1cfa   : > { %v4314_v61 = vpop.f32.mrf.mxu1  ;;  %v4381_v63 = vpop.f32.mrf.mxu0 }
0x1cfb   : > { %5373 = vmatmul.msk.f32.gmra.mxu3 %vm1965_vm14, %v4314_v61  ;;  %5378 = vmatmul.msk.f32.gmra.mxu2 %vm1965_vm14, %v4381_v63 }
0x1d5e   : > { %v4276_v0 = vpop.f32.mrf.mxu2 }
0x1d5f   : > { %v4277_v4 = vadd.f32 %v4276_v0, %v4247_v56  ;;  %v5392_v0 = vld [vmem:[%s8141_s17 + $0x78] sm:$0xff] }
0x1d60   : > { %4568 = vmatpush.msra.mxu3 %v5392_v0 }
0x1d66   : > { %v4279_v2 = vpop.f32.mrf.mxu2 }
0x1d67   : > { %v4280_v14 = vadd.f32 %v4279_v2, %v4250_v58  ;;  %v5391_v2 = vld [vmem:[%s8141_s17 + $0x70] sm:$0xff] }
0x1d68   : > { %4569 = vmatpush.msra.mxu3 %v5391_v2 }
0x1d6e   : > { %v4341_v37 = vpop.f32.mrf.mxu3 }
0x1d6f   : > { %v4347_v6 = vadd.f32 %v4341_v37, %v4277_v4  ;;  %v5390_v37 = vld [vmem:[%s8141_s17 + $0x68] sm:$0xff]  ;;  %v5389_v4 = vld [vmem:[%s8141_s17 + $0x60] sm:$0xff] }
0x1d70   : > { %4570 = vmatpush.msra.mxu3 %v5390_v37 }
0x1d72   : > { %4571 = vmatpush.msra.mxu3 %v5389_v4 }
0x1d76   : > { %v4408_v10 = vpop.f32.mrf.mxu2 }
0x1d77   : > { %v4414_v8 = vadd.f32 %v4408_v10, %v4347_v6  ;;  %v5388_v6 = vld [vmem:[%s8141_s17 + $0x58] sm:$0xff]  ;;  %v5386_v10 = vld [vmem:[%s8141_s17 + $0x48] sm:$0xff] }
0x1d78   : > { %4572 = vmatpush.msra.mxu3 %v5388_v6 }
0x1d79   : > { %v4421_v11 = vadd.f32 %v5759_v9, %v4414_v8  ;;  %v5385_v8 = vld [vmem:[%s8141_s17 + $0x40] sm:$0xff] }
0x1d7b   : > { %v4423_v12 = vadd.f32 %v4421_v11, %v7739_v34  ;;  %v5762_v11 = vld [vmem:[#allocation18 + $0x1] ss:$0 sm:$0xff] }
0x1d7d   : > { %v4429_v15 = vsel %vm1893_vm11, %v4423_v12, 0.0 }
0x1d7e   : > { %v4344_v17 = vpop.f32.mrf.mxu3  ;;  %4430 = vadd.xlane.f32.xlu1 %v4429_v15  ;;  %v4411_v19 = vpop.f32.mrf.mxu2 }
0x1d7f   : > { %v4348_v18 = vadd.f32 %v4344_v17, %v4280_v14 }
0x1d81   : > { %v4415_v20 = vadd.f32 %v4411_v19, %v4348_v18 }
0x1d83   : > { %v4422_v21 = vadd.f32 %v5759_v9, %v4415_v20  ;;  %v5387_v9 = vld [vmem:[%s8141_s17 + $0x50] sm:$0xff] }
0x1d84   : > { %4573 = vmatpush.msra.mxu3 %v5387_v9 }
0x1d85   : > { %v4424_v22 = vadd.f32 %v4422_v21, %v7743_v47 }
0x1d86   : > { %4574 = vmatpush.msra.mxu3 %v5386_v10  ;;  %v5764_v10 = vld [vmem:[#allocation21 + $0x1] ss:$0 sm:$0xff] }
0x1d87   : > { %v4432_v23 = vsel %vm1893_vm11, %v4424_v22, 0.0 }
0x1d88   : > { %4433 = vadd.xlane.f32.xlu2 %v4432_v23  ;;  %4575 = vmatpush.msra.mxu3 %v5385_v8 }
0x1df1   : > { %v4431_v24 = vpop.xlane.xlu1 %4430 }
0x1df2   : > { %v4435_v34 = vmul.f32 %v4431_v24, %v7380_v13 }
0x1df4   : > { %v4437_v25 = vsub.f32 %v4423_v12, %v4435_v34 }
0x1df6   : > { %v4439_v26 = vmul.f32 %v4437_v25, %v4437_v25 }
0x1df8   : > { %v4441_v16 = vsel %vm1893_vm11, %v4439_v26, 0.0 }
0x1df9   : > { %4442 = vadd.xlane.f32.xlu0 %v4441_v16 }
0x1dfb   : > { %v4434_v28 = vpop.xlane.xlu2 %4433 }
0x1dfc   : > { %v4436_v5 = vmul.f32 %v4434_v28, %v7380_v13 }
0x1dfe   : > { %v4438_v29 = vsub.f32 %v4424_v22, %v4436_v5 }
0x1e00   : > { %v4440_v30 = vmul.f32 %v4438_v29, %v4438_v29 }
0x1e02   : > { %v4444_v47 = vsel %vm1893_vm11, %v4440_v30, 0.0 }
0x1e03   : > { %4445 = vadd.xlane.f32.xlu1 %v4444_v47 }
0x1e6c   : > { %v4443_v36 = vpop.xlane.xlu0 %4442 }
0x1e6d   : > { %v4447_v38 = vmul.f32 %v4443_v36, %v7380_v13 }
0x1e6f   : > { %v4449_v39 = vadd.f32 1e-12, %v4447_v38 }
0x1e71   : > { %5892 = vrsqrt.f32 %v4449_v39  ;;  %vm4457_vm4 = vweird.f32 %v4449_v39 }
0x1e76   : > { %v4446_v40 = vpop.xlane.xlu1 %4445 }
0x1e77   : > { %v5893_v41 = vpop.eup %5892  ;;  %v4448_v42 = vmul.f32 %v4446_v40, %v7380_v13 }
0x1e78   : > { %v4452_v43 = vmul.f32 %v5893_v41, %v4449_v39  ;;  %vm4458_vm14 = vweird.f32 %v5893_v41 }
0x1e79   : > { %v4450_v44 = vadd.f32 1e-12, %v4448_v42  ;;  %vm4459_vm6 = vmor %vm4457_vm4, %vm4458_vm14 }
0x1e7a   : > { %v4453_v45 = vmul.f32 %v5893_v41, %v4452_v43 }
0x1e7b   : > { %5894 = vrsqrt.f32 %v4450_v44  ;;  %vm4467_vm12 = vweird.f32 %v4450_v44 }
0x1e7c   : > { %v4454_v46 = vmul.f32 0.5, %v4453_v45 }
0x1e7e   : > { %v4455_v62 = vsub.f32 1.5, %v4454_v46 }
0x1e80   : > { %v4456_v48 = vmul.f32 %v5893_v41, %v4455_v62 }
0x1e81   : > { %v5895_v50 = vpop.eup %5894 }
0x1e82   : > { %v4460_v52 = vsel %vm4459_vm6, %v5893_v41, %v4456_v48  ;;  %v4462_v27 = vmul.f32 %v5895_v50, %v4450_v44  ;;  %vm4468_vm8 = vweird.f32 %v5895_v50 }
0x1e83   : > { %v4471_v49 = vmul.f32 %v4460_v52, %v4437_v25  ;;  %vm4469_vm0 = vmor %vm4467_vm12, %vm4468_vm8 }
0x1e84   : > { %v4463_v53 = vmul.f32 %v5895_v50, %v4462_v27 }
0x1e85   : > { %v4476_v54 = vmul.f32 %v5760_v51, %v4471_v49 }
0x1e86   : > { %v4464_v55 = vmul.f32 0.5, %v4463_v53  ;;  %v4647_v53 = vld [vmem:[%s8142_s9 + $0x10] sm:$0xff] }
0x1e87   : > { %v4481_v56 = vadd.f32 %v5761_v3, %v4476_v54  ;;  %v4646_v54 = vld [vmem:[%s8142_s9 + $0x8] sm:$0xff] }
0x1e88   : > { %v4465_v57 = vsub.f32 1.5, %v4464_v55  ;;  %v4645_v55 = vld [vmem:[%s8142_s9] sm:$0xff] }
0x1e89   : > { %5383 = vmatmul.msk.f32.vlgmr.msrb.gmra.mxu1 %vm1893_vm11, %v4481_v56 }
0x1e8a   : > { %v4466_v58 = vmul.f32 %v5895_v50, %v4465_v57 }
0x1e8c   : > { %v4470_v59 = vsel %vm4469_vm0, %v5895_v50, %v4466_v58 }
0x1e8d   : > { %v4472_v60 = vmul.f32 %v4470_v59, %v4438_v29 }
0x1e8f   : > { %v4477_v61 = vmul.f32 %v5760_v51, %v4472_v60 }
0x1e91   : > { %v4482_v63 = vadd.f32 %v5761_v3, %v4477_v61  ;;  %v4648_v3 = vld [vmem:[%s8142_s9 + $0x18] sm:$0xff] }
0x1e92   : > { %4665 = vmatpush.msrb.mxu0 %v4648_v3  ;;  %v4768_v3 = vld [vmem:[%s8144_s6 + $0x8] sm:$0xff] }
0x1e93   : > { %5384 = vmatmul.msk.f32.gmra.mxu1 %vm1893_vm11, %v4482_v63 }
0x1e94   : > { %4666 = vmatpush.msrb.mxu0 %v4647_v53  ;;  %v4767_v53 = vld [vmem:[%s8144_s6] sm:$0xff] }
0x1e96   : > { %4667 = vmatpush.msrb.mxu0 %v4646_v54 }
0x1e98   : > { %4668 = vmatpush.msrb.mxu0 %v4645_v55 }
0x1f06   : > { %v4516_v12 = vpop.f32.mrf.mxu1 }
0x1f07   : > { %v4517_v14 = vadd.f32 %v5762_v11, %v4516_v12  ;;  %v5765_v12 = vld [vmem:[#allocation23 + $0x1] ss:$0 sm:$0xff] }
0x1f09   : > { %v4524_v15 = vmul.f32 0.044715, %v4517_v14  ;;  %v4522_v16 = vmul.f32 0.5, %v4517_v14 }
0x1f0b   : > { %v4526_v17 = vmul.f32 %v4524_v15, %v4517_v14 }
0x1f0d   : > { %v4528_v18 = vmul.f32 %v4526_v17, %v4517_v14 }
0x1f0f   : > { %v4530_v19 = vadd.f32 %v4528_v18, %v4517_v14 }
0x1f10   : > { %v4519_v20 = vpop.f32.mrf.mxu1 }
0x1f11   : > { %v4532_v21 = vmul.f32 0.7978846, %v4530_v19  ;;  %v4520_v22 = vadd.f32 %v5762_v11, %v4519_v20 }
0x1f13   : > { %5896 = vtanh.f32 %v4532_v21  ;;  %v4525_v23 = vmul.f32 0.044715, %v4520_v22  ;;  %v4523_v47 = vmul.f32 0.5, %v4520_v22 }
0x1f15   : > { %v4527_v24 = vmul.f32 %v4525_v23, %v4520_v22 }
0x1f17   : > { %v4529_v34 = vmul.f32 %v4527_v24, %v4520_v22  ;;  %v4677_v24 = vstv %s4676_s12  ;;  %s4817_s12 = sshll.u32 %s7873_s16, 4  ;;  %s4818_s12 = int_to_ptr.vmem [resolvable:$true] %s4817_s12 }
0x1f18   : > { %vm4678_vm3 = vcmp.eq.s32.totalorder %v7252_v1, %v4677_v24  ;;  %v4649_v1 = vld [vmem:[#allocation24] sm:$0x1] }
0x1f19   : > { %v5897_v25 = vpop.eup %5896  ;;  %v4531_v26 = vadd.f32 %v4529_v34, %v4520_v22 }
0x1f1a   : > { %v4536_v28 = vadd.f32 1.0, %v5897_v25 }
0x1f1b   : > { %v4533_v5 = vmul.f32 0.7978846, %v4531_v26  ;;  %v5396_v26 = vsel %vm4678_vm3, 1.0, %v6660_v7 }
0x1f1c   : > { %v4538_v29 = vmul.f32 %v4536_v28, %v4522_v16  ;;  %v4707_v16 = vld [vmem:[%s8143_s2 + $0x18] sm:$0xff]  ;;  %v4706_v28 = vld [vmem:[%s8143_s2 + $0x10] sm:$0xff] }
0x1f1d   : > { %5898 = vtanh.f32 %v4533_v5  ;;  %4724 = vmatpush.msra.mxu0 %v4707_v16  ;;  %v4705_v5 = vld [vmem:[%s8143_s2 + $0x8] sm:$0xff] }
0x1f1e   : > { %5393 = vmatmul.msk.f32.vlgmr.msra.gmra.mxu3 %vm2417_vm2, %v4538_v29  ;;  %v4704_v29 = vld [vmem:[%s8143_s2] sm:$0xff]  ;;  %s6441_s2 = sshra.s32 %s4836_s23, 4  ;;  %s6442_s2 = int_to_ptr.hbm [resolvable:$true] %s6441_s2 }
0x1f1f   : > { %4725 = vmatpush.msra.mxu0 %v4706_v28  ;;  %s6443_s3 = scalar_lea.hbm %s6442_s2, 1  ;;  %p6448_p0 = scmp.lt.s32.totalorder %s6442_s2, %s8145_s7 }
0x1f20   : > { %p6444_p11 = scmp.ne.s32.totalorder %s6442_s2, %s6443_s3  ;;  %p6449_p2 = scmp.lt.s32.totalorder %s6447_s4, %s6443_s3 }
0x1f21   : > { %4726 = vmatpush.msra.mxu0 %v4705_v5 }
0x1f22   : > { %p6445_p13 = pnand %p6444_p11, %p6974_p6  ;;  %p6450_p3 = por %p6449_p2, %p6448_p0 }
0x1f23   : > { %v5899_v30 = vpop.eup %5898  ;;  %4727 = vmatpush.msra.mxu0 %v4704_v29 }
0x1f24   : > { %v4537_v31 = vadd.f32 1.0, %v5899_v30  ;;  %p6446_p1 = pneg %p6445_p13 }
0x1f26   : > { %v4539_v32 = vmul.f32 %v4537_v31, %v4523_v47  ;;  %p6451_p4 = pnand %p6450_p3, %p6446_p1 }
0x1f28   : > { %5394 = vmatmul.msk.f32.gmra.mxu3 %vm2417_vm2, %v4539_v32  ;;  %v4708_v32 = vld [vmem:[#allocation26] sm:$0x1] }
0x1fa1   : > { %v4577_v35 = vpop.f32.mrf.mxu3 }
0x1fa2   : > { %v4578_v36 = vadd.f32 %v5763_v33, %v4577_v35 }
0x1fa4   : > { %v4583_v38 = vadd.f32 %v4578_v36, %v4481_v56 }
0x1fa6   : > { %v4589_v39 = vsel %vm1893_vm11, %v4583_v38, 0.0 }
0x1fa7   : > { %4590 = vadd.xlane.f32.xlu1 %v4589_v39 }
0x1fab   : > { %v4580_v40 = vpop.f32.mrf.mxu3 }
0x1fac   : > { %v4581_v41 = vadd.f32 %v5763_v33, %v4580_v40 }
0x1fae   : > { %v4584_v42 = vadd.f32 %v4581_v41, %v4482_v63 }
0x1fb0   : > { %v4592_v43 = vsel %vm1893_vm11, %v4584_v42, 0.0 }
0x1fb1   : > { %4593 = vadd.xlane.f32.xlu0 %v4592_v43 }
0x201a   : > { %v4591_v44 = vpop.xlane.xlu1 %4590 }
0x201b   : > { %v4595_v45 = vmul.f32 %v4591_v44, %v7380_v13 }
0x201d   : > { %v4597_v46 = vsub.f32 %v4583_v38, %v4595_v45 }
0x201f   : > { %v4599_v62 = vmul.f32 %v4597_v46, %v4597_v46 }
0x2021   : > { %v4601_v48 = vsel %vm1893_vm11, %v4599_v62, 0.0 }
0x2022   : > { %4602 = vadd.xlane.f32.xlu1 %v4601_v48 }
0x2024   : > { %v4594_v50 = vpop.xlane.xlu0 %4593 }
0x2025   : > { %v4596_v51 = vmul.f32 %v4594_v50, %v7380_v13 }
0x2027   : > { %v4598_v52 = vsub.f32 %v4584_v42, %v4596_v51 }
0x2029   : > { %v4600_v27 = vmul.f32 %v4598_v52, %v4598_v52 }
0x202b   : > { %v4604_v49 = vsel %vm1893_vm11, %v4600_v27, 0.0  ;;  %v4770_v27 = vld [vmem:[%s8144_s6 + $0x18] sm:$0xff] }
0x202c   : > { %4605 = vadd.xlane.f32.xlu0 %v4604_v49  ;;  %4787 = vmatpush.msra.mxu1 %v4770_v27  ;;  %v4769_v49 = vld [vmem:[%s8144_s6 + $0x10] sm:$0xff] }
0x202e   : > { %4788 = vmatpush.msra.mxu1 %v4769_v49 }
0x2030   : > { %4789 = vmatpush.msra.mxu1 %v4768_v3 }
0x2032   : > { %4790 = vmatpush.msra.mxu1 %v4767_v53 }
0x2095   : > { %v4603_v56 = vpop.xlane.xlu1 %4602 }
0x2096   : > { %v4607_v57 = vmul.f32 %v4603_v56, %v7380_v13 }
0x2098   : > { %v4609_v58 = vadd.f32 1e-12, %v4607_v57 }
0x209a   : > { %5900 = vrsqrt.f32 %v4609_v58  ;;  %vm4617_vm5 = vweird.f32 %v4609_v58 }
0x209f   : > { %v4606_v59 = vpop.xlane.xlu0 %4605 }
0x20a0   : > { %v5901_v60 = vpop.eup %5900  ;;  %v4608_v61 = vmul.f32 %v4606_v59, %v7380_v13 }
0x20a1   : > { %v4612_v63 = vmul.f32 %v5901_v60, %v4609_v58  ;;  %vm4618_vm2 = vweird.f32 %v5901_v60 }
0x20a2   : > { %v4610_v0 = vadd.f32 1e-12, %v4608_v61  ;;  %vm4619_vm7 = vmor %vm4617_vm5, %vm4618_vm2 }
0x20a3   : > { %v4613_v2 = vmul.f32 %v5901_v60, %v4612_v63 }
0x20a4   : > { %5902 = vrsqrt.f32 %v4610_v0  ;;  %vm4627_vm13 = vweird.f32 %v4610_v0 }
0x20a5   : > { %v4614_v37 = vmul.f32 0.5, %v4613_v2 }
0x20a7   : > { %v4615_v4 = vsub.f32 1.5, %v4614_v37  ;;  %v4742_v37 = vld [vmem:[#allocation29] sm:$0x1] }
0x20a9   : > { %v4616_v6 = vmul.f32 %v5901_v60, %v4615_v4 }
0x20aa   : > { %v5903_v9 = vpop.eup %5902 }
0x20ab   : > { %v4620_v8 = vsel %vm4619_vm7, %v5901_v60, %v4616_v6  ;;  %v4622_v11 = vmul.f32 %v5903_v9, %v4610_v0  ;;  %vm4628_vm9 = vweird.f32 %v5903_v9  ;;  %v4741_v0 = vld [vmem:[#allocation27] sm:$0x1] }
0x20ac   : > { %v4631_v14 = vmul.f32 %v4620_v8, %v4597_v46  ;;  %vm4629_vm15 = vmor %vm4627_vm13, %vm4628_vm9 }
0x20ad   : > { %v4623_v15 = vmul.f32 %v5903_v9, %v4622_v11 }
0x20ae   : > { %v4636_v17 = vmul.f32 %v5764_v10, %v4631_v14 }
0x20af   : > { %v4624_v18 = vmul.f32 0.5, %v4623_v15 }
0x20b0   : > { %v4641_v19 = vadd.f32 %v5765_v12, %v4636_v17 }
0x20b1   : > { %v4625_v20 = vsub.f32 1.5, %v4624_v18 }
0x20b2   : > { %5395 = vmatmul.msk.f32.vlgmr.msrb.gmra.mxu0 %vm1893_vm11, %v4641_v19  ;;  %4643 = vst.msk [vmem:[%s7873_s16] sm:$0xff] %vm1893_vm11, %v4641_v19 }
0x20b3   : > { %v4626_v21 = vmul.f32 %v5903_v9, %v4625_v20 }
0x20b5   : > { %v4630_v22 = vsel %vm4629_vm15, %v5903_v9, %v4626_v21 }
0x20b6   : > { %v4632_v23 = vmul.f32 %v4630_v22, %v4598_v52 }
0x20b8   : > { %v4637_v34 = vmul.f32 %v5764_v10, %v4632_v23 }
0x20ba   : > { %v4642_v25 = vadd.f32 %v5765_v12, %v4637_v34 }
0x20bc   : > { %4698 = vmatpush.msrb.mxu2 %v4642_v25  ;;  %4644 = vst.msk [vmem:[%s7873_s16 + $0x8] sm:$0xff] %vm1893_vm11, %v4642_v25 }
0x20be   : > { %4699 = vmatpush.msrb.mxu2 %v4641_v19 }
0x20bf   : > { %5397 = vmatmul.msk.f32.vlgmr.msrb.gmra.mxu2 %vm3031_vm10, %v5396_v26 }
0x212f   : > { %v4670_v30 = vpop.f32.mrf.mxu0 }
0x2130   : > { %v4671_v47 = vadd.f32 %v4670_v30, %v4649_v1 }
0x2132   : > { %5904 = vtanh.f32 %v4671_v47 }
0x2138   : > { %v5905_v7 = vpop.eup %5904 }
0x2139   : > { %4675 = vst.msk [vmem:[%s1695_s8] sm:$0x1] %vm4674_vm1, %v5905_v7 }
0x2142   : > { %v4701_v31 = vpop.f32.mrf.mxu2 }
0x2143   : > { %5398 = vmatmul.msk.f32.vlgmr.msra.gmra.mxu0 %vm1893_vm11, %v4701_v31 }
0x21c0   : > { %v4729_v33 = vpop.f32.mrf.mxu0 }
0x21c1   : > { %v4730_v35 = vadd.f32 %v4729_v33, %v4708_v32 }
0x21c3   : > { %v4733_v36 = vmul.f32 0.044715, %v4730_v35  ;;  %v4732_v43 = vmul.f32 0.5, %v4730_v35 }
0x21c5   : > { %v4734_v38 = vmul.f32 %v4733_v36, %v4730_v35 }
0x21c7   : > { %v4735_v39 = vmul.f32 %v4734_v38, %v4730_v35 }
0x21c9   : > { %v4736_v40 = vadd.f32 %v4735_v39, %v4730_v35 }
0x21cb   : > { %v4737_v41 = vmul.f32 0.7978846, %v4736_v40 }
0x21cd   : > { %5906 = vtanh.f32 %v4737_v41 }
0x21d3   : > { %v5907_v42 = vpop.eup %5906 }
0x21d4   : > { %v4739_v44 = vadd.f32 1.0, %v5907_v42 }
0x21d6   : > { %v4740_v45 = vmul.f32 %v4739_v44, %v4732_v43 }
0x21d8   : > { %v4743_v46 = vsel %vm4674_vm1, %v4740_v45, 0.0 }
0x21d9   : > { %4744 = vadd.xlane.f32.xlu0 %v4743_v46 }
0x224c   : > { %v4745_v62 = vpop.xlane.xlu0 %4744 }
0x224d   : > { %v4746_v48 = vmul.f32 %v4745_v62, %v7380_v13 }
0x224f   : > { %v4747_v50 = vsub.f32 %v4740_v45, %v4746_v48 }
0x2251   : > { %v4748_v51 = vmul.f32 %v4747_v50, %v4747_v50 }
0x2253   : > { %v4749_v52 = vsel %vm4674_vm1, %v4748_v51, 0.0 }
0x2254   : > { %4750 = vadd.xlane.f32.xlu1 %v4749_v52 }
0x22c7   : > { %v4751_v54 = vpop.xlane.xlu1 %4750 }
0x22c8   : > { %v4752_v55 = vmul.f32 %v4751_v54, %v7380_v13 }
0x22ca   : > { %v4753_v56 = vadd.f32 1e-12, %v4752_v55 }
0x22cc   : > { %5908 = vrsqrt.f32 %v4753_v56  ;;  %vm4760_vm14 = vweird.f32 %v4753_v56 }
0x22d2   : > { %v5909_v57 = vpop.eup %5908 }
0x22d3   : > { %v4755_v58 = vmul.f32 %v5909_v57, %v4753_v56  ;;  %vm4761_vm10 = vweird.f32 %v5909_v57 }
0x22d4   : > { %vm4762_vm4 = vmor %vm4760_vm14, %vm4761_vm10 }
0x22d5   : > { %v4756_v59 = vmul.f32 %v5909_v57, %v4755_v58 }
0x22d7   : > { %v4757_v60 = vmul.f32 0.5, %v4756_v59 }
0x22d9   : > { %v4758_v61 = vsub.f32 1.5, %v4757_v60 }
0x22db   : > { %v4759_v63 = vmul.f32 %v5909_v57, %v4758_v61 }
0x22dd   : > { %v4763_v13 = vsel %vm4762_vm4, %v5909_v57, %v4759_v63 }
0x22de   : > { %v4764_v2 = vmul.f32 %v4763_v13, %v4747_v50 }
0x22e0   : > { %v4765_v4 = vmul.f32 %v4764_v2, %v4741_v0 }
0x22e2   : > { %v4766_v6 = vadd.f32 %v4765_v4, %v4742_v37 }
0x22e4   : > { %5399 = vmatmul.msk.f32.vlgmr.msra.gmra.mxu1 %vm1893_vm11, %v4766_v6 }
0x22e5   : > { %6454 = shalt.err (!%p6451_p4)
}
0x22e6   : > { %5471 = dma.vmem_to_hbm [thread:$0]  (%p6974_p6), %s4834_s27, 16, %s4836_s23, %s7908_s0  }
0x22e7   : > { %s4819_s16 = sshll.u32 %s4816_s14, 4  ;;  %s4797_s8 = scalar_lea.sflag [#allocation8], %s7868_s13  ;;  %s4820_s16 = int_to_ptr.hbm [resolvable:$true] %s4819_s16 }
0x22e8   : > { %s6469_s15 = sshra.s32 %s4820_s16, 4  ;;  %s6475_s3 = scalar_lea.hbm %s8146_s25, 32  ;;  %s6470_s15 = int_to_ptr.hbm [resolvable:$true] %s6469_s15 }
0x22e9   : > { %s6471_s29 = scalar_lea.hbm %s6470_s15, 16  ;;  %p6476_p12 = scmp.lt.s32.totalorder %s6470_s15, %s8146_s25 }
0x22ea   : > { %p6472_p5 = scmp.ne.s32.totalorder %s6470_s15, %s6471_s29  ;;  %p6477_p10 = scmp.lt.s32.totalorder %s6475_s3, %s6471_s29 }
0x22ec   : > { %p6473_p8 = pnand %p6472_p5, %p6974_p6  ;;  %p6478_p11 = por %p6477_p10, %p6476_p12 }
0x22ee   : > { %p6474_p9 = pneg %p6473_p8 }
0x22f0   : > { %p6479_p13 = pnand %p6478_p11, %p6474_p9 }
0x22f2   : > { %6482 = shalt.err (!%p6479_p13)
}
0x22f3   : > { %s6673_s4 = smov 128   ;;  %s8147_s2 = sld [smem:[#allocation94_spill]]  ;;  %v4771_v9 = vld [vmem:[#allocation30] sm:$0x1] }
0x22f4   : > { %s6674_s21 = smov 8   ;;  %s1701_s23 = scalar_lea.vmem [#allocation35], %s7868_s13 }
0x22f5   : > { %5470 = dma.vmem_to_hbm [thread:$0]  (%p6974_p6), %s4818_s12, 256, %s4820_s16, %s4797_s8, %s6673_s4, %s6673_s4, %s6674_s21  }
0x22f6   : > { %s4846_s14 = sshll.u32 %s1701_s23, 4  ;;  %s4847_s14 = int_to_ptr.vmem [resolvable:$true] %s4846_s14 }
0x22f9   : > { %s4844_s27 = scalar_lea.hbm %s8147_s2, %s6955_s18  ;;  %s6503_s12 = scalar_lea.hbm %s8147_s2, 2 }
0x22fa   : > { %s4848_s15 = sshll.u32 %s4844_s27, 4  ;;  %s4849_s15 = int_to_ptr.hbm [resolvable:$true] %s4848_s15 }
0x22fb   : > { %s6497_s29 = sshra.s32 %s4849_s15, 4  ;;  %s6498_s29 = int_to_ptr.hbm [resolvable:$true] %s6497_s29 }
0x22fc   : > { %s6499_s3 = scalar_lea.hbm %s6498_s29, 1  ;;  %p6504_p3 = scmp.lt.s32.totalorder %s6498_s29, %s8147_s2 }
0x22fd   : > { %p6500_p1 = scmp.ne.s32.totalorder %s6498_s29, %s6499_s3  ;;  %p6505_p4 = scmp.lt.s32.totalorder %s6503_s12, %s6499_s3 }
0x22ff   : > { %p6501_p0 = pnand %p6500_p1, %p6974_p6  ;;  %p6506_p5 = por %p6505_p4, %p6504_p3 }
0x2301   : > { %p6502_p2 = pneg %p6501_p0 }
0x2303   : > { %p6507_p8 = pnand %p6506_p5, %p6502_p2 }
0x2361   : > { %v4792_v10 = vpop.f32.mrf.mxu1 }
0x2362   : > { %v4793_v8 = vadd.f32 %v4792_v10, %v4771_v9 }
0x2364   : > { %4795 = vst [vmem:[%s1701_s23] sm:$0x1] %v4793_v8 }
0x2365   : > { %6510 = shalt.err (!%p6507_p8)
}
0x2366   : > { %5472 = dma.vmem_to_hbm [thread:$0]  (%p6974_p6), %s4847_s14, 16, %s4849_s15, %s7908_s0  }
0x2367 PF: > { %s8148_s18 = sld [smem:[#allocation95_spill]]  ;;  %p5567_p9 = scmp.ge.s32.totalorder %s6587_s11, 2 }
0x2369   : > { %p5526_p12 = pnand %p5567_p9, %p6978_p7 }
0x236b   : > { %p5527_p10 = pneg %p5526_p12 }
0x236d   : > { %s4860_s16 = sand.u32 1, %s8148_s18  }
0x236e   : > { %s4861_s8 = scalar_lea.sflag [#allocation8], %s4860_s16 }
0x236f   : > { %6566 = dma.done.wait (%p5527_p10), %s4861_s8, 256  }
0x2370   : > { %6568 = vsyncadd (%p5527_p10), %s4861_s8, 4294967040  ;;  %s8150_s4 = sadd.s32 4294967294, %s6587_s11  }
0x2371   : > { %s4870_s21 = sand.u32 1, %s8150_s4  }
0x2372   : > { %s4871_s27 = scalar_lea.sflag [#allocation34], %s4870_s21 }
0x2373   : > { %6570 = dma.done.wait (%p5527_p10), %s4871_s27, 32  }
0x2374   : > { %6572 = vsyncadd (%p5527_p10), %s4871_s27, 4294967264  ;;  %s8151_s11 = sld [smem:[#allocation97_spill]]  ;;  %s8154_s21 = smov %s6579_s1 }
0x2375   : > { %s8152_s28 = sld [smem:[#allocation96_spill]] }
0x2376   : > { %s8153_s29 = sld [smem:[#allocation98_spill]] }
0x237a   : > { %p142_p6 = scmp.ge.s32.totalorder %s8151_s11, 4  }
0x237b   : > { %s8155_s1 = smov %s8152_s28 }
0x237c   :  { %144 = sbr.rel (!%p142_p6) target bundleno = 150 (0x96), region = 409 }
0x2381   :  { %4885 = vsyncpa [#allocation7], 1 }
0x2382   :  { %4887 = vsyncpa [#allocation7 + $0x1], 1 }
0x2383   :  { %4888 = vsyncpa [#allocation10], 1 }
0x2384   :  { %4889 = vsyncpa [#allocation13], 1 }
0x2385   :  { %4890 = vsyncpa [#allocation16], 1 }
0x2386   :  { %4891 = vsyncpa [#allocation19], 1 }
0x2387   :  { %4892 = vsyncpa [#allocation22], 1 }
0x2388   :  { %4893 = vsyncpa [#allocation25], 1 }
0x2389   :  { %4894 = vsyncpa [#allocation28], 1 }
0x238a   :  { %4895 = vsyncpa [#allocation31], 1 }
0x238b   :  { %4896 = vsyncpa [#allocation8], 1 }
0x238c   :  { %4898 = vsyncpa [#allocation8 + $0x1], 1 }
0x238d   :  { %4899 = vsyncpa [#allocation34], 1 }
0x238e   :  { %4901 = vsyncpa [#allocation34 + $0x1], 1 }

</bundles_post_ra>
